<compile_context>
chip_gen: v5e
topology: v5e:2x2
jax: 0.10.0
libtpu: 0.0.40
codegen_flags: <defaults>
</compile_context>

<pallas_src>
import functools

import jax
import jax.numpy as jnp
from jax.experimental import pallas as pl
from jax.experimental.pallas import tpu as pltpu

# ---- scaled-down dims (original values in comments) -------------------------
HIDDEN   = 128    # 1024
DOC_PAD  = 512    # 16384
SUM_PAD  = 128    # 1024
CONCAT   = DOC_PAD + SUM_PAD   # 17408
H1, H2, H3 = 512, 256, 64      # 4096, 256, 64
VOCAB    = 100

OUT_LANES = 128   # lane-dense output padding; reward lives in lane 0


def _device_kind():
    try:
        return jax.devices()[0].device_kind.lower()
    except Exception:
        return ""


def _pick_tkd(doc_rows):
    """Doc rows streamed per K step.  The kernel is HBM-bound on w1[:DOC]
    (~128 MiB bf16 at real dims): 8-16 steps of 10-20 MiB keep DMA >85% of the
    HBM roofline and pipeline overhead <6 us.  v7x has only 64 MiB physical
    VMEM, so cap the block there (double-buffered doc+w1d = TKD*20 KiB)."""
    kind = _device_kind()
    tkd = 1024 if ("7" in kind) else 2048            # v7x : v5e/v6e
    tkd = min(tkd, doc_rows)
    while tkd > 1 and doc_rows % tkd:
        tkd //= 2
    return max(tkd, 1)


def _vmem_limit_bytes(tkd, B, S, H, n1, n2, n3p, single_buffer_residents):
    """Explicit VMEM budget (default scoped VMEM: 16 MiB v5e / 32 MiB v6e,v7x
    is too small for real-dim blocks).  Capped below physical per generation."""
    streamed = 2 * (tkd * H * 2 + tkd * n1 * 2)                  # double-buffered bf16
    rbuf = 1 if single_buffer_residents else 2
    resident = rbuf * (B * S * H * 2 + S * n1 * 2 + n1 * n2 * 2 + n2 * n3p * 2
                       + 4 * (H + 2 * n1 + n2 + 2 * n3p))
    scratch = 4 * (n1 + B * n1 + B * OUT_LANES)
    need = streamed + resident + scratch
    cap = (48 << 20) if ("7" in _device_kind()) else (100 << 20)  # physical headroom
    return int(min(max(2 * need, 32 << 20), cap))


def _resident_spec(shape, single_buffer):
    """Constant-index resident input.  With single_buffer, request one VMEM
    buffer (index never changes -> no refetch needed); halves the resident
    footprint (w1s alone is ~8 MiB bf16 at real dims)."""
    ndim = len(shape)
    index_map = lambda k, nb, _nd=ndim: (0,) * _nd
    if single_buffer:
        return pl.BlockSpec(shape, index_map, pipeline_mode=pl.Buffered(1))
    return pl.BlockSpec(shape, index_map)


def reward_kernel(nblk_ref,
                  doc_ref, w1d_ref, summ_ref, wf_ref, w1s_ref, b1_ref,
                  w2_ref, b2_ref, w3_ref, b3_ref, w4_ref, b4_ref,
                  out_ref, acc_ref, hsum_ref):
    """Grid axis 0 streams the document (K) rows of the first head Linear.
    nblk_ref (SMEM, scalar prefetch) = number of K blocks holding real doc rows."""
    k = pl.program_id(0)

    @pl.when(k == 0)
    def _init_and_summary():
        acc_ref[...] = jnp.zeros_like(acc_ref)
        # Summary side hoisted to step 0: the (B,S,H) VPU flatten + the
        # (B,S)x(S,H1) MXU matmul hide under the doc/w1d HBM stream instead of
        # serializing as a tail after the last DMA.
        summ = summ_ref[...].astype(jnp.float32)                      # (B, S, H)
        wf3 = wf_ref[...].reshape(1, 1, -1)                           # (1, 1, H)
        summ_flat = jnp.sum(summ * wf3, axis=-1)                      # (B, S) f32
        # bf (flatten bias) is already folded into b1 on the host.
        hsum_ref[...] = jnp.dot(summ_flat.astype(jnp.bfloat16), w1s_ref[...],
                                preferred_element_type=jnp.float32) + b1_ref[...]

    # --- document side (batch independent), skipping pure-padding K blocks ---
    @pl.when(k < nblk_ref[0])
    def _doc_accumulate():
        # flatten Linear: (1, H) x (TKD, H) contracting the last dim of both
        # operands -> lane-dense (1, TKD); no squeeze / transpose needed.
        doc_flat = jax.lax.dot_general(
            wf_ref[...].astype(jnp.bfloat16), doc_ref[...],
            (((1,), (1,)), ((), ())),
            preferred_element_type=jnp.float32)                       # (1, TKD)
        # doc half of head Linear-1, accumulated across valid K blocks.
        acc_ref[...] += jnp.dot(doc_flat.astype(jnp.bfloat16), w1d_ref[...],
                                preferred_element_type=jnp.float32)   # (1, H1)

    @pl.when(k == pl.num_programs(0) - 1)
    def _finalize():
        # head Linear-1 = hoisted summary term + accumulated doc term.
        h = jnp.maximum(hsum_ref[...] + acc_ref[...], 0.0)            # (B, H1)
        h = jnp.maximum(jnp.dot(h.astype(jnp.bfloat16), w2_ref[...],
                                preferred_element_type=jnp.float32) + b2_ref[...], 0.0)
        h = jnp.maximum(jnp.dot(h.astype(jnp.bfloat16), w3_ref[...],
                                preferred_element_type=jnp.float32) + b3_ref[...], 0.0)
        # final Linear (out_features=1): VPU multiply + reduce, no 1-lane matmul.
        r = jnp.sum(h * w4_ref[...], axis=-1, keepdims=True) + b4_ref[0, 0]   # (B, 1)
        out_ref[...] = jnp.broadcast_to(r, out_ref.shape)             # lane-dense store


@functools.partial(jax.jit, static_argnames=("tkd", "single_buffer_residents"))
def reward_pallas(doc_hidden_padded, summ_hidden_padded, params, doc_len,
                  *, tkd=None, single_buffer_residents=True):
    """doc_hidden_padded: (DOC_PAD, HIDDEN) f32 (doc batch == 1, as the torch cat implies)
       summ_hidden_padded: (B, SUM_PAD, HIDDEN) f32
       doc_len: () int32 — true (un-padded) number of document positions.
       returns (B, 1) rewards."""
    wf, bf, w1, b1, w2, b2, w3, b3, w4, b4 = params
    B, S, H = summ_hidden_padded.shape
    D = doc_hidden_padded.shape[0]
    n1, n2, n3 = w1.shape[1], w2.shape[1], w3.shape[1]
    if tkd is None:
        tkd = _pick_tkd(D)
    assert D % tkd == 0 and w1.shape[0] == D + S
    n_blocks = D // tkd

    # --- host-side (trace-time) parameter prep --------------------------------
    #  * weights / hidden states -> bf16 (MXU-native, halves HBM & VMEM traffic)
    #  * fold flatten bias:  b1' = b1 + bf * colsum(w1)
    #  * split w1 into doc / summary halves (the concat is never materialized)
    #  * zero-pad H3 up to a lane multiple (exact: padded units are dead)
    n3p = ((n3 + 127) // 128) * 128
    w1d = w1[:D].astype(jnp.bfloat16)
    w1s = w1[D:].astype(jnp.bfloat16)
    b1f = (b1 + bf[0, 0] * jnp.sum(w1, axis=0, keepdims=True)).astype(jnp.float32)
    w3p = jnp.pad(w3, ((0, 0), (0, n3p - n3))).astype(jnp.bfloat16)
    b3p = jnp.pad(b3, ((0, 0), (0, n3p - n3))).astype(jnp.float32)
    w4r = jnp.pad(w4[:, 0][None, :], ((0, 0), (0, n3p - n3))).astype(jnp.float32)

    # K blocks containing real (non zero-padded) doc rows; blocks beyond this
    # are pure padding: the index_map clamps to the last valid block (no extra
    # DMA) and pl.when skips the compute.
    nblk = jnp.clip((doc_len + tkd - 1) // tkd, 1, n_blocks).astype(jnp.int32).reshape(1)

    stream_spec = lambda cols: pl.BlockSpec(
        (tkd, cols), lambda k, nb: (jnp.minimum(k, nb[0] - 1), 0))
    res = functools.partial(_resident_spec, single_buffer=single_buffer_residents)

    out = pl.pallas_call(
        reward_kernel,
        grid_spec=pltpu.PrefetchScalarGridSpec(
            num_scalar_prefetch=1,
            grid=(n_blocks,),
            in_specs=[
                stream_spec(H),                                   # doc hidden  (streamed)
                stream_spec(n1),                                  # w1 doc half (streamed, dominant)
                res((B, S, H)),                                   # summary hidden (resident)
                res((1, H)),                                      # flatten weight (row)
                res((S, n1)),                                     # w1 summary half
                res((1, n1)),                                     # b1 (bf folded in)
                res((n1, n2)),                                    # w2
                res((1, n2)),                                     # b2
                res((n2, n3p)),                                   # w3 (lane padded)
                res((1, n3p)),                                    # b3 (lane padded)
                res((1, n3p)),                                    # w4 as a row
                pl.BlockSpec(memory_space=pltpu.MemorySpace.SMEM),  # b4 scalar
            ],
            out_specs=pl.BlockSpec((B, OUT_LANES), lambda k, nb: (0, 0)),
            scratch_shapes=[pltpu.VMEM((1, n1), jnp.float32),     # doc-term accumulator
                            pltpu.VMEM((B, n1), jnp.float32)],    # hoisted summary term
        ),
        out_shape=jax.ShapeDtypeStruct((B, OUT_LANES), jnp.float32),
        compiler_params=pltpu.CompilerParams(
            # single TC on v5e/v6e -> no megacore effort; K is a carried reduction.
            dimension_semantics=("arbitrary",),
            vmem_limit_bytes=_vmem_limit_bytes(tkd, B, S, H, n1, n2, n3p,
                                               single_buffer_residents)),
    )(nblk,
      doc_hidden_padded.astype(jnp.bfloat16), w1d,
      summ_hidden_padded.astype(jnp.bfloat16),
      wf.reshape(1, H).astype(jnp.float32), w1s, b1f,
      w2.astype(jnp.bfloat16), b2.astype(jnp.float32),
      w3p, b3p, w4r, b4.astype(jnp.float32))

    return out[:, :1]                                             # (B, 1)


def reference_forward(doc_hidden_padded, summ_hidden_padded, params):
    """Pure-JAX f32 reference of the post-encoder compute (mirrors the torch module)."""
    wf, bf, w1, b1, w2, b2, w3, b3, w4, b4 = params
    B = summ_hidden_padded.shape[0]
    doc_rep = jnp.broadcast_to(doc_hidden_padded[None], (B,) + doc_hidden_padded.shape)
    concat = jnp.concatenate([doc_rep, summ_hidden_padded], axis=1)   # (B, CONCAT, H)
    flat = concat @ wf + bf[0, 0]                                     # flatten Linear
    feats = flat[:, :, 0]                                             # transpose(1,2) squeezed
    h = jnp.maximum(feats @ w1 + b1, 0.0)
    h = jnp.maximum(h @ w2 + b2, 0.0)
    h = jnp.maximum(h @ w3 + b3, 0.0)
    return h @ w4 + b4                                                # (B, 1)


if __name__ == "__main__":
    key = jax.random.PRNGKey(0)
    ks = jax.random.split(key, 16)

    # bf16-representable f32 params so the f32 reference and the bf16-streaming
    # kernel see identical weight values.
    bf16r = lambda x: x.astype(jnp.bfloat16).astype(jnp.float32)

    # deterministic "pretrained" parameters ----------------------------------
    led_emb  = bf16r(jax.random.normal(ks[0], (VOCAB, HIDDEN), jnp.float32))
    bart_emb = bf16r(jax.random.normal(ks[1], (VOCAB, HIDDEN), jnp.float32))

    wf = bf16r(jax.random.normal(ks[2], (HIDDEN, 1), jnp.float32) * 0.1)     # flatten
    bf = jnp.full((1, 1), 0.05, jnp.float32)
    w1 = bf16r(jax.random.normal(ks[3], (CONCAT, H1), jnp.float32) * 0.06)
    b1 = bf16r(jax.random.normal(ks[9], (1, H1), jnp.float32) * 0.02)
    w2 = bf16r(jax.random.normal(ks[4], (H1, H2), jnp.float32) * 0.045)
    b2 = bf16r(jax.random.normal(ks[10], (1, H2), jnp.float32) * 0.02)
    w3 = bf16r(jax.random.normal(ks[5], (H2, H3), jnp.float32) * 0.0625)
    b3 = bf16r(jax.random.normal(ks[11], (1, H3), jnp.float32) * 0.02)
    w4 = bf16r(jax.random.normal(ks[6], (H3, 1), jnp.float32) * 0.125)
    b4 = jnp.full((1, 1), 0.1, jnp.float32)
    params = (wf, bf, w1, b1, w2, b2, w3, b3, w4, b4)

    # example inputs ----------------------------------------------------------
    B_DOC, L_DOC = 1, 200     # doc batch must be 1 (as the torch cat implies)
    B_SUM, L_SUM = 2, 48
    input_ids = jax.random.randint(ks[7], (B_DOC, L_DOC), 0, VOCAB)
    summary_input_ids = jax.random.randint(ks[8], (B_SUM, L_SUM), 0, VOCAB)

    # TODO(synk): the LED ('allenai/led-large-16384-arxiv') and BART
    # ('facebook/bart-large') encoders are full pretrained transformer stacks
    # with no compact Pallas equivalent; deterministic embedding+tanh stand-ins
    # produce a `last_hidden_state` of the right shape/dtype.
    led_hidden  = bf16r(jnp.tanh(led_emb[input_ids]))             # (1, L_DOC, HIDDEN)
    bart_hidden = bf16r(jnp.tanh(bart_emb[summary_input_ids]))    # (B_SUM, L_SUM, HIDDEN)

    # zero-padding == torch.zeros(...); output[:, :L, :] = hidden_state
    doc_padded = jnp.zeros((DOC_PAD, HIDDEN), jnp.float32).at[:L_DOC].set(led_hidden[0])
    summ_padded = jnp.zeros((B_SUM, SUM_PAD, HIDDEN), jnp.float32).at[:, :L_SUM].set(bart_hidden)
    doc_len = jnp.asarray(L_DOC, jnp.int32)

    # Demo TKD=128 -> 4 K blocks of which only 2 hold real rows (skip path is
    # exercised).  At real dims use 2048 (v5e/v6e) / 1024 (v7x), see _pick_tkd.
    TKD_DEMO = 128
    run = functools.partial(reward_pallas, doc_padded, summ_padded, params, doc_len,
                            tkd=TKD_DEMO)
    try:
        out = jax.block_until_ready(run(single_buffer_residents=True))
    except Exception:
        # jax versions without BlockSpec pipeline_mode / pl.Buffered support:
        # identical kernel with default double-buffered residents.
        out = jax.block_until_ready(run(single_buffer_residents=False))

    ref = reference_forward(doc_padded, summ_padded, params)
    assert out.shape == (B_SUM, 1)
    assert jnp.allclose(out, ref, rtol=2e-2, atol=1e-2), (out, ref)

    result = out[:, 0]        # == result.squeeze() -> shape (B_SUM,)
    assert result.shape == (B_SUM,)
    print("KERNEL_OK")
</pallas_src>

<mosaic_0001>
module attributes {stable_mosaic.version = 11 : i64} {
  func.func @reward_kernel(%arg0: i32, %arg1: memref<1xi32, #tpu.memory_space<smem>>, %arg2: memref<128x128xbf16, #tpu.memory_space<vmem>>, %arg3: memref<128x512xbf16, #tpu.memory_space<vmem>>, %arg4: memref<2x128x128xbf16, #tpu.memory_space<vmem>>, %arg5: memref<1x128xf32, #tpu.memory_space<vmem>>, %arg6: memref<128x512xbf16, #tpu.memory_space<vmem>>, %arg7: memref<1x512xf32, #tpu.memory_space<vmem>>, %arg8: memref<512x256xbf16, #tpu.memory_space<vmem>>, %arg9: memref<1x256xf32, #tpu.memory_space<vmem>>, %arg10: memref<256x128xbf16, #tpu.memory_space<vmem>>, %arg11: memref<1x128xf32, #tpu.memory_space<vmem>>, %arg12: memref<1x128xf32, #tpu.memory_space<vmem>>, %arg13: memref<1x1xf32, #tpu.memory_space<smem>>, %arg14: memref<2x128xf32, #tpu.memory_space<vmem>>, %arg15: memref<1x512xf32, #tpu.memory_space<vmem>>, %arg16: memref<2x512xf32, #tpu.memory_space<vmem>>) attributes {dimension_semantics = [#tpu.dimension_semantics<arbitrary>], iteration_bounds = array<i64: 4>, scalar_prefetch = 1 : i64, scratch_operands = 2 : i64, tpu.core_type = #tpu.core_type<tc>, window_params = [{transform_indices = @transform_0, window_bounds = array<i64: 128, 128>}, {transform_indices = @transform_1, window_bounds = array<i64: 128, 512>}, {pipeline_mode = #tpu.pipeline_mode<synchronous>, transform_indices = @transform_2, window_bounds = array<i64: 2, 128, 128>}, {pipeline_mode = #tpu.pipeline_mode<synchronous>, transform_indices = @transform_3, window_bounds = array<i64: 1, 128>}, {pipeline_mode = #tpu.pipeline_mode<synchronous>, transform_indices = @transform_4, window_bounds = array<i64: 128, 512>}, {pipeline_mode = #tpu.pipeline_mode<synchronous>, transform_indices = @transform_5, window_bounds = array<i64: 1, 512>}, {pipeline_mode = #tpu.pipeline_mode<synchronous>, transform_indices = @transform_6, window_bounds = array<i64: 512, 256>}, {pipeline_mode = #tpu.pipeline_mode<synchronous>, transform_indices = @transform_7, window_bounds = array<i64: 1, 256>}, {pipeline_mode = #tpu.pipeline_mode<synchronous>, transform_indices = @transform_8, window_bounds = array<i64: 256, 128>}, {pipeline_mode = #tpu.pipeline_mode<synchronous>, transform_indices = @transform_9, window_bounds = array<i64: 1, 128>}, {pipeline_mode = #tpu.pipeline_mode<synchronous>, transform_indices = @transform_10, window_bounds = array<i64: 1, 128>}, {transform_indices = @transform_11, window_bounds = array<i64: 1, 1>}, {pipeline_mode = #tpu.pipeline_mode<synchronous>, transform_indices = @transform_12, window_bounds = array<i64: 2, 128>}]} {
    %c0_i32 = arith.constant 0 : i32
    %0 = arith.cmpi eq, %arg0, %c0_i32 : i32
    %1 = arith.extui %0 : i1 to i32
    %c0_i32_0 = arith.constant 0 : i32
    %2 = arith.cmpi ne, %1, %c0_i32_0 : i32
    scf.if %2 {
      %cst = arith.constant 0.000000e+00 : f32
      %10 = vector.broadcast %cst : f32 to vector<1x512xf32>
      %c0_3 = arith.constant 0 : index
      %c0_4 = arith.constant 0 : index
      %11 = vector.load %arg15[%c0_3, %c0_4] : memref<1x512xf32, #tpu.memory_space<vmem>>, vector<1x512xf32>
      tpu.vector_store %arg15[%c0_3, %c0_4], %10 {strides = array<i32>} : memref<1x512xf32, #tpu.memory_space<vmem>>, vector<1x512xf32>,
      %c0_5 = arith.constant 0 : index
      %c0_6 = arith.constant 0 : index
      %c0_7 = arith.constant 0 : index
      %12 = vector.load %arg4[%c0_5, %c0_6, %c0_7] : memref<2x128x128xbf16, #tpu.memory_space<vmem>>, vector<2x128x128xbf16>
      %13 = arith.extf %12 : vector<2x128x128xbf16> to vector<2x128x128xf32>
      %c0_8 = arith.constant 0 : index
      %c0_9 = arith.constant 0 : index
      %14 = vector.load %arg5[%c0_8, %c0_9] : memref<1x128xf32, #tpu.memory_space<vmem>>, vector<1x128xf32>
      %15 = vector.shape_cast %14 : vector<1x128xf32> to vector<1x1x128xf32>
      %16 = vector.broadcast %15 : vector<1x1x128xf32> to vector<2x128x128xf32>
      %17 = arith.mulf %13, %16 : vector<2x128x128xf32>
      %cst_10 = arith.constant dense<0.000000e+00> : vector<2x128xf32>
      %18 = vector.multi_reduction <add>, %17, %cst_10 [2] : vector<2x128x128xf32> to vector<2x128xf32>
      %19 = arith.truncf %18 : vector<2x128xf32> to vector<2x128xbf16>
      %c0_11 = arith.constant 0 : index
      %c0_12 = arith.constant 0 : index
      %20 = vector.load %arg6[%c0_11, %c0_12] : memref<128x512xbf16, #tpu.memory_space<vmem>>, vector<128x512xbf16>
      %cst_13 = arith.constant dense<0.000000e+00> : vector<2x512xf32>
      %21 = tpu.matmul %19, %20, %cst_13 {dimension_numbers = #tpu.dot_dimension_numbers<[1], [0], [0], [1], [0, 0, 1, 1], [], []>} : vector<2x128xbf16>, vector<128x512xbf16>, vector<2x512xf32> -> vector<2x512xf32>
      %c0_14 = arith.constant 0 : index
      %c0_15 = arith.constant 0 : index
      %22 = vector.load %arg7[%c0_14, %c0_15] : memref<1x512xf32, #tpu.memory_space<vmem>>, vector<1x512xf32>
      %23 = vector.broadcast %22 : vector<1x512xf32> to vector<2x512xf32>
      %24 = arith.addf %21, %23 : vector<2x512xf32>
      %c0_16 = arith.constant 0 : index
      %c0_17 = arith.constant 0 : index
      %25 = vector.load %arg16[%c0_16, %c0_17] : memref<2x512xf32, #tpu.memory_space<vmem>>, vector<2x512xf32>
      tpu.vector_store %arg16[%c0_16, %c0_17], %24 {strides = array<i32>} : memref<2x512xf32, #tpu.memory_space<vmem>>, vector<2x512xf32>,
    } else {
    }
    %c0 = arith.constant 0 : index
    %3 = memref.load %arg1[%c0] : memref<1xi32, #tpu.memory_space<smem>>
    %4 = arith.cmpi slt, %arg0, %3 : i32
    %5 = arith.extui %4 : i1 to i32
    %c0_i32_1 = arith.constant 0 : i32
    %6 = arith.cmpi ne, %5, %c0_i32_1 : i32
    scf.if %6 {
      %c0_3 = arith.constant 0 : index
      %c0_4 = arith.constant 0 : index
      %10 = vector.load %arg5[%c0_3, %c0_4] : memref<1x128xf32, #tpu.memory_space<vmem>>, vector<1x128xf32>
      %11 = arith.truncf %10 : vector<1x128xf32> to vector<1x128xbf16>
      %c0_5 = arith.constant 0 : index
      %c0_6 = arith.constant 0 : index
      %12 = vector.load %arg2[%c0_5, %c0_6] : memref<128x128xbf16, #tpu.memory_space<vmem>>, vector<128x128xbf16>
      %cst = arith.constant dense<0.000000e+00> : vector<1x128xf32>
      %13 = tpu.matmul %11, %12, %cst {dimension_numbers = #tpu.dot_dimension_numbers<[1], [1], [0], [0], [0, 0, 1, 0], [], []>} : vector<1x128xbf16>, vector<128x128xbf16>, vector<1x128xf32> -> vector<1x128xf32>
      %c0_7 = arith.constant 0 : index
      %c0_8 = arith.constant 0 : index
      %14 = vector.load %arg15[%c0_7, %c0_8] : memref<1x512xf32, #tpu.memory_space<vmem>>, vector<1x512xf32>
      %15 = arith.truncf %13 : vector<1x128xf32> to vector<1x128xbf16>
      %c0_9 = arith.constant 0 : index
      %c0_10 = arith.constant 0 : index
      %16 = vector.load %arg3[%c0_9, %c0_10] : memref<128x512xbf16, #tpu.memory_space<vmem>>, vector<128x512xbf16>
      %cst_11 = arith.constant dense<0.000000e+00> : vector<1x512xf32>
      %17 = tpu.matmul %15, %16, %cst_11 {dimension_numbers = #tpu.dot_dimension_numbers<[1], [0], [0], [1], [0, 0, 1, 1], [], []>} : vector<1x128xbf16>, vector<128x512xbf16>, vector<1x512xf32> -> vector<1x512xf32>
      %18 = arith.addf %14, %17 : vector<1x512xf32>
      %c0_12 = arith.constant 0 : index
      %c0_13 = arith.constant 0 : index
      %19 = vector.load %arg15[%c0_12, %c0_13] : memref<1x512xf32, #tpu.memory_space<vmem>>, vector<1x512xf32>
      tpu.vector_store %arg15[%c0_12, %c0_13], %18 {strides = array<i32>} : memref<1x512xf32, #tpu.memory_space<vmem>>, vector<1x512xf32>,
    } else {
    }
    %c3_i32 = arith.constant 3 : i32
    %7 = arith.cmpi eq, %arg0, %c3_i32 : i32
    %8 = arith.extui %7 : i1 to i32
    %c0_i32_2 = arith.constant 0 : i32
    %9 = arith.cmpi ne, %8, %c0_i32_2 : i32
    scf.if %9 {
      %c0_3 = arith.constant 0 : index
      %c0_4 = arith.constant 0 : index
      %10 = vector.load %arg16[%c0_3, %c0_4] : memref<2x512xf32, #tpu.memory_space<vmem>>, vector<2x512xf32>
      %c0_5 = arith.constant 0 : index
      %c0_6 = arith.constant 0 : index
      %11 = vector.load %arg15[%c0_5, %c0_6] : memref<1x512xf32, #tpu.memory_space<vmem>>, vector<1x512xf32>
      %12 = vector.broadcast %11 : vector<1x512xf32> to vector<2x512xf32>
      %13 = arith.addf %10, %12 : vector<2x512xf32>
      %cst = arith.constant 0.000000e+00 : f32
      %14 = vector.broadcast %cst : f32 to vector<2x512xf32>
      %15 = arith.maximumf %13, %14 : vector<2x512xf32>
      %16 = arith.truncf %15 : vector<2x512xf32> to vector<2x512xbf16>
      %c0_7 = arith.constant 0 : index
      %c0_8 = arith.constant 0 : index
      %17 = vector.load %arg8[%c0_7, %c0_8] : memref<512x256xbf16, #tpu.memory_space<vmem>>, vector<512x256xbf16>
      %cst_9 = arith.constant dense<0.000000e+00> : vector<2x256xf32>
      %18 = tpu.matmul %16, %17, %cst_9 {dimension_numbers = #tpu.dot_dimension_numbers<[1], [0], [0], [1], [0, 0, 1, 1], [], []>} : vector<2x512xbf16>, vector<512x256xbf16>, vector<2x256xf32> -> vector<2x256xf32>
      %c0_10 = arith.constant 0 : index
      %c0_11 = arith.constant 0 : index
      %19 = vector.load %arg9[%c0_10, %c0_11] : memref<1x256xf32, #tpu.memory_space<vmem>>, vector<1x256xf32>
      %20 = vector.broadcast %19 : vector<1x256xf32> to vector<2x256xf32>
      %21 = arith.addf %18, %20 : vector<2x256xf32>
      %cst_12 = arith.constant 0.000000e+00 : f32
      %22 = vector.broadcast %cst_12 : f32 to vector<2x256xf32>
      %23 = arith.maximumf %21, %22 : vector<2x256xf32>
      %24 = arith.truncf %23 : vector<2x256xf32> to vector<2x256xbf16>
      %c0_13 = arith.constant 0 : index
      %c0_14 = arith.constant 0 : index
      %25 = vector.load %arg10[%c0_13, %c0_14] : memref<256x128xbf16, #tpu.memory_space<vmem>>, vector<256x128xbf16>
      %cst_15 = arith.constant dense<0.000000e+00> : vector<2x128xf32>
      %26 = tpu.matmul %24, %25, %cst_15 {dimension_numbers = #tpu.dot_dimension_numbers<[1], [0], [0], [1], [0, 0, 1, 1], [], []>} : vector<2x256xbf16>, vector<256x128xbf16>, vector<2x128xf32> -> vector<2x128xf32>
      %c0_16 = arith.constant 0 : index
      %c0_17 = arith.constant 0 : index
      %27 = vector.load %arg11[%c0_16, %c0_17] : memref<1x128xf32, #tpu.memory_space<vmem>>, vector<1x128xf32>
      %28 = vector.broadcast %27 : vector<1x128xf32> to vector<2x128xf32>
      %29 = arith.addf %26, %28 : vector<2x128xf32>
      %cst_18 = arith.constant 0.000000e+00 : f32
      %30 = vector.broadcast %cst_18 : f32 to vector<2x128xf32>
      %31 = arith.maximumf %29, %30 : vector<2x128xf32>
      %c0_19 = arith.constant 0 : index
      %c0_20 = arith.constant 0 : index
      %32 = vector.load %arg12[%c0_19, %c0_20] : memref<1x128xf32, #tpu.memory_space<vmem>>, vector<1x128xf32>
      %33 = vector.broadcast %32 : vector<1x128xf32> to vector<2x128xf32>
      %34 = arith.mulf %31, %33 : vector<2x128xf32>
      %cst_21 = arith.constant dense<0.000000e+00> : vector<2xf32>
      %35 = vector.multi_reduction <add>, %34, %cst_21 [1] : vector<2x128xf32> to vector<2xf32>
      %36 = vector.shape_cast %35 : vector<2xf32> to vector<2x1xf32>
      %c0_22 = arith.constant 0 : index
      %c0_23 = arith.constant 0 : index
      %37 = memref.load %arg13[%c0_22, %c0_23] : memref<1x1xf32, #tpu.memory_space<smem>>
      %38 = vector.broadcast %37 : f32 to vector<2x1xf32>
      %39 = arith.addf %36, %38 : vector<2x1xf32>
      %40 = vector.shape_cast %39 : vector<2x1xf32> to vector<2x1xf32>
      %41 = vector.broadcast %40 : vector<2x1xf32> to vector<2x128xf32>
      %c0_24 = arith.constant 0 : index
      %c0_25 = arith.constant 0 : index
      %42 = vector.load %arg14[%c0_24, %c0_25] : memref<2x128xf32, #tpu.memory_space<vmem>>, vector<2x128xf32>
      tpu.vector_store %arg14[%c0_24, %c0_25], %41 {strides = array<i32>} : memref<2x128xf32, #tpu.memory_space<vmem>>, vector<2x128xf32>,
    } else {
    }
    return
  }
  func.func @transform_0(%arg0: i32, %arg1: memref<1xi32, #tpu.memory_space<smem>>) -> (i32, i32) {
    %c0 = arith.constant 0 : index
    %0 = memref.load %arg1[%c0] : memref<1xi32, #tpu.memory_space<smem>>
    %c1_i32 = arith.constant 1 : i32
    %1 = arith.subi %0, %c1_i32 : i32
    %2 = arith.minsi %arg0, %1 : i32
    %c0_i32 = arith.constant 0 : i32
    %c0_i32_0 = arith.constant 0 : i32
    return %2, %c0_i32 : i32, i32
  }
  func.func @transform_1(%arg0: i32, %arg1: memref<1xi32, #tpu.memory_space<smem>>) -> (i32, i32) {
    %c0 = arith.constant 0 : index
    %0 = memref.load %arg1[%c0] : memref<1xi32, #tpu.memory_space<smem>>
    %c1_i32 = arith.constant 1 : i32
    %1 = arith.subi %0, %c1_i32 : i32
    %2 = arith.minsi %arg0, %1 : i32
    %c0_i32 = arith.constant 0 : i32
    %c0_i32_0 = arith.constant 0 : i32
    return %2, %c0_i32 : i32, i32
  }
  func.func @transform_2(%arg0: i32, %arg1: memref<1xi32, #tpu.memory_space<smem>>) -> (i32, i32, i32) {
    %c0_i32 = arith.constant 0 : i32
    %c0_i32_0 = arith.constant 0 : i32
    %c0_i32_1 = arith.constant 0 : i32
    %c0_i32_2 = arith.constant 0 : i32
    return %c0_i32, %c0_i32_0, %c0_i32_1 : i32, i32, i32
  }
  func.func @transform_3(%arg0: i32, %arg1: memref<1xi32, #tpu.memory_space<smem>>) -> (i32, i32) {
    %c0_i32 = arith.constant 0 : i32
    %c0_i32_0 = arith.constant 0 : i32
    %c0_i32_1 = arith.constant 0 : i32
    return %c0_i32, %c0_i32_0 : i32, i32
  }
  func.func @transform_4(%arg0: i32, %arg1: memref<1xi32, #tpu.memory_space<smem>>) -> (i32, i32) {
    %c0_i32 = arith.constant 0 : i32
    %c0_i32_0 = arith.constant 0 : i32
    %c0_i32_1 = arith.constant 0 : i32
    return %c0_i32, %c0_i32_0 : i32, i32
  }
  func.func @transform_5(%arg0: i32, %arg1: memref<1xi32, #tpu.memory_space<smem>>) -> (i32, i32) {
    %c0_i32 = arith.constant 0 : i32
    %c0_i32_0 = arith.constant 0 : i32
    %c0_i32_1 = arith.constant 0 : i32
    return %c0_i32, %c0_i32_0 : i32, i32
  }
  func.func @transform_6(%arg0: i32, %arg1: memref<1xi32, #tpu.memory_space<smem>>) -> (i32, i32) {
    %c0_i32 = arith.constant 0 : i32
    %c0_i32_0 = arith.constant 0 : i32
    %c0_i32_1 = arith.constant 0 : i32
    return %c0_i32, %c0_i32_0 : i32, i32
  }
  func.func @transform_7(%arg0: i32, %arg1: memref<1xi32, #tpu.memory_space<smem>>) -> (i32, i32) {
    %c0_i32 = arith.constant 0 : i32
    %c0_i32_0 = arith.constant 0 : i32
    %c0_i32_1 = arith.constant 0 : i32
    return %c0_i32, %c0_i32_0 : i32, i32
  }
  func.func @transform_8(%arg0: i32, %arg1: memref<1xi32, #tpu.memory_space<smem>>) -> (i32, i32) {
    %c0_i32 = arith.constant 0 : i32
    %c0_i32_0 = arith.constant 0 : i32
    %c0_i32_1 = arith.constant 0 : i32
    return %c0_i32, %c0_i32_0 : i32, i32
  }
  func.func @transform_9(%arg0: i32, %arg1: memref<1xi32, #tpu.memory_space<smem>>) -> (i32, i32) {
    %c0_i32 = arith.constant 0 : i32
    %c0_i32_0 = arith.constant 0 : i32
    %c0_i32_1 = arith.constant 0 : i32
    return %c0_i32, %c0_i32_0 : i32, i32
  }
  func.func @transform_10(%arg0: i32, %arg1: memref<1xi32, #tpu.memory_space<smem>>) -> (i32, i32) {
    %c0_i32 = arith.constant 0 : i32
    %c0_i32_0 = arith.constant 0 : i32
    %c0_i32_1 = arith.constant 0 : i32
    return %c0_i32, %c0_i32_0 : i32, i32
  }
  func.func @transform_11(%arg0: i32, %arg1: memref<1xi32, #tpu.memory_space<smem>>) -> (i32, i32) {
    %c0_i32 = arith.constant 0 : i32
    %c0_i32_0 = arith.constant 0 : i32
    %c0_i32_1 = arith.constant 0 : i32
    return %c0_i32, %c0_i32_0 : i32, i32
  }
  func.func @transform_12(%arg0: i32, %arg1: memref<1xi32, #tpu.memory_space<smem>>) -> (i32, i32) {
    %c0_i32 = arith.constant 0 : i32
    %c0_i32_0 = arith.constant 0 : i32
    %c0_i32_1 = arith.constant 0 : i32
    return %c0_i32, %c0_i32_0 : i32, i32
  }
}

module attributes {stable_mosaic.version = 11 : i64} {
  func.func @reward_kernel(%arg0: i32, %arg1: memref<1xi32, #tpu.memory_space<smem>>, %arg2: memref<128x128xbf16, #tpu.memory_space<vmem>>, %arg3: memref<128x512xbf16, #tpu.memory_space<vmem>>, %arg4: memref<2x128x128xbf16, #tpu.memory_space<vmem>>, %arg5: memref<1x128xf32, #tpu.memory_space<vmem>>, %arg6: memref<128x512xbf16, #tpu.memory_space<vmem>>, %arg7: memref<1x512xf32, #tpu.memory_space<vmem>>, %arg8: memref<512x256xbf16, #tpu.memory_space<vmem>>, %arg9: memref<1x256xf32, #tpu.memory_space<vmem>>, %arg10: memref<256x128xbf16, #tpu.memory_space<vmem>>, %arg11: memref<1x128xf32, #tpu.memory_space<vmem>>, %arg12: memref<1x128xf32, #tpu.memory_space<vmem>>, %arg13: memref<1x1xf32, #tpu.memory_space<smem>>, %arg14: memref<2x128xf32, #tpu.memory_space<vmem>>, %arg15: memref<1x512xf32, #tpu.memory_space<vmem>>, %arg16: memref<2x512xf32, #tpu.memory_space<vmem>>) attributes {dimension_semantics = [#tpu.dimension_semantics<arbitrary>], iteration_bounds = array<i64: 4>, scalar_prefetch = 1 : i64, scratch_operands = 2 : i64, tpu.core_type = #tpu.core_type<tc>, window_params = [{transform_indices = @transform_0, window_bounds = array<i64: 128, 128>}, {transform_indices = @transform_1, window_bounds = array<i64: 128, 512>}, {pipeline_mode = #tpu.pipeline_mode<synchronous>, transform_indices = @transform_2, window_bounds = array<i64: 2, 128, 128>}, {pipeline_mode = #tpu.pipeline_mode<synchronous>, transform_indices = @transform_3, window_bounds = array<i64: 1, 128>}, {pipeline_mode = #tpu.pipeline_mode<synchronous>, transform_indices = @transform_4, window_bounds = array<i64: 128, 512>}, {pipeline_mode = #tpu.pipeline_mode<synchronous>, transform_indices = @transform_5, window_bounds = array<i64: 1, 512>}, {pipeline_mode = #tpu.pipeline_mode<synchronous>, transform_indices = @transform_6, window_bounds = array<i64: 512, 256>}, {pipeline_mode = #tpu.pipeline_mode<synchronous>, transform_indices = @transform_7, window_bounds = array<i64: 1, 256>}, {pipeline_mode = #tpu.pipeline_mode<synchronous>, transform_indices = @transform_8, window_bounds = array<i64: 256, 128>}, {pipeline_mode = #tpu.pipeline_mode<synchronous>, transform_indices = @transform_9, window_bounds = array<i64: 1, 128>}, {pipeline_mode = #tpu.pipeline_mode<synchronous>, transform_indices = @transform_10, window_bounds = array<i64: 1, 128>}, {transform_indices = @transform_11, window_bounds = array<i64: 1, 1>}, {pipeline_mode = #tpu.pipeline_mode<synchronous>, transform_indices = @transform_12, window_bounds = array<i64: 2, 128>}]} {
    %c0_i32 = arith.constant 0 : i32
    %0 = arith.cmpi eq, %arg0, %c0_i32 : i32
    %1 = arith.extui %0 : i1 to i32
    %c0_i32_0 = arith.constant 0 : i32
    %2 = arith.cmpi ne, %1, %c0_i32_0 : i32
    scf.if %2 {
      %cst = arith.constant 0.000000e+00 : f32
      %10 = vector.broadcast %cst : f32 to vector<1x512xf32>
      %c0_3 = arith.constant 0 : index
      %c0_4 = arith.constant 0 : index
      %11 = vector.load %arg15[%c0_3, %c0_4] : memref<1x512xf32, #tpu.memory_space<vmem>>, vector<1x512xf32>
      tpu.vector_store %arg15[%c0_3, %c0_4], %10 {strides = array<i32>} : memref<1x512xf32, #tpu.memory_space<vmem>>, vector<1x512xf32>,
      %c0_5 = arith.constant 0 : index
      %c0_6 = arith.constant 0 : index
      %c0_7 = arith.constant 0 : index
      %12 = vector.load %arg4[%c0_5, %c0_6, %c0_7] : memref<2x128x128xbf16, #tpu.memory_space<vmem>>, vector<2x128x128xbf16>
      %13 = arith.extf %12 : vector<2x128x128xbf16> to vector<2x128x128xf32>
      %c0_8 = arith.constant 0 : index
      %c0_9 = arith.constant 0 : index
      %14 = vector.load %arg5[%c0_8, %c0_9] : memref<1x128xf32, #tpu.memory_space<vmem>>, vector<1x128xf32>
      %15 = vector.shape_cast %14 : vector<1x128xf32> to vector<1x1x128xf32>
      %16 = vector.broadcast %15 : vector<1x1x128xf32> to vector<2x128x128xf32>
      %17 = arith.mulf %13, %16 : vector<2x128x128xf32>
      %cst_10 = arith.constant dense<0.000000e+00> : vector<2x128xf32>
      %18 = vector.multi_reduction <add>, %17, %cst_10 [2] : vector<2x128x128xf32> to vector<2x128xf32>
      %19 = arith.truncf %18 : vector<2x128xf32> to vector<2x128xbf16>
      %c0_11 = arith.constant 0 : index
      %c0_12 = arith.constant 0 : index
      %20 = vector.load %arg6[%c0_11, %c0_12] : memref<128x512xbf16, #tpu.memory_space<vmem>>, vector<128x512xbf16>
      %cst_13 = arith.constant dense<0.000000e+00> : vector<2x512xf32>
      %21 = tpu.matmul %19, %20, %cst_13 {dimension_numbers = #tpu.dot_dimension_numbers<[1], [0], [0], [1], [0, 0, 1, 1], [], []>} : vector<2x128xbf16>, vector<128x512xbf16>, vector<2x512xf32> -> vector<2x512xf32>
      %c0_14 = arith.constant 0 : index
      %c0_15 = arith.constant 0 : index
      %22 = vector.load %arg7[%c0_14, %c0_15] : memref<1x512xf32, #tpu.memory_space<vmem>>, vector<1x512xf32>
      %23 = vector.broadcast %22 : vector<1x512xf32> to vector<2x512xf32>
      %24 = arith.addf %21, %23 : vector<2x512xf32>
      %c0_16 = arith.constant 0 : index
      %c0_17 = arith.constant 0 : index
      %25 = vector.load %arg16[%c0_16, %c0_17] : memref<2x512xf32, #tpu.memory_space<vmem>>, vector<2x512xf32>
      tpu.vector_store %arg16[%c0_16, %c0_17], %24 {strides = array<i32>} : memref<2x512xf32, #tpu.memory_space<vmem>>, vector<2x512xf32>,
    } else {
    }
    %c0 = arith.constant 0 : index
    %3 = memref.load %arg1[%c0] : memref<1xi32, #tpu.memory_space<smem>>
    %4 = arith.cmpi slt, %arg0, %3 : i32
    %5 = arith.extui %4 : i1 to i32
    %c0_i32_1 = arith.constant 0 : i32
    %6 = arith.cmpi ne, %5, %c0_i32_1 : i32
    scf.if %6 {
      %c0_3 = arith.constant 0 : index
      %c0_4 = arith.constant 0 : index
      %10 = vector.load %arg5[%c0_3, %c0_4] : memref<1x128xf32, #tpu.memory_space<vmem>>, vector<1x128xf32>
      %11 = arith.truncf %10 : vector<1x128xf32> to vector<1x128xbf16>
      %c0_5 = arith.constant 0 : index
      %c0_6 = arith.constant 0 : index
      %12 = vector.load %arg2[%c0_5, %c0_6] : memref<128x128xbf16, #tpu.memory_space<vmem>>, vector<128x128xbf16>
      %cst = arith.constant dense<0.000000e+00> : vector<1x128xf32>
      %13 = tpu.matmul %11, %12, %cst {dimension_numbers = #tpu.dot_dimension_numbers<[1], [1], [0], [0], [0, 0, 1, 0], [], []>} : vector<1x128xbf16>, vector<128x128xbf16>, vector<1x128xf32> -> vector<1x128xf32>
      %c0_7 = arith.constant 0 : index
      %c0_8 = arith.constant 0 : index
      %14 = vector.load %arg15[%c0_7, %c0_8] : memref<1x512xf32, #tpu.memory_space<vmem>>, vector<1x512xf32>
      %15 = arith.truncf %13 : vector<1x128xf32> to vector<1x128xbf16>
      %c0_9 = arith.constant 0 : index
      %c0_10 = arith.constant 0 : index
      %16 = vector.load %arg3[%c0_9, %c0_10] : memref<128x512xbf16, #tpu.memory_space<vmem>>, vector<128x512xbf16>
      %cst_11 = arith.constant dense<0.000000e+00> : vector<1x512xf32>
      %17 = tpu.matmul %15, %16, %cst_11 {dimension_numbers = #tpu.dot_dimension_numbers<[1], [0], [0], [1], [0, 0, 1, 1], [], []>} : vector<1x128xbf16>, vector<128x512xbf16>, vector<1x512xf32> -> vector<1x512xf32>
      %18 = arith.addf %14, %17 : vector<1x512xf32>
      %c0_12 = arith.constant 0 : index
      %c0_13 = arith.constant 0 : index
      %19 = vector.load %arg15[%c0_12, %c0_13] : memref<1x512xf32, #tpu.memory_space<vmem>>, vector<1x512xf32>
      tpu.vector_store %arg15[%c0_12, %c0_13], %18 {strides = array<i32>} : memref<1x512xf32, #tpu.memory_space<vmem>>, vector<1x512xf32>,
    } else {
    }
    %c3_i32 = arith.constant 3 : i32
    %7 = arith.cmpi eq, %arg0, %c3_i32 : i32
    %8 = arith.extui %7 : i1 to i32
    %c0_i32_2 = arith.constant 0 : i32
    %9 = arith.cmpi ne, %8, %c0_i32_2 : i32
    scf.if %9 {
      %c0_3 = arith.constant 0 : index
      %c0_4 = arith.constant 0 : index
      %10 = vector.load %arg16[%c0_3, %c0_4] : memref<2x512xf32, #tpu.memory_space<vmem>>, vector<2x512xf32>
      %c0_5 = arith.constant 0 : index
      %c0_6 = arith.constant 0 : index
      %11 = vector.load %arg15[%c0_5, %c0_6] : memref<1x512xf32, #tpu.memory_space<vmem>>, vector<1x512xf32>
      %12 = vector.broadcast %11 : vector<1x512xf32> to vector<2x512xf32>
      %13 = arith.addf %10, %12 : vector<2x512xf32>
      %cst = arith.constant 0.000000e+00 : f32
      %14 = vector.broadcast %cst : f32 to vector<2x512xf32>
      %15 = arith.maximumf %13, %14 : vector<2x512xf32>
      %16 = arith.truncf %15 : vector<2x512xf32> to vector<2x512xbf16>
      %c0_7 = arith.constant 0 : index
      %c0_8 = arith.constant 0 : index
      %17 = vector.load %arg8[%c0_7, %c0_8] : memref<512x256xbf16, #tpu.memory_space<vmem>>, vector<512x256xbf16>
      %cst_9 = arith.constant dense<0.000000e+00> : vector<2x256xf32>
      %18 = tpu.matmul %16, %17, %cst_9 {dimension_numbers = #tpu.dot_dimension_numbers<[1], [0], [0], [1], [0, 0, 1, 1], [], []>} : vector<2x512xbf16>, vector<512x256xbf16>, vector<2x256xf32> -> vector<2x256xf32>
      %c0_10 = arith.constant 0 : index
      %c0_11 = arith.constant 0 : index
      %19 = vector.load %arg9[%c0_10, %c0_11] : memref<1x256xf32, #tpu.memory_space<vmem>>, vector<1x256xf32>
      %20 = vector.broadcast %19 : vector<1x256xf32> to vector<2x256xf32>
      %21 = arith.addf %18, %20 : vector<2x256xf32>
      %cst_12 = arith.constant 0.000000e+00 : f32
      %22 = vector.broadcast %cst_12 : f32 to vector<2x256xf32>
      %23 = arith.maximumf %21, %22 : vector<2x256xf32>
      %24 = arith.truncf %23 : vector<2x256xf32> to vector<2x256xbf16>
      %c0_13 = arith.constant 0 : index
      %c0_14 = arith.constant 0 : index
      %25 = vector.load %arg10[%c0_13, %c0_14] : memref<256x128xbf16, #tpu.memory_space<vmem>>, vector<256x128xbf16>
      %cst_15 = arith.constant dense<0.000000e+00> : vector<2x128xf32>
      %26 = tpu.matmul %24, %25, %cst_15 {dimension_numbers = #tpu.dot_dimension_numbers<[1], [0], [0], [1], [0, 0, 1, 1], [], []>} : vector<2x256xbf16>, vector<256x128xbf16>, vector<2x128xf32> -> vector<2x128xf32>
      %c0_16 = arith.constant 0 : index
      %c0_17 = arith.constant 0 : index
      %27 = vector.load %arg11[%c0_16, %c0_17] : memref<1x128xf32, #tpu.memory_space<vmem>>, vector<1x128xf32>
      %28 = vector.broadcast %27 : vector<1x128xf32> to vector<2x128xf32>
      %29 = arith.addf %26, %28 : vector<2x128xf32>
      %cst_18 = arith.constant 0.000000e+00 : f32
      %30 = vector.broadcast %cst_18 : f32 to vector<2x128xf32>
      %31 = arith.maximumf %29, %30 : vector<2x128xf32>
      %c0_19 = arith.constant 0 : index
      %c0_20 = arith.constant 0 : index
      %32 = vector.load %arg12[%c0_19, %c0_20] : memref<1x128xf32, #tpu.memory_space<vmem>>, vector<1x128xf32>
      %33 = vector.broadcast %32 : vector<1x128xf32> to vector<2x128xf32>
      %34 = arith.mulf %31, %33 : vector<2x128xf32>
      %cst_21 = arith.constant dense<0.000000e+00> : vector<2xf32>
      %35 = vector.multi_reduction <add>, %34, %cst_21 [1] : vector<2x128xf32> to vector<2xf32>
      %36 = vector.shape_cast %35 : vector<2xf32> to vector<2x1xf32>
      %c0_22 = arith.constant 0 : index
      %c0_23 = arith.constant 0 : index
      %37 = memref.load %arg13[%c0_22, %c0_23] : memref<1x1xf32, #tpu.memory_space<smem>>
      %38 = vector.broadcast %37 : f32 to vector<2x1xf32>
      %39 = arith.addf %36, %38 : vector<2x1xf32>
      %40 = vector.shape_cast %39 : vector<2x1xf32> to vector<2x1xf32>
      %41 = vector.broadcast %40 : vector<2x1xf32> to vector<2x128xf32>
      %c0_24 = arith.constant 0 : index
      %c0_25 = arith.constant 0 : index
      %42 = vector.load %arg14[%c0_24, %c0_25] : memref<2x128xf32, #tpu.memory_space<vmem>>, vector<2x128xf32>
      tpu.vector_store %arg14[%c0_24, %c0_25], %41 {strides = array<i32>} : memref<2x128xf32, #tpu.memory_space<vmem>>, vector<2x128xf32>,
    } else {
    }
    return
  }
  func.func @transform_0(%arg0: i32, %arg1: memref<1xi32, #tpu.memory_space<smem>>) -> (i32, i32) {
    %c0 = arith.constant 0 : index
    %0 = memref.load %arg1[%c0] : memref<1xi32, #tpu.memory_space<smem>>
    %c1_i32 = arith.constant 1 : i32
    %1 = arith.subi %0, %c1_i32 : i32
    %2 = arith.minsi %arg0, %1 : i32
    %c0_i32 = arith.constant 0 : i32
    %c0_i32_0 = arith.constant 0 : i32
    return %2, %c0_i32 : i32, i32
  }
  func.func @transform_1(%arg0: i32, %arg1: memref<1xi32, #tpu.memory_space<smem>>) -> (i32, i32) {
    %c0 = arith.constant 0 : index
    %0 = memref.load %arg1[%c0] : memref<1xi32, #tpu.memory_space<smem>>
    %c1_i32 = arith.constant 1 : i32
    %1 = arith.subi %0, %c1_i32 : i32
    %2 = arith.minsi %arg0, %1 : i32
    %c0_i32 = arith.constant 0 : i32
    %c0_i32_0 = arith.constant 0 : i32
    return %2, %c0_i32 : i32, i32
  }
  func.func @transform_2(%arg0: i32, %arg1: memref<1xi32, #tpu.memory_space<smem>>) -> (i32, i32, i32) {
    %c0_i32 = arith.constant 0 : i32
    %c0_i32_0 = arith.constant 0 : i32
    %c0_i32_1 = arith.constant 0 : i32
    %c0_i32_2 = arith.constant 0 : i32
    return %c0_i32, %c0_i32_0, %c0_i32_1 : i32, i32, i32
  }
  func.func @transform_3(%arg0: i32, %arg1: memref<1xi32, #tpu.memory_space<smem>>) -> (i32, i32) {
    %c0_i32 = arith.constant 0 : i32
    %c0_i32_0 = arith.constant 0 : i32
    %c0_i32_1 = arith.constant 0 : i32
    return %c0_i32, %c0_i32_0 : i32, i32
  }
  func.func @transform_4(%arg0: i32, %arg1: memref<1xi32, #tpu.memory_space<smem>>) -> (i32, i32) {
    %c0_i32 = arith.constant 0 : i32
    %c0_i32_0 = arith.constant 0 : i32
    %c0_i32_1 = arith.constant 0 : i32
    return %c0_i32, %c0_i32_0 : i32, i32
  }
  func.func @transform_5(%arg0: i32, %arg1: memref<1xi32, #tpu.memory_space<smem>>) -> (i32, i32) {
    %c0_i32 = arith.constant 0 : i32
    %c0_i32_0 = arith.constant 0 : i32
    %c0_i32_1 = arith.constant 0 : i32
    return %c0_i32, %c0_i32_0 : i32, i32
  }
  func.func @transform_6(%arg0: i32, %arg1: memref<1xi32, #tpu.memory_space<smem>>) -> (i32, i32) {
    %c0_i32 = arith.constant 0 : i32
    %c0_i32_0 = arith.constant 0 : i32
    %c0_i32_1 = arith.constant 0 : i32
    return %c0_i32, %c0_i32_0 : i32, i32
  }
  func.func @transform_7(%arg0: i32, %arg1: memref<1xi32, #tpu.memory_space<smem>>) -> (i32, i32) {
    %c0_i32 = arith.constant 0 : i32
    %c0_i32_0 = arith.constant 0 : i32
    %c0_i32_1 = arith.constant 0 : i32
    return %c0_i32, %c0_i32_0 : i32, i32
  }
  func.func @transform_8(%arg0: i32, %arg1: memref<1xi32, #tpu.memory_space<smem>>) -> (i32, i32) {
    %c0_i32 = arith.constant 0 : i32
    %c0_i32_0 = arith.constant 0 : i32
    %c0_i32_1 = arith.constant 0 : i32
    return %c0_i32, %c0_i32_0 : i32, i32
  }
  func.func @transform_9(%arg0: i32, %arg1: memref<1xi32, #tpu.memory_space<smem>>) -> (i32, i32) {
    %c0_i32 = arith.constant 0 : i32
    %c0_i32_0 = arith.constant 0 : i32
    %c0_i32_1 = arith.constant 0 : i32
    return %c0_i32, %c0_i32_0 : i32, i32
  }
  func.func @transform_10(%arg0: i32, %arg1: memref<1xi32, #tpu.memory_space<smem>>) -> (i32, i32) {
    %c0_i32 = arith.constant 0 : i32
    %c0_i32_0 = arith.constant 0 : i32
    %c0_i32_1 = arith.constant 0 : i32
    return %c0_i32, %c0_i32_0 : i32, i32
  }
  func.func @transform_11(%arg0: i32, %arg1: memref<1xi32, #tpu.memory_space<smem>>) -> (i32, i32) {
    %c0_i32 = arith.constant 0 : i32
    %c0_i32_0 = arith.constant 0 : i32
    %c0_i32_1 = arith.constant 0 : i32
    return %c0_i32, %c0_i32_0 : i32, i32
  }
  func.func @transform_12(%arg0: i32, %arg1: memref<1xi32, #tpu.memory_space<smem>>) -> (i32, i32) {
    %c0_i32 = arith.constant 0 : i32
    %c0_i32_0 = arith.constant 0 : i32
    %c0_i32_1 = arith.constant 0 : i32
    return %c0_i32, %c0_i32_0 : i32, i32
  }
}

</mosaic_0001>

<bundles_post_ra>
// kernel: reward_pallas.1
= control target key start
LH: loop header
LB: loop body
LE: loop exit
PB: predicated region body
PF: predicated region fallthrough
CT: control target
= control target key end

     0   :  { %s3142_s29 = smov 0   ;;  %s4049_s0 = inlined_call_operand.<no memory space> [shape: s32[1], index: 0, kind: input, shape index: {}]   ;;  %s4050_s1 = inlined_call_operand.vmem [shape: bf16[512,128], index: 1, kind: input, shape index: {}]   ;;  %s4051_s2 = inlined_call_operand.vmem [shape: bf16[512,512], index: 2, kind: input, shape index: {}]   ;;  %s4052_s3 = inlined_call_operand.vmem [shape: bf16[2,128,128], index: 3, kind: input, shape index: {}]   ;;  %s4053_s4 = inlined_call_operand.vmem [shape: f32[1,128], index: 4, kind: input, shape index: {}]   ;;  %s4054_s5 = inlined_call_operand.vmem [shape: bf16[128,512], index: 5, kind: input, shape index: {}]   ;;  %s4055_s6 = inlined_call_operand.vmem [shape: f32[1,512], index: 6, kind: input, shape index: {}]   ;;  %s4056_s7 = inlined_call_operand.vmem [shape: bf16[512,256], index: 7, kind: input, shape index: {}]   ;;  %s4057_s8 = inlined_call_operand.vmem [shape: f32[1,256], index: 8, kind: input, shape index: {}]   ;;  %s4058_s9 = inlined_call_operand.vmem [shape: bf16[256,128], index: 9, kind: input, shape index: {}]   ;;  %s4059_s10 = inlined_call_operand.vmem [shape: f32[1,128], index: 10, kind: input, shape index: {}]   ;;  %s4060_s11 = inlined_call_operand.vmem [shape: f32[1,128], index: 11, kind: input, shape index: {}]   ;;  %s4061_s12 = inlined_call_operand.<no memory space> [shape: f32[1,1], index: 12, kind: input, shape index: {}]   ;;  %s4062_s13 = inlined_call_operand.vmem [shape: f32[2,128], index: 13, kind: output, shape index: {}]  }
   0x1   :  { %18 = sst [smem:[#allocation5]] %s4049_s0 }
   0x2   :  { %19 = sst [smem:[#allocation6]] %s4061_s12 }
   0x3 LB: > { %s3148_s30 = sadd.s32 4294967295, %s3063_s29   ;;  %p2192_p0 = scmp.ge.s32.totalorder %s3063_s29, 1  ;;  %s3063_s29 = sphi %s3142_s29, %s25_s29  }
   0x4   : > { %p405_p1 = scmp.lt.s32.totalorder %s3063_s29, 5 }
   0x6   : > { %p406_p2 = pnand %p2192_p0, %p405_p1 }
   0x7   : > { %s456_s0 = sld [smem:[#allocation5]] (!%p406_p2)  ;;  %p2200_p5 = scmp.ne.s32.totalorder (!%p406_p2), %s3148_s30, 0 }
   0x8   : > { %409 = sbr.rel (%p406_p2) target bundleno = 1201 (0x4b1), region = 68 }
   0xd   : > { %s2193_s12 = sadd.s32 4294967295, %s456_s0 }
   0xe   : > { %p458_p3 = scmp.lt.s32.totalorder %s3148_s30, %s2193_s12 }
  0x10   : > { %s459_s14 = scalar_select %p458_p3, %s3148_s30, %s2193_s12 }
  0x12   : > { %s2194_s15 = sshll.u32 %s459_s14, 4 }
  0x13   : > { %p461_p4 = scmp.lt.s32.totalorder %s2194_s15, 63  ;;  %488 = sbr.rel (%p2200_p5) target bundleno = 379 (0x17b), region = 72 }
  0x15   : > { %s4064_s15 = smov (!%p461_p4, %s2194_s15), 63 }
  0x16   : > { %s2195_s16 = sshll.u32 %s4064_s15, 2  ;;  %s2813_s17 = sshll.u32 %s4064_s15, 4 }
  0x17   : > { %s3157_s20 = scalar_lea.vmem %s4050_s1, %s2195_s16  ;;  %s3162_s23 = scalar_lea.vmem %s4051_s2, %s2813_s17 }
  0x18   : > { %v3037_v0 = vld [vmem:[%s4052_s3 + $0x40] sm:$0xff]   ;;  %v3030_v3 = vld [vmem:[%s4052_s3 + $0x8] sm:$0xff]   ;;  %v3031_v17 = vld [vmem:[%s4052_s3 + $0x10] sm:$0xff]   ;;  %vm769_vm1 = vcmask 130112   ;;  %vm773_vm2 = vcmask 195712   ;;  %vm777_vm3 = vcmask 261312  }
  0x19   : > { %v3171_v1 = vld [vmem:[%s4053_s4] ss:$0 sm:$0xff]  ;;  %v3000_v2 = vunpack.c.l.bf16 %v3037_v0  ;;  %v2972_v5 = vunpack.c.l.bf16 %v3030_v3  ;;  %v3001_v10 = vunpack.c.h.bf16 %v3037_v0  ;;  %v2973_v11 = vunpack.c.h.bf16 %v3030_v3  ;;  %v3038_v16 = vld [vmem:[%s4052_s3 + $0x48] sm:$0xff]   ;;  %v3039_v24 = vld [vmem:[%s4052_s3 + $0x50] sm:$0xff]  }
  0x1a   : > { %v2967_v4 = vld [vmem:[%s4052_s3] sm:$0xff]   ;;  %v3005_v18 = vunpack.c.h.bf16 %v3038_v16  ;;  %v2976_v19 = vunpack.c.l.bf16 %v3031_v17  ;;  %v3004_v20 = vunpack.c.l.bf16 %v3038_v16  ;;  %v3008_v25 = vunpack.c.l.bf16 %v3039_v24  ;;  %v3032_v31 = vld [vmem:[%s4052_s3 + $0x18] sm:$0xff]   ;;  %v3034_v47 = vld [vmem:[%s4052_s3 + $0x28] sm:$0xff]  }
  0x1b   : > { %v2968_v6 = vunpack.c.l.bf16 %v2967_v4  ;;  %v578_v7 = vmul.f32 %v3171_v1, %v3000_v2  ;;  %v564_v8 = vmul.f32 %v3171_v1, %v2972_v5  ;;  %v2969_v12 = vunpack.c.h.bf16 %v2967_v4  ;;  %v3040_v32 = vld [vmem:[%s4052_s3 + $0x58] sm:$0xff]   ;;  %v3033_v39 = vld [vmem:[%s4052_s3 + $0x20] sm:$0xff]   ;;  %v3042_v54 = vld [vmem:[%s4052_s3 + $0x68] sm:$0xff]  }
  0x1c   : > { %v579_v13 = vmul.f32 %v3171_v1, %v3001_v10  ;;  %v565_v14 = vmul.f32 %v3171_v1, %v2973_v11  ;;  %v581_v21 = vmul.f32 %v3171_v1, %v3005_v18  ;;  %v566_v22 = vmul.f32 %v3171_v1, %v2976_v19  ;;  %v3041_v46 = vld [vmem:[%s4052_s3 + $0x60] sm:$0xff]   ;;  %v3035_v61 = vld [vmem:[%s4052_s3 + $0x30] sm:$0xff]  }
  0x1d   : > { %v562_v9 = vmul.f32 %v3171_v1, %v2968_v6  ;;  %626 = vadd.xlane.f32.xlu1 %v578_v7  ;;  %598 = vadd.xlane.f32.xlu2 %v564_v8  ;;  %v563_v15 = vmul.f32 %v3171_v1, %v2969_v12  ;;  %v580_v23 = vmul.f32 %v3171_v1, %v3004_v20  ;;  %v3009_v26 = vunpack.c.h.bf16 %v3039_v24  ;;  %v3043_v62 = vld [vmem:[%s4052_s3 + $0x70] sm:$0xff]   ;;  %v3036_v6 = vld [vmem:[%s4052_s3 + $0x38] sm:$0xff]  }
  0x1e   : > { %v2977_v27 = vunpack.c.h.bf16 %v3031_v17  ;;  %v582_v28 = vmul.f32 %v3171_v1, %v3008_v25  ;;  %v2981_v33 = vunpack.c.h.bf16 %v3032_v31  ;;  %v3012_v34 = vunpack.c.l.bf16 %v3040_v32 }
  0x1f   : > { %594 = vadd.xlane.f32.xlu0 %v562_v9  ;;  %v583_v29 = vmul.f32 %v3171_v1, %v3009_v26  ;;  %v2980_v35 = vunpack.c.l.bf16 %v3032_v31  ;;  %v2984_v40 = vunpack.c.l.bf16 %v3033_v39  ;;  %v2985_v41 = vunpack.c.h.bf16 %v3033_v39 }
  0x20   : > { %v567_v30 = vmul.f32 %v3171_v1, %v2977_v27  ;;  %v569_v36 = vmul.f32 %v3171_v1, %v2981_v33  ;;  %v584_v37 = vmul.f32 %v3171_v1, %v3012_v34  ;;  %v3013_v42 = vunpack.c.h.bf16 %v3040_v32 }
  0x21   : > { %v568_v38 = vmul.f32 %v3171_v1, %v2980_v35  ;;  %v570_v43 = vmul.f32 %v3171_v1, %v2984_v40  ;;  %v571_v44 = vmul.f32 %v3171_v1, %v2985_v41  ;;  %v3017_v48 = vunpack.c.h.bf16 %v3041_v46 }
  0x22   : > { %v585_v45 = vmul.f32 %v3171_v1, %v3013_v42  ;;  %v2988_v49 = vunpack.c.l.bf16 %v3034_v47  ;;  %v3016_v50 = vunpack.c.l.bf16 %v3041_v46  ;;  %v3020_v55 = vunpack.c.l.bf16 %v3042_v54 }
  0x23   : > { %v587_v51 = vmul.f32 %v3171_v1, %v3017_v48  ;;  %v3021_v56 = vunpack.c.h.bf16 %v3042_v54  ;;  %v2989_v57 = vunpack.c.h.bf16 %v3034_v47  ;;  %v2993_v63 = vunpack.c.h.bf16 %v3035_v61 }
  0x24   : > { %v572_v52 = vmul.f32 %v3171_v1, %v2988_v49  ;;  %v586_v53 = vmul.f32 %v3171_v1, %v3016_v50  ;;  %v588_v58 = vmul.f32 %v3171_v1, %v3020_v55  ;;  %v3024_v0 = vunpack.c.l.bf16 %v3043_v62 }
  0x25   : > { %628 = vadd.xlane.f32.xlu1 %v579_v13  ;;  %600 = vadd.xlane.f32.xlu2 %v565_v14  ;;  %v589_v59 = vmul.f32 %v3171_v1, %v3021_v56  ;;  %v573_v60 = vmul.f32 %v3171_v1, %v2989_v57  ;;  %v2992_v2 = vunpack.c.l.bf16 %v3035_v61  ;;  %v575_v3 = vmul.f32 %v3171_v1, %v2993_v63  ;;  %v3044_v13 = vld [vmem:[%s4052_s3 + $0x78] sm:$0xff]  }
  0x26   : > { %v590_v4 = vmul.f32 %v3171_v1, %v3024_v0  ;;  %v2996_v7 = vunpack.c.l.bf16 %v3036_v6  ;;  %v2997_v8 = vunpack.c.h.bf16 %v3036_v6  ;;  %v3025_v9 = vunpack.c.h.bf16 %v3043_v62 }
  0x27   : > { %596 = vadd.xlane.f32.xlu0 %v563_v15  ;;  %v574_v5 = vmul.f32 %v3171_v1, %v2992_v2  ;;  %v3029_v14 = vunpack.c.h.bf16 %v3044_v13  ;;  %v3028_v15 = vunpack.c.l.bf16 %v3044_v13  ;;  %v489_v18 = vlaneseq  ;;  %v2315_v2 = vld [vmem:[%s4054_s5 + $0xe0] sm:$0xf] }
  0x28   : > { %v576_v10 = vmul.f32 %v3171_v1, %v2996_v7  ;;  %v577_v11 = vmul.f32 %v3171_v1, %v2997_v8  ;;  %v591_v12 = vmul.f32 %v3171_v1, %v3025_v9  ;;  %v3065_v19 = vmov 0.0   ;;  %v2317_v9 = vld [vmem:[%s4054_s5 + $0xf0] sm:$0xf0] }
  0x29   : > { %v593_v16 = vmul.f32 %v3171_v1, %v3029_v14  ;;  %v592_v17 = vmul.f32 %v3171_v1, %v3028_v15  ;;  %vm491_vm0 = vcmp.lt.s32.totalorder %v489_v18, 512  ;;  %vm781_vm4 = vcmask 326912   ;;  %v2843_v14 = vld [vmem:[%s4054_s5 + $0xec] sm:$0xf]  ;;  %v2325_v15 = vld [vmem:[%s4054_s5 + $0xf8] sm:$0xf0] }
  0x2a   : > { %493 = vst.msk [vmem:[#allocation2] sm:$0xf] %vm491_vm0, %v3065_v19  ;;  %vm785_vm5 = vcmask 392512   ;;  %vm789_vm6 = vcmask 458112   ;;  %vm793_vm7 = vcmask 523712   ;;  %vm797_vm8 = vcmask 589312  }
  0x2b   : > { %vm801_vm9 = vcmask 654912   ;;  %vm805_vm10 = vcmask 720512   ;;  %vm809_vm11 = vcmask 786112   ;;  %vm813_vm12 = vcmask 851712  }
  0x2c   : > { %vm817_vm13 = vcmask 917312   ;;  %vm821_vm14 = vcmask 982912   ;;  %vm825_vm15 = vcmask 1048512   ;;  %vm858_vm0 = vcmask 1041409  }
  0x2d   : > { %632 = vadd.xlane.f32.xlu1 %v581_v21  ;;  %602 = vadd.xlane.f32.xlu2 %v566_v22 }
  0x2f   : > { %630 = vadd.xlane.f32.xlu0 %v580_v23  ;;  %v3250_v23 = vand.u32 127, %v489_v18 }
  0x31   : > { %v767_v26 = vadd.s32 4294967288, %v3250_v23  ;;  %v771_v1 = vadd.s32 4294967280, %v3250_v23  ;;  %v775_v33 = vadd.s32 4294967272, %v3250_v23  ;;  %v779_v62 = vadd.s32 4294967264, %v3250_v23 }
  0x32   : > { %v783_v63 = vadd.s32 4294967256, %v3250_v23 }
  0x35   : > { %634 = vadd.xlane.f32.xlu1 %v582_v28  ;;  %636 = vadd.xlane.f32.xlu2 %v583_v29 }
  0x37   : > { %604 = vadd.xlane.f32.xlu0 %v567_v30 }
  0x3d   : > { %608 = vadd.xlane.f32.xlu1 %v569_v36  ;;  %638 = vadd.xlane.f32.xlu2 %v584_v37 }
  0x3f   : > { %606 = vadd.xlane.f32.xlu0 %v568_v38 }
  0x45   : > { %610 = vadd.xlane.f32.xlu1 %v570_v43  ;;  %612 = vadd.xlane.f32.xlu2 %v571_v44 }
  0x47   : > { %640 = vadd.xlane.f32.xlu0 %v585_v45 }
  0x4d   : > { %644 = vadd.xlane.f32.xlu1 %v587_v51  ;;  %614 = vadd.xlane.f32.xlu2 %v572_v52 }
  0x4f   : > { %642 = vadd.xlane.f32.xlu0 %v586_v53 }
  0x55   : > { %646 = vadd.xlane.f32.xlu1 %v588_v58  ;;  %648 = vadd.xlane.f32.xlu2 %v589_v59 }
  0x57   : > { %616 = vadd.xlane.f32.xlu0 %v573_v60 }
  0x5d   : > { %620 = vadd.xlane.f32.xlu1 %v575_v3  ;;  %650 = vadd.xlane.f32.xlu2 %v590_v4  ;;  %v2844_v3 = vld [vmem:[%s4054_s5 + $0xec] sm:$0xf0]  ;;  %v2842_v4 = vld [vmem:[%s4054_s5 + $0xe4] sm:$0xf] }
  0x5e   : > { %v2320_v13 = vor.u32 %v2842_v4, %v2317_v9  ;;  %v2275_v4 = vld [vmem:[%s4054_s5 + $0x88] sm:$0xf]  ;;  %v3373_v9 = vadd.s32 4294967224, %v3250_v23 }
  0x5f   : > { %618 = vadd.xlane.f32.xlu0 %v574_v5 }
  0x60   : > { %1035 = vmatpush.bf16.msra.mxu1 %v2320_v13  ;;  %v2277_v13 = vld [vmem:[%s4054_s5 + $0x98] sm:$0xf0] }
  0x65   : > { %622 = vadd.xlane.f32.xlu1 %v576_v10  ;;  %624 = vadd.xlane.f32.xlu2 %v577_v11  ;;  %v2323_v10 = vld [vmem:[%s4054_s5 + $0xe8] sm:$0xf]  ;;  %v2845_v11 = vld [vmem:[%s4054_s5 + $0xf4] sm:$0xf0] }
  0x67   : > { %652 = vadd.xlane.f32.xlu0 %v591_v12  ;;  %v2316_v12 = vor.u32 %v2844_v3, %v2315_v2  ;;  %v2269_v3 = vld [vmem:[%s4054_s5 + $0x90] sm:$0xf0] }
  0x69   : > { %1022 = vmatpush.bf16.msra.mxu0 %v2316_v12  ;;  %v2831_v12 = vld [vmem:[%s4054_s5 + $0x8c] sm:$0xf] }
  0x6d   : > { %656 = vadd.xlane.f32.xlu1 %v593_v16 }
  0x6f   : > { %654 = vadd.xlane.f32.xlu0 %v592_v17 }
  0x90   : > { %v627_v20 = vpop.xlane.xlu1 %626  ;;  %v599_v21 = vpop.xlane.xlu2 %598 }
  0x92   : > { %v595_v22 = vpop.xlane.xlu0 %594 }
  0x98   : > { %v629_v24 = vpop.xlane.xlu1 %628  ;;  %v601_v27 = vpop.xlane.xlu2 %600 }
  0x99   : > { %v666_v25 = vpack.c.bf16 %v629_v24, %v627_v20  ;;  %v659_v29 = vpack.c.bf16 %v601_v27, %v599_v21  ;;  %v2324_v20 = vor.u32 %v2845_v11, %v2323_v10  ;;  %v2328_v21 = vor.u32 %v2843_v14, %v2325_v15  ;;  %v2840_v24 = vld [vmem:[%s4054_s5 + $0xcc] sm:$0xf0] }
  0x9a   : > { %v597_v28 = vpop.xlane.xlu0 %596 }
  0x9b   : > { %v658_v30 = vpack.c.bf16 %v597_v28, %v595_v22  ;;  %v748_v31 = vunpack.c.l.b16 %v666_v25  ;;  %v749_v32 = vunpack.c.h.b16 %v666_v25  ;;  %v734_v34 = vunpack.c.l.b16 %v659_v29  ;;  %v2299_v22 = vld [vmem:[%s4054_s5 + $0xc0] sm:$0xf]  ;;  %v2838_v25 = vld [vmem:[%s4054_s5 + $0xc4] sm:$0xf]  ;;  %1048 = vmatpush.bf16.msra.mxu2 %v2324_v20  ;;  %1061 = vmatpush.bf16.msra.mxu3 %v2328_v21 }
  0x9c   : > { %v735_v35 = vunpack.c.h.b16 %v659_v29  ;;  %v2300_v29 = vor.u32 %v2840_v24, %v2299_v22  ;;  %v2826_v20 = vld [vmem:[%s4054_s5 + $0x64] sm:$0xf] }
  0x9d   : > { %v732_v36 = vunpack.c.l.b16 %v658_v30  ;;  %v733_v37 = vunpack.c.h.b16 %v658_v30  ;;  %v827_v38 = vperm.slane %v748_v31, %v3250_v23  ;;  %v828_v39 = vperm.slane %v749_v32, %v767_v26  ;;  %v2307_v30 = vld [vmem:[%s4054_s5 + $0xc8] sm:$0xf]  ;;  %v2841_v31 = vld [vmem:[%s4054_s5 + $0xd4] sm:$0xf0] }
  0x9e   : > { %v772_v40 = vperm.slane %v734_v34, %v771_v1  ;;  %v776_v44 = vperm.slane %v735_v35, %v775_v33  ;;  %1023 = vmatpush.bf16.msra.mxu0 %v2300_v29 }
  0x9f   : > { %v766_v41 = vperm.slane %v732_v36, %v3250_v23  ;;  %v768_v42 = vperm.slane %v733_v37, %v767_v26  ;;  %v829_v43 = vsel %vm769_vm1, %v828_v39, %v827_v38  ;;  %v3312_v36 = vadd.s32 4294967248, %v3250_v23  ;;  %v2839_v38 = vld [vmem:[%s4054_s5 + $0xcc] sm:$0xf]  ;;  %v2309_v39 = vld [vmem:[%s4054_s5 + $0xd8] sm:$0xf0] }
  0xa0   : > { %v633_v46 = vpop.xlane.xlu1 %632  ;;  %v603_v48 = vpop.xlane.xlu2 %602  ;;  %v3315_v37 = vadd.s32 4294967240, %v3250_v23 }
  0xa1   : > { %v770_v45 = vsel %vm769_vm1, %v768_v42, %v766_v41  ;;  %v2308_v42 = vor.u32 %v2841_v31, %v2307_v30  ;;  %v2827_v30 = vld [vmem:[%s4054_s5 + $0x6c] sm:$0xf]  ;;  %v2261_v31 = vld [vmem:[%s4054_s5 + $0x78] sm:$0xf0]  ;;  %vm1081_vm1 = vcmask 1041408  }
  0xa2   : > { %v774_v47 = vsel %vm773_vm2, %v772_v40, %v770_v45  ;;  %v631_v49 = vpop.xlane.xlu0 %630  ;;  %v2836_v45 = vld [vmem:[%s4054_s5 + $0xac] sm:$0xf0] }
  0xa3   : > { %v667_v50 = vpack.c.bf16 %v633_v46, %v631_v49  ;;  %v778_v51 = vsel %vm777_vm3, %v776_v44, %v774_v47  ;;  %v2283_v44 = vld [vmem:[%s4054_s5 + $0xa0] sm:$0xf]  ;;  %v2834_v46 = vld [vmem:[%s4054_s5 + $0xa4] sm:$0xf]  ;;  %v2285_v49 = vld [vmem:[%s4054_s5 + $0xb0] sm:$0xf0]  ;;  %1049 = vmatpush.bf16.msra.mxu2 %v2308_v42 }
  0xa4   : > { %v2824_v42 = vld [vmem:[%s4054_s5 + $0x4c] sm:$0xf0] }
  0xa5   : > { %v750_v52 = vunpack.c.l.b16 %v667_v50  ;;  %v751_v53 = vunpack.c.h.b16 %v667_v50  ;;  %v2291_v50 = vld [vmem:[%s4054_s5 + $0xa8] sm:$0xf] }
  0xa7   : > { %v830_v54 = vperm.slane %v750_v52, %v771_v1  ;;  %v832_v55 = vperm.slane %v751_v53, %v775_v33  ;;  %v2301_v1 = vld [vmem:[%s4054_s5 + $0xd0] sm:$0xf0]  ;;  %v2288_v52 = vor.u32 %v2834_v46, %v2285_v49  ;;  %v2837_v53 = vld [vmem:[%s4054_s5 + $0xb4] sm:$0xf0] }
  0xa8   : > { %v635_v57 = vpop.xlane.xlu1 %634  ;;  %v637_v59 = vpop.xlane.xlu2 %636  ;;  %v2304_v41 = vor.u32 %v2838_v25, %v2301_v1  ;;  %v2237_v46 = vld [vmem:[%s4054_s5 + $0x50] sm:$0xf0] }
  0xa9   : > { %v831_v56 = vsel %vm773_vm2, %v830_v54, %v829_v43  ;;  %v668_v61 = vpack.c.bf16 %v637_v59, %v635_v57  ;;  %v2312_v43 = vor.u32 %v2839_v38, %v2309_v39  ;;  %v2835_v54 = vld [vmem:[%s4054_s5 + $0xac] sm:$0xf]  ;;  %vm1083_vm2 = vcmask 1045508  }
  0xaa   : > { %v833_v58 = vsel %vm777_vm3, %v832_v55, %v831_v56  ;;  %v605_v60 = vpop.xlane.xlu0 %604  ;;  %1036 = vmatpush.bf16.msra.mxu1 %v2304_v41  ;;  %v2293_v55 = vld [vmem:[%s4054_s5 + $0xb8] sm:$0xf0]  ;;  %v2235_v41 = vld [vmem:[%s4054_s5 + $0x40] sm:$0xf]  ;;  %vm1085_vm3 = vcmask 1043456  }
  0xab   : > { %v660_v0 = vpack.c.bf16 %v605_v60, %v603_v48  ;;  %v752_v5 = vunpack.c.l.b16 %v668_v61  ;;  %v753_v6 = vunpack.c.h.b16 %v668_v61  ;;  %1062 = vmatpush.bf16.msra.mxu3 %v2312_v43  ;;  %v2296_v59 = vor.u32 %v2835_v54, %v2293_v55  ;;  %v2267_v60 = vld [vmem:[%s4054_s5 + $0x80] sm:$0xf]  ;;  %v2832_v61 = vld [vmem:[%s4054_s5 + $0x8c] sm:$0xf0]  ;;  %v2822_v43 = vld [vmem:[%s4054_s5 + $0x44] sm:$0xf] }
  0xac   : > { %v2268_v2 = vor.u32 %v2832_v61, %v2267_v60  ;;  %v2245_v54 = vld [vmem:[%s4054_s5 + $0x58] sm:$0xf0]  ;;  %v2818_v60 = vld [vmem:[%s4054_s5 + $0x24] sm:$0xf] }
  0xad   : > { %v736_v7 = vunpack.c.l.b16 %v660_v0  ;;  %v737_v8 = vunpack.c.h.b16 %v660_v0  ;;  %v834_v16 = vperm.slane %v752_v5, %v779_v62  ;;  %v836_v17 = vperm.slane %v753_v6, %v783_v63  ;;  %v2833_v5 = vld [vmem:[%s4054_s5 + $0x94] sm:$0xf0] }
  0xae   : > { %1037 = vmatpush.bf16.msra.mxu1 %v2288_v52  ;;  %v2240_v52 = vor.u32 %v2822_v43, %v2237_v46 }
  0xaf   : > { %v780_v18 = vperm.slane %v736_v7, %v779_v62  ;;  %v784_v19 = vperm.slane %v737_v8, %v783_v63  ;;  %v835_v26 = vsel %vm781_vm4, %v834_v16, %v833_v58  ;;  %v2292_v58 = vor.u32 %v2837_v53, %v2291_v50  ;;  %v2830_v62 = vld [vmem:[%s4054_s5 + $0x84] sm:$0xf]  ;;  %1063 = vmatpush.bf16.msra.mxu3 %v2296_v59  ;;  %v2823_v53 = vld [vmem:[%s4054_s5 + $0x4c] sm:$0xf]  ;;  %v2820_v59 = vld [vmem:[%s4054_s5 + $0x2c] sm:$0xf0] }
  0xb0   : > { %v609_v28 = vpop.xlane.xlu1 %608  ;;  %v3308_v32 = vsel %vm785_vm5, %v836_v17, %v835_v26  ;;  %v639_v34 = vpop.xlane.xlu2 %638  ;;  %v3370_v8 = vadd.s32 4294967232, %v3250_v23  ;;  %v2272_v11 = vor.u32 %v2830_v62, %v2269_v3  ;;  %v2276_v16 = vor.u32 %v2833_v5, %v2275_v4  ;;  %v2253_v26 = vld [vmem:[%s4054_s5 + $0x70] sm:$0xf0]  ;;  %v2821_v3 = vld [vmem:[%s4054_s5 + $0x34] sm:$0xf0] }
  0xb1   : > { %v782_v27 = vsel %vm781_vm4, %v780_v18, %v778_v51  ;;  %v2284_v51 = vor.u32 %v2836_v45, %v2283_v44  ;;  %1050 = vmatpush.bf16.msra.mxu2 %v2292_v58  ;;  %v2280_v17 = vor.u32 %v2831_v12, %v2277_v13  ;;  %v2251_v18 = vld [vmem:[%s4054_s5 + $0x60] sm:$0xf]  ;;  %v2256_v1 = vor.u32 %v2826_v20, %v2253_v26 }
  0xb2   : > { %v786_v33 = vsel %vm785_vm5, %v784_v19, %v782_v27  ;;  %v607_v35 = vpop.xlane.xlu0 %606  ;;  %v2828_v19 = vld [vmem:[%s4054_s5 + $0x6c] sm:$0xf0]  ;;  %1038 = vmatpush.bf16.msra.mxu1 %v2272_v11  ;;  %v2259_v27 = vld [vmem:[%s4054_s5 + $0x68] sm:$0xf]  ;;  %v2236_v45 = vor.u32 %v2824_v42, %v2235_v41  ;;  %v2219_v58 = vld [vmem:[%s4054_s5 + $0x20] sm:$0xf] }
  0xb3   : > { %v661_v40 = vpack.c.bf16 %v609_v28, %v607_v35  ;;  %1024 = vmatpush.bf16.msra.mxu0 %v2284_v51  ;;  %v2829_v28 = vld [vmem:[%s4054_s5 + $0x74] sm:$0xf0]  ;;  %1064 = vmatpush.bf16.msra.mxu3 %v2280_v17  ;;  %v2252_v29 = vor.u32 %v2828_v19, %v2251_v18  ;;  %v2203_v13 = vld [vmem:[%s4054_s5] sm:$0xf]  ;;  %v2211_v18 = vld [vmem:[%s4054_s5 + $0x8] sm:$0xf] }
  0xb4   : > { %v2260_v39 = vor.u32 %v2829_v28, %v2259_v27  ;;  %v2817_v19 = vld [vmem:[%s4054_s5 + $0x14] sm:$0xf0]  ;;  %v2815_v27 = vld [vmem:[%s4054_s5 + $0xc] sm:$0xf]  ;;  %v2213_v28 = vld [vmem:[%s4054_s5 + $0x18] sm:$0xf0] }
  0xb5   : > { %v738_v47 = vunpack.c.l.b16 %v661_v40  ;;  %v739_v48 = vunpack.c.h.b16 %v661_v40  ;;  %1051 = vmatpush.bf16.msra.mxu2 %v2276_v16  ;;  %v2264_v40 = vor.u32 %v2827_v30, %v2261_v31  ;;  %v2212_v26 = vor.u32 %v2817_v19, %v2211_v18 }
  0xb6   : > { %1039 = vmatpush.bf16.msra.mxu1 %v2256_v1  ;;  %v807_v1 = vadd.s32 4294967208, %v3250_v23  ;;  %v2216_v31 = vor.u32 %v2815_v27, %v2213_v28 }
  0xb7   : > { %v788_v56 = vperm.slane %v738_v47, %v3312_v36  ;;  %v792_v57 = vperm.slane %v739_v48, %v3315_v37  ;;  %1025 = vmatpush.bf16.msra.mxu0 %v2268_v2  ;;  %v2243_v47 = vld [vmem:[%s4054_s5 + $0x48] sm:$0xf]  ;;  %v2825_v48 = vld [vmem:[%s4054_s5 + $0x54] sm:$0xf0]  ;;  %1065 = vmatpush.bf16.msra.mxu3 %v2264_v40 }
  0xb8   : > { %v611_v0 = vpop.xlane.xlu1 %610  ;;  %v613_v7 = vpop.xlane.xlu2 %612  ;;  %v2227_v2 = vld [vmem:[%s4054_s5 + $0x28] sm:$0xf] }
  0xb9   : > { %v790_v63 = vsel %vm789_vm6, %v788_v56, %v786_v33  ;;  %v662_v14 = vpack.c.bf16 %v613_v7, %v611_v0  ;;  %1052 = vmatpush.bf16.msra.mxu2 %v2260_v39  ;;  %v2244_v56 = vor.u32 %v2825_v48, %v2243_v47  ;;  %v2221_v0 = vld [vmem:[%s4054_s5 + $0x30] sm:$0xf0]  ;;  %v2228_v5 = vor.u32 %v2821_v3, %v2227_v2  ;;  %v2229_v7 = vld [vmem:[%s4054_s5 + $0x38] sm:$0xf0] }
  0xba   : > { %v794_v6 = vsel %vm793_vm7, %v792_v57, %v790_v63  ;;  %v641_v10 = vpop.xlane.xlu0 %640  ;;  %v2248_v57 = vor.u32 %v2823_v53, %v2245_v54  ;;  %1040 = vmatpush.bf16.msra.mxu1 %v2240_v52  ;;  %v2220_v63 = vor.u32 %v2820_v59, %v2219_v58  ;;  %v2224_v4 = vor.u32 %v2818_v60, %v2221_v0 }
  0xbb   : > { %v669_v15 = vpack.c.bf16 %v641_v10, %v639_v34  ;;  %v740_v21 = vunpack.c.l.b16 %v662_v14  ;;  %v741_v22 = vunpack.c.h.b16 %v662_v14  ;;  %1026 = vmatpush.bf16.msra.mxu0 %v2252_v29  ;;  %v2816_v14 = vld [vmem:[%s4054_s5 + $0xc] sm:$0xf0]  ;;  %v819_v60 = vadd.s32 4294967184, %v3250_v23 }
  0xbc   : > { %1066 = vmatpush.bf16.msra.mxu3 %v2248_v57 }
  0xbd   : > { %v754_v24 = vunpack.c.l.b16 %v669_v15  ;;  %v755_v25 = vunpack.c.h.b16 %v669_v15  ;;  %v796_v33 = vperm.slane %v740_v21, %v3370_v8  ;;  %v800_v34 = vperm.slane %v741_v22, %v3373_v9  ;;  %1053 = vmatpush.bf16.msra.mxu2 %v2244_v56  ;;  %v2814_v15 = vld [vmem:[%s4054_s5 + $0x4] sm:$0xf] }
  0xbe   : > { %1041 = vmatpush.bf16.msra.mxu1 %v2224_v4  ;;  %v803_v22 = vadd.s32 4294967216, %v3250_v23 }
  0xbf   : > { %v838_v35 = vperm.slane %v754_v24, %v3312_v36  ;;  %v840_v38 = vperm.slane %v755_v25, %v3315_v37  ;;  %v798_v44 = vsel %vm797_vm8, %v796_v33, %v794_v6  ;;  %1027 = vmatpush.bf16.msra.mxu0 %v2236_v45  ;;  %v2819_v6 = vld [vmem:[%s4054_s5 + $0x2c] sm:$0xf] }
  0xc0   : > { %v645_v37 = vpop.xlane.xlu1 %644  ;;  %v3431_v49 = vsel %vm801_vm9, %v800_v34, %v798_v44  ;;  %v615_v50 = vpop.xlane.xlu2 %614  ;;  %v2232_v12 = vor.u32 %v2819_v6, %v2229_v7 }
  0xc1   : > { %v839_v36 = vsel %vm789_vm6, %v838_v35, %v3308_v32  ;;  %1054 = vmatpush.bf16.msra.mxu2 %v2228_v5 }
  0xc2   : > { %v841_v32 = vsel %vm793_vm7, %v840_v38, %v839_v36  ;;  %v643_v51 = vpop.xlane.xlu0 %642  ;;  %1067 = vmatpush.bf16.msra.mxu3 %v2232_v12 }
  0xc3   : > { %v670_v55 = vpack.c.bf16 %v645_v37, %v643_v51  ;;  %1028 = vmatpush.bf16.msra.mxu0 %v2220_v63 }
  0xc5   : > { %v756_v61 = vunpack.c.l.b16 %v670_v55  ;;  %v757_v62 = vunpack.c.h.b16 %v670_v55  ;;  %1055 = vmatpush.bf16.msra.mxu2 %v2212_v26 }
  0xc6   : > { %1068 = vmatpush.bf16.msra.mxu3 %v2216_v31 }
  0xc7   : > { %v842_v10 = vperm.slane %v756_v61, %v3370_v8  ;;  %v844_v11 = vperm.slane %v757_v62, %v3373_v9  ;;  %v2204_v8 = vor.u32 %v2816_v14, %v2203_v13  ;;  %v2205_v9 = vld [vmem:[%s4054_s5 + $0x10] sm:$0xf0]  ;;  %v823_v61 = vadd.s32 4294967176, %v3250_v23 }
  0xc8   : > { %v647_v17 = vpop.xlane.xlu1 %646  ;;  %v649_v21 = vpop.xlane.xlu2 %648  ;;  %v2208_v25 = vor.u32 %v2814_v15, %v2205_v9 }
  0xc9   : > { %v843_v16 = vsel %vm797_vm8, %v842_v10, %v841_v32  ;;  %v671_v29 = vpack.c.bf16 %v649_v21, %v647_v17  ;;  %1029 = vmatpush.bf16.msra.mxu0 %v2204_v8  ;;  %v811_v32 = vadd.s32 4294967200, %v3250_v23 }
  0xca   : > { %v845_v20 = vsel %vm801_vm9, %v844_v11, %v843_v16  ;;  %v617_v24 = vpop.xlane.xlu0 %616  ;;  %1042 = vmatpush.bf16.msra.mxu1 %v2208_v25 }
  0xcb   : > { %v663_v30 = vpack.c.bf16 %v617_v24, %v615_v50  ;;  %v758_v33 = vunpack.c.l.b16 %v671_v29  ;;  %v759_v34 = vunpack.c.h.b16 %v671_v29  ;;  %v815_v50 = vadd.s32 4294967192, %v3250_v23 }
  0xcd   : > { %v742_v35 = vunpack.c.l.b16 %v663_v30  ;;  %v743_v38 = vunpack.c.h.b16 %v663_v30  ;;  %v846_v39 = vperm.slane %v758_v33, %v803_v22  ;;  %v848_v40 = vperm.slane %v759_v34, %v807_v1 }
  0xcf   : > { %v804_v41 = vperm.slane %v742_v35, %v803_v22  ;;  %v808_v42 = vperm.slane %v743_v38, %v807_v1  ;;  %v847_v43 = vsel %vm805_vm10, %v846_v39, %v845_v20  ;;  %v706_v22 = vld [vmem:[%s4055_s6] sm:$0xf] }
  0xd0   : > { %v621_v36 = vpop.xlane.xlu1 %620  ;;  %v849_v37 = vsel %vm809_vm11, %v848_v40, %v847_v43  ;;  %v651_v46 = vpop.xlane.xlu2 %650  ;;  %v709_v25 = vperm.slane %v706_v22, 1  ;;  %v710_v28 = vperm.slane %v706_v22, 2  ;;  %v711_v29 = vperm.slane %v706_v22, 3 }
  0xd1   : > { %v806_v44 = vsel %vm805_vm10, %v804_v41, %v3431_v49  ;;  %v708_v1 = vperm.slane %v706_v22, 0 }
  0xd2   : > { %v810_v45 = vsel %vm809_vm11, %v808_v42, %v806_v44  ;;  %v619_v47 = vpop.xlane.xlu0 %618 }
  0xd3   : > { %v664_v48 = vpack.c.bf16 %v621_v36, %v619_v47 }
  0xd5   : > { %v744_v51 = vunpack.c.l.b16 %v664_v48  ;;  %v745_v52 = vunpack.c.h.b16 %v664_v48 }
  0xd7   : > { %v812_v53 = vperm.slane %v744_v51, %v811_v32  ;;  %v816_v54 = vperm.slane %v745_v52, %v815_v50 }
  0xd8   : > { %v623_v56 = vpop.xlane.xlu1 %622  ;;  %v625_v57 = vpop.xlane.xlu2 %624 }
  0xd9   : > { %v814_v55 = vsel %vm813_vm12, %v812_v53, %v810_v45  ;;  %v665_v59 = vpack.c.bf16 %v625_v57, %v623_v56 }
  0xda   : > { %v818_v49 = vsel %vm817_vm13, %v816_v54, %v814_v55  ;;  %v653_v58 = vpop.xlane.xlu0 %652 }
  0xdb   : > { %v672_v62 = vpack.c.bf16 %v653_v58, %v651_v46  ;;  %v746_v63 = vunpack.c.l.b16 %v665_v59  ;;  %v747_v0 = vunpack.c.h.b16 %v665_v59 }
  0xdd   : > { %v760_v2 = vunpack.c.l.b16 %v672_v62  ;;  %v761_v3 = vunpack.c.h.b16 %v672_v62  ;;  %v820_v4 = vperm.slane %v746_v63, %v819_v60  ;;  %v824_v5 = vperm.slane %v747_v0, %v823_v61 }
  0xdf   : > { %v850_v6 = vperm.slane %v760_v2, %v811_v32  ;;  %v852_v7 = vperm.slane %v761_v3, %v815_v50  ;;  %v822_v10 = vsel %vm821_vm14, %v820_v4, %v818_v49 }
  0xe0   : > { %v657_v12 = vpop.xlane.xlu1 %656  ;;  %v826_v13 = vsel %vm825_vm15, %v824_v5, %v822_v10 }
  0xe1   : > { %v851_v11 = vsel %vm813_vm12, %v850_v6, %v849_v37 }
  0xe2   : > { %v853_v23 = vsel %vm817_vm13, %v852_v7, %v851_v11  ;;  %v655_v14 = vpop.xlane.xlu0 %654 }
  0xe3   : > { %v673_v15 = vpack.c.bf16 %v657_v12, %v655_v14 }
  0xe5   : > { %v762_v16 = vunpack.c.l.b16 %v673_v15  ;;  %v763_v17 = vunpack.c.h.b16 %v673_v15 }
  0xe7   : > { %v854_v8 = vperm.slane %v762_v16, %v819_v60  ;;  %v856_v9 = vperm.slane %v763_v17, %v823_v61 }
  0xe9   : > { %v855_v18 = vsel %vm821_vm14, %v854_v8, %v853_v23 }
  0xea   : > { %v857_v19 = vsel %vm825_vm15, %v856_v9, %v855_v18 }
  0xeb   : > { %v859_v20 = vsel %vm858_vm0, %v857_v19, %v826_v13 }
  0xec   : > { %v860_v21 = vpack.c.b16 %v859_v20, %v859_v20 }
  0xee   : > { %1030 = vmatmul.bf16.vlgmr.msra.gmra.mxu0 %v860_v21  ;;  %1043 = vmatmul.bf16.vlgmr.msra.gmra.mxu1 %v860_v21 }
  0xef   : > { %1056 = vmatmul.bf16.vlgmr.msra.gmra.mxu2 %v860_v21  ;;  %1069 = vmatmul.bf16.vlgmr.msra.gmra.mxu3 %v860_v21 }
 0x16b   : > { %v1031_v24 = vpop.f32.mrf.mxu0  ;;  %v1044_v26 = vpop.f32.mrf.mxu1 }
 0x16c   : > { %v1045_v27 = vadd.f32 %v1044_v26, %v709_v25  ;;  %v1032_v40 = vadd.f32 %v1031_v24, %v708_v1 }
 0x16e   : > { %v1078_v33 = vrot.slane %v1045_v27, 6 }
 0x170   : > { %v1082_v43 = vsel %vm1081_vm1, %v1032_v40, %v1078_v33 }
 0x172   : > { %v1057_v30 = vpop.f32.mrf.mxu2  ;;  %v1070_v31 = vpop.f32.mrf.mxu3 }
 0x173   : > { %v1058_v34 = vadd.f32 %v1057_v30, %v710_v28  ;;  %v1071_v35 = vadd.f32 %v1070_v31, %v711_v29  ;;  %v1033_v38 = vpop.f32.mrf.mxu0  ;;  %v1046_v39 = vpop.f32.mrf.mxu1 }
 0x175   : > { %v1079_v41 = vrot.slane %v1058_v34, 4  ;;  %v1080_v42 = vrot.slane %v1071_v35, 2 }
 0x177   : > { %v1084_v44 = vsel %vm1083_vm2, %v1079_v41, %v1080_v42 }
 0x178   : > { %v1086_v36 = vsel %vm1085_vm3, %v1082_v43, %v1084_v44 }
 0x179   : > { %1088 = vst [vmem:[#allocation3] sm:$0xff] %v1086_v36 }
 0x17a   : > { %v1059_v37 = vpop.f32.mrf.mxu2  ;;  %v1072_v45 = vpop.f32.mrf.mxu3 }
 0x17b PF: > { %s1089_s22 = sld [smem:[#allocation5]] }
 0x181   : > { %p2329_p6 = scmp.ge.s32.totalorder %s3148_s30, %s1089_s22 }
 0x183   : > { %1093 = sbr.rel (%p2329_p6) target bundleno = 734 (0x2de), region = 76 }
 0x188   : > { %v2853_v46 = vld [vmem:[%s3157_s20 + $0x38] sm:$0xff]  ;;  %v2852_v47 = vld [vmem:[%s3157_s20 + $0x30] sm:$0xff]  ;;  %v2851_v48 = vld [vmem:[%s3157_s20 + $0x28] sm:$0xff]  ;;  %vm1426_vm4 = vcmask 1040384   ;;  %vm1428_vm5 = vcmask 1042434   ;;  %vm1430_vm6 = vcmask 1041408  }
 0x189   : > { %1160 = vmatpush.bf16.xpose.msra.mxu0 %v2853_v46  ;;  %v2850_v32 = vld [vmem:[%s3157_s20 + $0x20] sm:$0xff]  ;;  %v2849_v50 = vld [vmem:[%s3157_s20 + $0x18] sm:$0xff]  ;;  %v2884_v52 = vld [vmem:[%s3162_s23 + $0xec] sm:$0xf0] }
 0x18a   : > { %v2476_v51 = vld [vmem:[%s3162_s23 + $0xe0] sm:$0xf]  ;;  %v2880_v55 = vld [vmem:[%s3162_s23 + $0xcc] sm:$0xf0]  ;;  %v2882_v56 = vld [vmem:[%s3162_s23 + $0xe4] sm:$0xf] }
 0x18b   : > { %v2460_v53 = vld [vmem:[%s3162_s23 + $0xc0] sm:$0xf]  ;;  %v2477_v54 = vor.u32 %v2884_v52, %v2476_v51  ;;  %v2848_v49 = vld [vmem:[%s3157_s20 + $0x10] sm:$0xff]  ;;  %v2484_v59 = vld [vmem:[%s3162_s23 + $0xe8] sm:$0xf] }
 0x18c   : > { %v2461_v57 = vor.u32 %v2880_v55, %v2460_v53  ;;  %v2478_v58 = vld [vmem:[%s3162_s23 + $0xf0] sm:$0xf0]  ;;  %v2885_v60 = vld [vmem:[%s3162_s23 + $0xf4] sm:$0xf0]  ;;  %v2444_v61 = vld [vmem:[%s3162_s23 + $0xa0] sm:$0xf] }
 0x18d   : > { %1367 = vmatpush.bf16.msra.mxu1 %v2477_v54  ;;  %v2876_v62 = vld [vmem:[%s3162_s23 + $0xac] sm:$0xf0]  ;;  %v2481_v63 = vor.u32 %v2882_v56, %v2478_v58  ;;  %v2485_v0 = vor.u32 %v2885_v60, %v2484_v59  ;;  %v2878_v2 = vld [vmem:[%s3162_s23 + $0xc4] sm:$0xf]  ;;  %v2462_v3 = vld [vmem:[%s3162_s23 + $0xd0] sm:$0xf0] }
 0x18e   : > { %v2468_v4 = vld [vmem:[%s3162_s23 + $0xc8] sm:$0xf]  ;;  %v2881_v5 = vld [vmem:[%s3162_s23 + $0xd4] sm:$0xf0]  ;;  %v2465_v6 = vor.u32 %v2878_v2, %v2462_v3  ;;  %v2874_v10 = vld [vmem:[%s3162_s23 + $0xa4] sm:$0xf]  ;;  %v2445_v11 = vor.u32 %v2876_v62, %v2444_v61 }
 0x18f   : > { %1380 = vmatpush.bf16.msra.mxu2 %v2481_v63  ;;  %1393 = vmatpush.bf16.msra.mxu3 %v2485_v0  ;;  %v2469_v7 = vor.u32 %v2881_v5, %v2468_v4  ;;  %v2446_v12 = vld [vmem:[%s3162_s23 + $0xb0] sm:$0xf0]  ;;  %v2452_v13 = vld [vmem:[%s3162_s23 + $0xa8] sm:$0xf]  ;;  %v2877_v23 = vld [vmem:[%s3162_s23 + $0xb4] sm:$0xf0] }
 0x190   : > { %v2428_v14 = vld [vmem:[%s3162_s23 + $0x80] sm:$0xf]  ;;  %v2872_v15 = vld [vmem:[%s3162_s23 + $0x8c] sm:$0xf0]  ;;  %v2449_v16 = vor.u32 %v2874_v10, %v2446_v12  ;;  %v2453_v17 = vor.u32 %v2877_v23, %v2452_v13  ;;  %v2870_v8 = vld [vmem:[%s3162_s23 + $0x84] sm:$0xf] }
 0x191   : > { %1161 = vmatpush.bf16.xpose.msra.mxu0 %v2852_v47  ;;  %1368 = vmatpush.bf16.msra.mxu1 %v2461_v57  ;;  %v2429_v9 = vor.u32 %v2872_v15, %v2428_v14  ;;  %v2430_v18 = vld [vmem:[%s3162_s23 + $0x90] sm:$0xf0]  ;;  %v2436_v19 = vld [vmem:[%s3162_s23 + $0x88] sm:$0xf]  ;;  %v2873_v20 = vld [vmem:[%s3162_s23 + $0x94] sm:$0xf0] }
 0x192   : > { %v2412_v21 = vld [vmem:[%s3162_s23 + $0x60] sm:$0xf]  ;;  %v2868_v22 = vld [vmem:[%s3162_s23 + $0x6c] sm:$0xf0]  ;;  %v2847_v24 = vld [vmem:[%s3157_s20 + $0x8] sm:$0xff]  ;;  %v2433_v25 = vor.u32 %v2870_v8, %v2430_v18  ;;  %v2437_v26 = vor.u32 %v2873_v20, %v2436_v19 }
 0x193   : > { %1381 = vmatpush.bf16.msra.mxu2 %v2465_v6  ;;  %1394 = vmatpush.bf16.msra.mxu3 %v2469_v7  ;;  %v2866_v27 = vld [vmem:[%s3162_s23 + $0x64] sm:$0xf]  ;;  %v2413_v28 = vor.u32 %v2868_v22, %v2412_v21  ;;  %v2414_v29 = vld [vmem:[%s3162_s23 + $0x70] sm:$0xf0]  ;;  %v2420_v1 = vld [vmem:[%s3162_s23 + $0x68] sm:$0xf] }
 0x194   : > { %v2869_v30 = vld [vmem:[%s3162_s23 + $0x74] sm:$0xf0]  ;;  %v2396_v31 = vld [vmem:[%s3162_s23 + $0x40] sm:$0xf]  ;;  %v2864_v33 = vld [vmem:[%s3162_s23 + $0x4c] sm:$0xf0]  ;;  %v2417_v34 = vor.u32 %v2866_v27, %v2414_v29 }
 0x195   : > { %1369 = vmatpush.bf16.msra.mxu1 %v2445_v11  ;;  %v2421_v35 = vor.u32 %v2869_v30, %v2420_v1  ;;  %v2862_v38 = vld [vmem:[%s3162_s23 + $0x44] sm:$0xf]  ;;  %v2397_v39 = vor.u32 %v2864_v33, %v2396_v31  ;;  %v2398_v40 = vld [vmem:[%s3162_s23 + $0x50] sm:$0xf0]  ;;  %v2404_v41 = vld [vmem:[%s3162_s23 + $0x48] sm:$0xf] }
 0x196   : > { %v2865_v42 = vld [vmem:[%s3162_s23 + $0x54] sm:$0xf0]  ;;  %v2380_v43 = vld [vmem:[%s3162_s23 + $0x20] sm:$0xf]  ;;  %v2860_v44 = vld [vmem:[%s3162_s23 + $0x2c] sm:$0xf0]  ;;  %v2401_v37 = vor.u32 %v2862_v38, %v2398_v40 }
 0x197   : > { %1382 = vmatpush.bf16.msra.mxu2 %v2449_v16  ;;  %1395 = vmatpush.bf16.msra.mxu3 %v2453_v17  ;;  %v2846_v36 = vld [vmem:[%s3157_s20] sm:$0xff]  ;;  %v2405_v45 = vor.u32 %v2865_v42, %v2404_v41  ;;  %v2381_v47 = vor.u32 %v2860_v44, %v2380_v43  ;;  %v2856_v52 = vld [vmem:[%s3162_s23 + $0xc] sm:$0xf0]  ;;  %v2883_v54 = vld [vmem:[%s3162_s23 + $0xec] sm:$0xf] }
 0x198   : > { %v2858_v46 = vld [vmem:[%s3162_s23 + $0x24] sm:$0xf]  ;;  %v2364_v51 = vld [vmem:[%s3162_s23] sm:$0xf]  ;;  %v2486_v55 = vld [vmem:[%s3162_s23 + $0xf8] sm:$0xf0] }
 0x199   : > { %1162 = vmatpush.bf16.xpose.msra.mxu0 %v2851_v48  ;;  %1370 = vmatpush.bf16.msra.mxu1 %v2429_v9  ;;  %v2382_v48 = vld [vmem:[%s3162_s23 + $0x30] sm:$0xf0]  ;;  %v1094_v53 = vld [vmem:[%s4053_s4] sm:$0x1]  ;;  %v2365_v57 = vor.u32 %v2856_v52, %v2364_v51  ;;  %v2489_v59 = vor.u32 %v2883_v54, %v2486_v55  ;;  %v2879_v60 = vld [vmem:[%s3162_s23 + $0xcc] sm:$0xf] }
 0x19a   : > { %v2385_v56 = vor.u32 %v2858_v46, %v2382_v48  ;;  %v1095_v58 = vpack.c.bf16 %v1094_v53, %v1094_v53  ;;  %v2470_v61 = vld [vmem:[%s3162_s23 + $0xd8] sm:$0xf0]  ;;  %v2875_v63 = vld [vmem:[%s3162_s23 + $0xac] sm:$0xf]  ;;  %v2854_v3 = vld [vmem:[%s3162_s23 + $0x4] sm:$0xf] }
 0x19b   : > { %1383 = vmatpush.bf16.msra.mxu2 %v2433_v25  ;;  %1396 = vmatpush.bf16.msra.mxu3 %v2437_v26  ;;  %v2473_v62 = vor.u32 %v2879_v60, %v2470_v61  ;;  %v2454_v0 = vld [vmem:[%s3162_s23 + $0xb8] sm:$0xf0]  ;;  %v2366_v4 = vld [vmem:[%s3162_s23 + $0x10] sm:$0xf0]  ;;  %v2372_v5 = vld [vmem:[%s3162_s23 + $0x8] sm:$0xf] }
 0x19c   : > { %v2457_v2 = vor.u32 %v2875_v63, %v2454_v0  ;;  %v2369_v6 = vor.u32 %v2854_v3, %v2366_v4  ;;  %v2857_v7 = vld [vmem:[%s3162_s23 + $0x14] sm:$0xf0]  ;;  %v2871_v10 = vld [vmem:[%s3162_s23 + $0x8c] sm:$0xf]  ;;  %v2438_v11 = vld [vmem:[%s3162_s23 + $0x98] sm:$0xf0] }
 0x19d   : > { %1371 = vmatpush.bf16.msra.mxu1 %v2413_v28  ;;  %v2373_v12 = vor.u32 %v2857_v7, %v2372_v5  ;;  %v2441_v13 = vor.u32 %v2871_v10, %v2438_v11  ;;  %v2867_v23 = vld [vmem:[%s3162_s23 + $0x6c] sm:$0xf]  ;;  %v2422_v14 = vld [vmem:[%s3162_s23 + $0x78] sm:$0xf0]  ;;  %v1173_v40 = vld [vmem:[#allocation2] sm:$0xf] }
 0x19e   : > { %v2425_v15 = vor.u32 %v2867_v23, %v2422_v14  ;;  %v2863_v16 = vld [vmem:[%s3162_s23 + $0x4c] sm:$0xf]  ;;  %v2406_v17 = vld [vmem:[%s3162_s23 + $0x58] sm:$0xf0] }
 0x19f   : > { %1384 = vmatpush.bf16.msra.mxu2 %v2417_v34  ;;  %1397 = vmatpush.bf16.msra.mxu3 %v2421_v35  ;;  %v2409_v8 = vor.u32 %v2863_v16, %v2406_v17  ;;  %v2859_v9 = vld [vmem:[%s3162_s23 + $0x2c] sm:$0xf]  ;;  %v2390_v18 = vld [vmem:[%s3162_s23 + $0x38] sm:$0xf0]  ;;  %v1434_v35 = vlaneseq }
 0x1a0   : > { %v2393_v19 = vor.u32 %v2859_v9, %v2390_v18  ;;  %v2855_v20 = vld [vmem:[%s3162_s23 + $0xc] sm:$0xf]  ;;  %v2374_v21 = vld [vmem:[%s3162_s23 + $0x18] sm:$0xf0] }
 0x1a1   : > { %1163 = vmatpush.bf16.xpose.msra.mxu0 %v2850_v32  ;;  %1372 = vmatpush.bf16.msra.mxu1 %v2397_v39  ;;  %v2388_v32 = vld [vmem:[%s3162_s23 + $0x28] sm:$0xf]  ;;  %v2377_v22 = vor.u32 %v2855_v20, %v2374_v21  ;;  %vm1436_vm7 = vcmp.lt.s32.totalorder %v1434_v35, 512 }
 0x1a3   : > { %1385 = vmatpush.bf16.msra.mxu2 %v2401_v37  ;;  %1398 = vmatpush.bf16.msra.mxu3 %v2405_v45 }
 0x1a5   : > { %1373 = vmatpush.bf16.msra.mxu1 %v2381_v47 }
 0x1a7   : > { %1386 = vmatpush.bf16.msra.mxu2 %v2385_v56 }
 0x1a9   : > { %1164 = vmatpush.bf16.xpose.msra.mxu0 %v2849_v50  ;;  %v2861_v50 = vld [vmem:[%s3162_s23 + $0x34] sm:$0xf0]  ;;  %1374 = vmatpush.bf16.msra.mxu1 %v2365_v57 }
 0x1ab   : > { %1387 = vmatpush.bf16.msra.mxu2 %v2369_v6 }
 0x1ad   : > { %1406 = vmatpush.bf16.msrb.mxu1 %v2489_v59 }
 0x1b1   : > { %1165 = vmatpush.bf16.xpose.msra.mxu0 %v2848_v49  ;;  %v2389_v49 = vor.u32 %v2861_v50, %v2388_v32  ;;  %1407 = vmatpush.bf16.msrb.mxu1 %v2473_v62 }
 0x1b3   : > { %1399 = vmatpush.bf16.msra.mxu3 %v2389_v49 }
 0x1b5   : > { %1408 = vmatpush.bf16.msrb.mxu1 %v2457_v2 }
 0x1b7   : > { %1400 = vmatpush.bf16.msra.mxu3 %v2373_v12 }
 0x1b9   : > { %1166 = vmatpush.bf16.xpose.msra.mxu0 %v2847_v24  ;;  %1409 = vmatpush.bf16.msrb.mxu1 %v2441_v13 }
 0x1bd   : > { %1410 = vmatpush.bf16.msrb.mxu1 %v2425_v15 }
 0x1c1   : > { %1167 = vmatpush.bf16.xpose.msra.mxu0 %v2846_v36  ;;  %1411 = vmatpush.bf16.msrb.mxu1 %v2409_v8 }
 0x1c5   : > { %1412 = vmatpush.bf16.msrb.mxu1 %v2393_v19 }
 0x1c8   : > { %1168 = vmatmul.bf16.vlgmr.msra.gmra.mxu0 %v1095_v58 }
 0x1c9   : > { %1413 = vmatpush.bf16.msrb.mxu1 %v2377_v22 }
 0x245   : > { %v1169_v24 = vpop.f32.mrf.mxu0 }
 0x246   : > { %v1174_v25 = vpack.c.bf16 %v1169_v24, %v1169_v24 }
 0x248   : > { %1375 = vmatmul.bf16.vlgmr.msra.gmra.mxu1 %v1174_v25  ;;  %1388 = vmatmul.bf16.vlgmr.msra.gmra.mxu2 %v1174_v25 }
 0x249   : > { %1401 = vmatmul.bf16.vlgmr.msra.gmra.mxu3 %v1174_v25 }
 0x24d   : > { %v1171_v26 = vpop.f32.mrf.mxu0 }
 0x258   : > { %1414 = vmatmul.bf16.vlgmr.msrb.gmra.mxu1 %v1174_v25 }
 0x2c5   : > { %v1376_v27 = vpop.f32.mrf.mxu1 }
 0x2cb   : > { %v1389_v28 = vpop.f32.mrf.mxu2 }
 0x2cc   : > { %v1402_v29 = vpop.f32.mrf.mxu3  ;;  %v1423_v31 = vrot.slane %v1389_v28, 7 }
 0x2cd   : > { %v1378_v1 = vpop.f32.mrf.mxu1  ;;  %v1424_v38 = vrot.slane %v1402_v29, 6 }
 0x2ce   : > { %v1427_v41 = vsel %vm1426_vm4, %v1376_v27, %v1423_v31 }
 0x2d3   : > { %v1391_v30 = vpop.f32.mrf.mxu2 }
 0x2d4   : > { %v1404_v33 = vpop.f32.mrf.mxu3 }
 0x2d5   : > { %v1415_v34 = vpop.f32.mrf.mxu1 }
 0x2d6   : > { %v1425_v39 = vrot.slane %v1415_v34, 5 }
 0x2d8   : > { %v1429_v42 = vsel %vm1428_vm5, %v1424_v38, %v1425_v39 }
 0x2d9   : > { %v1431_v43 = vsel %vm1430_vm6, %v1427_v41, %v1429_v42 }
 0x2da   : > { %v1433_v44 = vadd.f32 %v1431_v43, %v1173_v40 }
 0x2dc   : > { %1438 = vst.msk [vmem:[#allocation2] sm:$0xf] %vm1436_vm7, %v1433_v44 }
 0x2dd   : > { %v1417_v36 = vpop.f32.mrf.mxu1 }
 0x2de PF: > { %p2490_p7 = scmp.ne.s32.totalorder %s3148_s30, 3 }
 0x2df   : > { %s2141_s12 = sld [smem:[#allocation6]] (!%p2490_p7) }
 0x2e0   : > { %1442 = sbr.rel (%p2490_p7) target bundleno = 1201 (0x4b1), region = 80 }
 0x2e5   : > { %v2549_v37 = vld [vmem:[%s4056_s7 + $0x70] sm:$0xf]  ;;  %v2901_v45 = vld [vmem:[%s4056_s7 + $0x74] sm:$0xf0]  ;;  %v2541_v55 = vld [vmem:[%s4056_s7 + $0x60] sm:$0xf] }
 0x2e6   : > { %v2613_v46 = vld [vmem:[%s4056_s7 + $0xf0] sm:$0xf]  ;;  %v2550_v47 = vor.u32 %v2901_v45, %v2549_v37  ;;  %v2917_v48 = vld [vmem:[%s4056_s7 + $0xf4] sm:$0xf0]  ;;  %v2899_v49 = vld [vmem:[%s4056_s7 + $0x64] sm:$0xf0] }
 0x2e7   : > { %v2677_v32 = vld [vmem:[%s4056_s7 + $0x170] sm:$0xf]  ;;  %v2933_v50 = vld [vmem:[%s4056_s7 + $0x174] sm:$0xf0]  ;;  %v2614_v51 = vor.u32 %v2917_v48, %v2613_v46  ;;  %v2605_v57 = vld [vmem:[%s4056_s7 + $0xe0] sm:$0xf]  ;;  %v2542_v59 = vor.u32 %v2899_v49, %v2541_v55 }
 0x2e8   : > { %v2678_v52 = vor.u32 %v2933_v50, %v2677_v32  ;;  %v2741_v53 = vld [vmem:[%s4056_s7 + $0x1f0] sm:$0xf]  ;;  %v2949_v54 = vld [vmem:[%s4056_s7 + $0x1f4] sm:$0xf0]  ;;  %1866 = vmatpush.bf16.msra.mxu0 %v2550_v47  ;;  %v2915_v58 = vld [vmem:[%s4056_s7 + $0xe4] sm:$0xf0] }
 0x2e9   : > { %v2742_v56 = vor.u32 %v2949_v54, %v2741_v53  ;;  %1879 = vmatpush.bf16.msra.mxu1 %v2614_v51  ;;  %v2606_v60 = vor.u32 %v2915_v58, %v2605_v57  ;;  %v2669_v61 = vld [vmem:[%s4056_s7 + $0x160] sm:$0xf]  ;;  %v2931_v62 = vld [vmem:[%s4056_s7 + $0x164] sm:$0xf0]  ;;  %v2533_v3 = vld [vmem:[%s4056_s7 + $0x50] sm:$0xf] }
 0x2ea   : > { %1892 = vmatpush.bf16.msra.mxu2 %v2678_v52  ;;  %v2733_v63 = vld [vmem:[%s4056_s7 + $0x1e0] sm:$0xf]  ;;  %v2670_v0 = vor.u32 %v2931_v62, %v2669_v61  ;;  %v2947_v2 = vld [vmem:[%s4056_s7 + $0x1e4] sm:$0xf0]  ;;  %v2897_v4 = vld [vmem:[%s4056_s7 + $0x54] sm:$0xf0] }
 0x2eb   : > { %1905 = vmatpush.bf16.msra.mxu3 %v2742_v56  ;;  %v2734_v5 = vor.u32 %v2947_v2, %v2733_v63  ;;  %v2597_v6 = vld [vmem:[%s4056_s7 + $0xd0] sm:$0xf]  ;;  %v2913_v7 = vld [vmem:[%s4056_s7 + $0xd4] sm:$0xf0]  ;;  %v2534_v11 = vor.u32 %v2897_v4, %v2533_v3  ;;  %v2525_v16 = vld [vmem:[%s4056_s7 + $0x40] sm:$0xf] }
 0x2ec   : > { %v2661_v10 = vld [vmem:[%s4056_s7 + $0x150] sm:$0xf]  ;;  %1867 = vmatpush.bf16.msra.mxu0 %v2542_v59  ;;  %v2929_v12 = vld [vmem:[%s4056_s7 + $0x154] sm:$0xf0]  ;;  %v2598_v14 = vor.u32 %v2913_v7, %v2597_v6  ;;  %v2895_v17 = vld [vmem:[%s4056_s7 + $0x44] sm:$0xf0] }
 0x2ed   : > { %v2725_v13 = vld [vmem:[%s4056_s7 + $0x1d0] sm:$0xf]  ;;  %v2945_v23 = vld [vmem:[%s4056_s7 + $0x1d4] sm:$0xf0]  ;;  %1880 = vmatpush.bf16.msra.mxu1 %v2606_v60  ;;  %v2662_v15 = vor.u32 %v2929_v12, %v2661_v10  ;;  %v2589_v8 = vld [vmem:[%s4056_s7 + $0xc0] sm:$0xf]  ;;  %v2526_v24 = vor.u32 %v2895_v17, %v2525_v16 }
 0x2ee   : > { %1893 = vmatpush.bf16.msra.mxu2 %v2670_v0  ;;  %v2726_v9 = vor.u32 %v2945_v23, %v2725_v13  ;;  %v2911_v18 = vld [vmem:[%s4056_s7 + $0xc4] sm:$0xf0]  ;;  %v2653_v19 = vld [vmem:[%s4056_s7 + $0x140] sm:$0xf]  ;;  %v2517_v27 = vld [vmem:[%s4056_s7 + $0x30] sm:$0xf] }
 0x2ef   : > { %1906 = vmatpush.bf16.msra.mxu3 %v2734_v5  ;;  %v2927_v20 = vld [vmem:[%s4056_s7 + $0x144] sm:$0xf0]  ;;  %v2717_v21 = vld [vmem:[%s4056_s7 + $0x1c0] sm:$0xf]  ;;  %v2590_v25 = vor.u32 %v2911_v18, %v2589_v8  ;;  %v2893_v28 = vld [vmem:[%s4056_s7 + $0x34] sm:$0xf0] }
 0x2f0   : > { %v2943_v22 = vld [vmem:[%s4056_s7 + $0x1c4] sm:$0xf0]  ;;  %1868 = vmatpush.bf16.msra.mxu0 %v2534_v11  ;;  %v2654_v26 = vor.u32 %v2927_v20, %v2653_v19  ;;  %v2581_v29 = vld [vmem:[%s4056_s7 + $0xb0] sm:$0xf]  ;;  %v2909_v30 = vld [vmem:[%s4056_s7 + $0xb4] sm:$0xf0]  ;;  %v2518_v38 = vor.u32 %v2893_v28, %v2517_v27 }
 0x2f1   : > { %1881 = vmatpush.bf16.msra.mxu1 %v2598_v14  ;;  %v2718_v1 = vor.u32 %v2943_v22, %v2717_v21  ;;  %v2645_v31 = vld [vmem:[%s4056_s7 + $0x130] sm:$0xf]  ;;  %v2925_v33 = vld [vmem:[%s4056_s7 + $0x134] sm:$0xf0]  ;;  %v2582_v39 = vor.u32 %v2909_v30, %v2581_v29  ;;  %v2509_v41 = vld [vmem:[%s4056_s7 + $0x20] sm:$0xf] }
 0x2f2   : > { %1894 = vmatpush.bf16.msra.mxu2 %v2662_v15  ;;  %v2709_v34 = vld [vmem:[%s4056_s7 + $0x1b0] sm:$0xf]  ;;  %v2941_v35 = vld [vmem:[%s4056_s7 + $0x1b4] sm:$0xf0]  ;;  %v2646_v40 = vor.u32 %v2925_v33, %v2645_v31  ;;  %v2891_v42 = vld [vmem:[%s4056_s7 + $0x24] sm:$0xf0] }
 0x2f3   : > { %1907 = vmatpush.bf16.msra.mxu3 %v2726_v9  ;;  %v2573_v43 = vld [vmem:[%s4056_s7 + $0xa0] sm:$0xf]  ;;  %v2710_v44 = vor.u32 %v2941_v35, %v2709_v34  ;;  %v2907_v36 = vld [vmem:[%s4056_s7 + $0xa4] sm:$0xf0]  ;;  %v2510_v48 = vor.u32 %v2891_v42, %v2509_v41  ;;  %v2501_v32 = vld [vmem:[%s4056_s7 + $0x10] sm:$0xf] }
 0x2f4   : > { %1869 = vmatpush.bf16.msra.mxu0 %v2526_v24  ;;  %v2637_v37 = vld [vmem:[%s4056_s7 + $0x120] sm:$0xf]  ;;  %v2923_v45 = vld [vmem:[%s4056_s7 + $0x124] sm:$0xf0]  ;;  %v2889_v50 = vld [vmem:[%s4056_s7 + $0x14] sm:$0xf0]  ;;  %v2574_v52 = vor.u32 %v2907_v36, %v2573_v43 }
 0x2f5   : > { %1882 = vmatpush.bf16.msra.mxu1 %v2590_v25  ;;  %v2701_v46 = vld [vmem:[%s4056_s7 + $0x1a0] sm:$0xf]  ;;  %v2939_v47 = vld [vmem:[%s4056_s7 + $0x1a4] sm:$0xf0]  ;;  %v2565_v51 = vld [vmem:[%s4056_s7 + $0x90] sm:$0xf]  ;;  %v2638_v53 = vor.u32 %v2923_v45, %v2637_v37  ;;  %v2502_v63 = vor.u32 %v2889_v50, %v2501_v32 }
 0x2f6   : > { %1895 = vmatpush.bf16.msra.mxu2 %v2654_v26  ;;  %v2905_v54 = vld [vmem:[%s4056_s7 + $0x94] sm:$0xf0]  ;;  %v2629_v55 = vld [vmem:[%s4056_s7 + $0x110] sm:$0xf]  ;;  %v2702_v49 = vor.u32 %v2939_v47, %v2701_v46  ;;  %v2493_v59 = vld [vmem:[%s4056_s7] sm:$0xf] }
 0x2f7   : > { %1908 = vmatpush.bf16.msra.mxu3 %v2718_v1  ;;  %v2921_v56 = vld [vmem:[%s4056_s7 + $0x114] sm:$0xf0]  ;;  %v2693_v57 = vld [vmem:[%s4056_s7 + $0x190] sm:$0xf]  ;;  %v2887_v60 = vld [vmem:[%s4056_s7 + $0x4] sm:$0xf0]  ;;  %v2566_v4 = vor.u32 %v2905_v54, %v2565_v51 }
 0x2f8   : > { %1870 = vmatpush.bf16.msra.mxu0 %v2518_v38  ;;  %v2937_v58 = vld [vmem:[%s4056_s7 + $0x194] sm:$0xf0]  ;;  %v2557_v61 = vld [vmem:[%s4056_s7 + $0x80] sm:$0xf]  ;;  %v2903_v62 = vld [vmem:[%s4056_s7 + $0x84] sm:$0xf0]  ;;  %v2630_v5 = vor.u32 %v2921_v56, %v2629_v55  ;;  %v2494_v13 = vor.u32 %v2887_v60, %v2493_v59 }
 0x2f9   : > { %1883 = vmatpush.bf16.msra.mxu1 %v2582_v39  ;;  %v2621_v0 = vld [vmem:[%s4056_s7 + $0x100] sm:$0xf]  ;;  %v2919_v2 = vld [vmem:[%s4056_s7 + $0x104] sm:$0xf0]  ;;  %v2900_v7 = vld [vmem:[%s4056_s7 + $0x74] sm:$0xf]  ;;  %v2694_v11 = vor.u32 %v2937_v58, %v2693_v57  ;;  %v2558_v16 = vor.u32 %v2903_v62, %v2557_v61 }
 0x2fa   : > { %1896 = vmatpush.bf16.msra.mxu2 %v2646_v40  ;;  %v2685_v3 = vld [vmem:[%s4056_s7 + $0x180] sm:$0xf]  ;;  %v2935_v6 = vld [vmem:[%s4056_s7 + $0x184] sm:$0xf0]  ;;  %v2551_v10 = vld [vmem:[%s4056_s7 + $0x78] sm:$0xf0]  ;;  %v2622_v17 = vor.u32 %v2919_v2, %v2621_v0 }
 0x2fb   : > { %1909 = vmatpush.bf16.msra.mxu3 %v2710_v44  ;;  %v2916_v12 = vld [vmem:[%s4056_s7 + $0xf4] sm:$0xf]  ;;  %v2615_v23 = vld [vmem:[%s4056_s7 + $0xf8] sm:$0xf0]  ;;  %v2686_v8 = vor.u32 %v2935_v6, %v2685_v3  ;;  %v2554_v9 = vor.u32 %v2900_v7, %v2551_v10  ;;  %v1444_v20 = vld [vmem:[#allocation2] sm:$0xf] }
 0x2fc   : > { %1871 = vmatpush.bf16.msra.mxu0 %v2510_v48  ;;  %v2932_v14 = vld [vmem:[%s4056_s7 + $0x174] sm:$0xf]  ;;  %v2679_v15 = vld [vmem:[%s4056_s7 + $0x178] sm:$0xf0]  ;;  %v2898_v21 = vld [vmem:[%s4056_s7 + $0x64] sm:$0xf]  ;;  %v2618_v27 = vor.u32 %v2916_v12, %v2615_v23 }
 0x2fd   : > { %1884 = vmatpush.bf16.msra.mxu1 %v2574_v52  ;;  %v2948_v18 = vld [vmem:[%s4056_s7 + $0x1f4] sm:$0xf]  ;;  %v2743_v19 = vld [vmem:[%s4056_s7 + $0x1f8] sm:$0xf0]  ;;  %v1446_v22 = vperm.slane %v1444_v20, 0  ;;  %v1447_v24 = vperm.slane %v1444_v20, 1  ;;  %v2682_v28 = vor.u32 %v2932_v14, %v2679_v15 }
 0x2fe   : > { %1897 = vmatpush.bf16.msra.mxu2 %v2638_v53  ;;  %v1448_v25 = vperm.slane %v1444_v20, 2  ;;  %v1449_v26 = vperm.slane %v1444_v20, 3  ;;  %v2543_v29 = vld [vmem:[%s4056_s7 + $0x68] sm:$0xf0]  ;;  %v2914_v1 = vld [vmem:[%s4056_s7 + $0xe4] sm:$0xf]  ;;  %v2746_v35 = vor.u32 %v2948_v18, %v2743_v19 }
 0x2ff   : > { %1910 = vmatpush.bf16.msra.mxu3 %v2702_v49  ;;  %vm1453_vm8 = vcmask 1041408   ;;  %vm1455_vm9 = vcmask 1045508   ;;  %v2607_v30 = vld [vmem:[%s4056_s7 + $0xe8] sm:$0xf0]  ;;  %v1450_v31 = vrot.slane %v1447_v24, 6  ;;  %vm1457_vm10 = vcmask 1043456  }
 0x300   : > { %1872 = vmatpush.bf16.msra.mxu0 %v2502_v63  ;;  %v1451_v33 = vrot.slane %v1448_v25, 4  ;;  %v1452_v34 = vrot.slane %v1449_v26, 2  ;;  %v2930_v38 = vld [vmem:[%s4056_s7 + $0x164] sm:$0xf]  ;;  %v2671_v39 = vld [vmem:[%s4056_s7 + $0x168] sm:$0xf0]  ;;  %v2546_v36 = vor.u32 %v2898_v21, %v2543_v29  ;;  %v2610_v45 = vor.u32 %v2914_v1, %v2607_v30 }
 0x301   : > { %1885 = vmatpush.bf16.msra.mxu1 %v2566_v4  ;;  %v1443_v40 = vld [vmem:[#allocation3] sm:$0xff]  ;;  %v2946_v41 = vld [vmem:[%s4056_s7 + $0x1e4] sm:$0xf]  ;;  %v1454_v43 = vsel %vm1453_vm8, %v1446_v22, %v1450_v31  ;;  %v2674_v46 = vor.u32 %v2930_v38, %v2671_v39  ;;  %v2896_v48 = vld [vmem:[%s4056_s7 + $0x54] sm:$0xf] }
 0x302   : > { %1898 = vmatpush.bf16.msra.mxu2 %v2630_v5  ;;  %v2735_v42 = vld [vmem:[%s4056_s7 + $0x1e8] sm:$0xf0]  ;;  %v1456_v44 = vsel %vm1455_vm9, %v1451_v33, %v1452_v34  ;;  %v2535_v32 = vld [vmem:[%s4056_s7 + $0x58] sm:$0xf0]  ;;  %v2912_v50 = vld [vmem:[%s4056_s7 + $0xd4] sm:$0xf] }
 0x303   : > { %1911 = vmatpush.bf16.msra.mxu3 %v2694_v11  ;;  %v1458_v37 = vsel %vm1457_vm10, %v1454_v43, %v1456_v44  ;;  %v2738_v51 = vor.u32 %v2946_v41, %v2735_v42  ;;  %v2599_v52 = vld [vmem:[%s4056_s7 + $0xd8] sm:$0xf0]  ;;  %v2928_v53 = vld [vmem:[%s4056_s7 + $0x154] sm:$0xf]  ;;  %v2538_v57 = vor.u32 %v2896_v48, %v2535_v32  ;;  %v2894_v58 = vld [vmem:[%s4056_s7 + $0x44] sm:$0xf] }
 0x304   : > { %1873 = vmatpush.bf16.msra.mxu0 %v2494_v13  ;;  %v1460_v47 = vadd.f32 %v1458_v37, %v1443_v40  ;;  %v2663_v54 = vld [vmem:[%s4056_s7 + $0x158] sm:$0xf0]  ;;  %v2944_v56 = vld [vmem:[%s4056_s7 + $0x1d4] sm:$0xf]  ;;  %v2602_v59 = vor.u32 %v2912_v50, %v2599_v52  ;;  %v2527_v61 = vld [vmem:[%s4056_s7 + $0x48] sm:$0xf0] }
 0x305   : > { %1886 = vmatpush.bf16.msra.mxu1 %v2558_v16  ;;  %v2727_v49 = vld [vmem:[%s4056_s7 + $0x1d8] sm:$0xf0]  ;;  %v2666_v60 = vor.u32 %v2928_v53, %v2663_v54  ;;  %v2910_v62 = vld [vmem:[%s4056_s7 + $0xc4] sm:$0xf]  ;;  %v2591_v0 = vld [vmem:[%s4056_s7 + $0xc8] sm:$0xf0]  ;;  %v2530_v6 = vor.u32 %v2894_v58, %v2527_v61 }
 0x306   : > { %1899 = vmatpush.bf16.msra.mxu2 %v2622_v17  ;;  %v1461_v55 = vmax.f32 %v1460_v47, 0.0  ;;  %v2730_v63 = vor.u32 %v2944_v56, %v2727_v49  ;;  %v2926_v2 = vld [vmem:[%s4056_s7 + $0x144] sm:$0xf]  ;;  %v2655_v3 = vld [vmem:[%s4056_s7 + $0x148] sm:$0xf0]  ;;  %v2594_v7 = vor.u32 %v2910_v62, %v2591_v0 }
 0x307   : > { %1912 = vmatpush.bf16.msra.mxu3 %v2686_v8  ;;  %v2942_v4 = vld [vmem:[%s4056_s7 + $0x1c4] sm:$0xf]  ;;  %v2719_v5 = vld [vmem:[%s4056_s7 + $0x1c8] sm:$0xf0]  ;;  %v2658_v10 = vor.u32 %v2926_v2, %v2655_v3  ;;  %v2892_v11 = vld [vmem:[%s4056_s7 + $0x34] sm:$0xf] }
 0x308   : > { %1918 = vmatpush.bf16.msrb.mxu0 %v2554_v9  ;;  %1463 = vst [vmem:[#allocation1] ss:$4 sm:$0xff] %v1461_v55  ;;  %v2519_v12 = vld [vmem:[%s4056_s7 + $0x38] sm:$0xf0]  ;;  %v2722_v13 = vor.u32 %v2942_v4, %v2719_v5  ;;  %v2908_v23 = vld [vmem:[%s4056_s7 + $0xb4] sm:$0xf] }
 0x309   : > { %1931 = vmatpush.bf16.msrb.mxu1 %v2618_v27  ;;  %v2583_v14 = vld [vmem:[%s4056_s7 + $0xb8] sm:$0xf0]  ;;  %v2924_v15 = vld [vmem:[%s4056_s7 + $0x134] sm:$0xf]  ;;  %v2522_v19 = vor.u32 %v2892_v11, %v2519_v12  ;;  %v2890_v20 = vld [vmem:[%s4056_s7 + $0x24] sm:$0xf] }
 0x30a   : > { %1944 = vmatpush.bf16.msrb.mxu2 %v2682_v28  ;;  %v2647_v16 = vld [vmem:[%s4056_s7 + $0x138] sm:$0xf0]  ;;  %v2940_v17 = vld [vmem:[%s4056_s7 + $0x1b4] sm:$0xf]  ;;  %v2511_v21 = vld [vmem:[%s4056_s7 + $0x28] sm:$0xf0]  ;;  %v2586_v27 = vor.u32 %v2908_v23, %v2583_v14 }
 0x30b   : > { %1957 = vmatpush.bf16.msrb.mxu3 %v2746_v35  ;;  %v2711_v8 = vld [vmem:[%s4056_s7 + $0x1b8] sm:$0xf0]  ;;  %v2650_v1 = vor.u32 %v2924_v15, %v2647_v16  ;;  %v2906_v31 = vld [vmem:[%s4056_s7 + $0xa4] sm:$0xf]  ;;  %v2575_v33 = vld [vmem:[%s4056_s7 + $0xa8] sm:$0xf0]  ;;  %v2514_v40 = vor.u32 %v2890_v20, %v2511_v21 }
 0x30c   : > { %1919 = vmatpush.bf16.msrb.mxu0 %v2546_v36  ;;  %v2714_v30 = vor.u32 %v2940_v17, %v2711_v8  ;;  %v2922_v34 = vld [vmem:[%s4056_s7 + $0x124] sm:$0xf]  ;;  %v2639_v35 = vld [vmem:[%s4056_s7 + $0x128] sm:$0xf0]  ;;  %v2578_v41 = vor.u32 %v2906_v31, %v2575_v33  ;;  %v2888_v42 = vld [vmem:[%s4056_s7 + $0x14] sm:$0xf] }
 0x30d   : > { %1932 = vmatpush.bf16.msrb.mxu1 %v2610_v45  ;;  %v2938_v38 = vld [vmem:[%s4056_s7 + $0x1a4] sm:$0xf]  ;;  %v2703_v39 = vld [vmem:[%s4056_s7 + $0x1a8] sm:$0xf0]  ;;  %v2503_v43 = vld [vmem:[%s4056_s7 + $0x18] sm:$0xf0]  ;;  %v2642_v44 = vor.u32 %v2922_v34, %v2639_v35 }
 0x30e   : > { %1945 = vmatpush.bf16.msrb.mxu2 %v2674_v46  ;;  %v2706_v36 = vor.u32 %v2938_v38, %v2703_v39  ;;  %v2904_v37 = vld [vmem:[%s4056_s7 + $0x94] sm:$0xf]  ;;  %v2567_v45 = vld [vmem:[%s4056_s7 + $0x98] sm:$0xf0]  ;;  %v2506_v50 = vor.u32 %v2888_v42, %v2503_v43  ;;  %v2886_v52 = vld [vmem:[%s4056_s7 + $0x4] sm:$0xf] }
 0x30f   : > { %1958 = vmatpush.bf16.msrb.mxu3 %v2738_v51  ;;  %v1466_v9 = vld.sshfl [vmem:[#allocation1 + $0x10] sm:$0xff pattern:$0x73625140]  ;;  %v1464_v18 = vld.sshfl [vmem:[#allocation1] sm:$0xff pattern:$0x73625140]  ;;  %v2570_v51 = vor.u32 %v2904_v37, %v2567_v45 }
 0x310   : > { %1920 = vmatpush.bf16.msrb.mxu0 %v2538_v57  ;;  %v3907_v22 = vpack.c.bf16 %v1466_v9, %v1466_v9  ;;  %v3909_v24 = vpack.c.bf16 %v1464_v18, %v1464_v18  ;;  %v1467_v25 = vld.sshfl [vmem:[#allocation1 + $0x18] sm:$0xff pattern:$0x73625140]  ;;  %v1465_v26 = vld.sshfl [vmem:[#allocation1 + $0x8] sm:$0xff pattern:$0x73625140] }
 0x311   : > { %1933 = vmatpush.bf16.msrb.mxu1 %v2602_v59  ;;  %v3911_v28 = vpack.c.bf16 %v1467_v25, %v1467_v25  ;;  %v1473_v29 = vpack.c.bf16 %v1465_v26, %v1465_v26  ;;  %v2920_v46 = vld [vmem:[%s4056_s7 + $0x114] sm:$0xf]  ;;  %v2631_v47 = vld [vmem:[%s4056_s7 + $0x118] sm:$0xf0]  ;;  %v2495_v53 = vld [vmem:[%s4056_s7 + $0x8] sm:$0xf0] }
 0x312   : > { %1946 = vmatpush.bf16.msrb.mxu2 %v2666_v60  ;;  %1874 = vmatmul.bf16.vlgmr.msra.gmra.mxu0 %v3909_v24  ;;  %v2936_v48 = vld [vmem:[%s4056_s7 + $0x194] sm:$0xf]  ;;  %v2695_v32 = vld [vmem:[%s4056_s7 + $0x198] sm:$0xf0]  ;;  %v2634_v54 = vor.u32 %v2920_v46, %v2631_v47  ;;  %v2902_v56 = vld [vmem:[%s4056_s7 + $0x84] sm:$0xf]  ;;  %v2498_v61 = vor.u32 %v2886_v52, %v2495_v53 }
 0x313   : > { %1959 = vmatpush.bf16.msrb.mxu3 %v2730_v63  ;;  %1900 = vmatmul.bf16.vlgmr.msra.gmra.mxu2 %v3907_v22  ;;  %v2698_v55 = vor.u32 %v2936_v48, %v2695_v32  ;;  %v2559_v49 = vld [vmem:[%s4056_s7 + $0x88] sm:$0xf0]  ;;  %v2918_v57 = vld [vmem:[%s4056_s7 + $0x104] sm:$0xf]  ;;  %v2957_v2 = vld [vmem:[%s4058_s9 + $0x38] sm:$0xff] }
 0x314   : > { %1921 = vmatpush.bf16.msrb.mxu0 %v2530_v6  ;;  %1913 = vmatmul.bf16.vlgmr.msra.gmra.mxu3 %v3911_v28  ;;  %v2623_v58 = vld [vmem:[%s4056_s7 + $0x108] sm:$0xf0]  ;;  %v2934_v59 = vld [vmem:[%s4056_s7 + $0x184] sm:$0xf]  ;;  %v2562_v62 = vor.u32 %v2902_v56, %v2559_v49  ;;  %v2956_v3 = vld [vmem:[%s4058_s9 + $0x30] sm:$0xff] }
 0x315   : > { %1934 = vmatpush.bf16.msrb.mxu1 %v2594_v7  ;;  %v2687_v60 = vld [vmem:[%s4056_s7 + $0x188] sm:$0xf0]  ;;  %v2626_v63 = vor.u32 %v2918_v57, %v2623_v58  ;;  %v2954_v5 = vld [vmem:[%s4058_s9 + $0x20] sm:$0xff]  ;;  %v2953_v6 = vld [vmem:[%s4058_s9 + $0x18] sm:$0xff] }
 0x316   : > { %1947 = vmatpush.bf16.msrb.mxu2 %v2658_v10  ;;  %1887 = vmatmul.bf16.vlgmr.msra.gmra.mxu1 %v1473_v29  ;;  %v2690_v0 = vor.u32 %v2934_v59, %v2687_v60  ;;  %v2955_v4 = vld [vmem:[%s4058_s9 + $0x28] sm:$0xff]  ;;  %v2952_v7 = vld [vmem:[%s4058_s9 + $0x10] sm:$0xff]  ;;  %v2965_v11 = vld [vmem:[%s4058_s9 + $0x78] sm:$0xff]  ;;  %v2142_v59 = vstv %s2141_s12 }
 0x317   : > { %1960 = vmatpush.bf16.msrb.mxu3 %v2722_v13  ;;  %v2951_v10 = vld [vmem:[%s4058_s9 + $0x8] sm:$0xff]  ;;  %v2950_v12 = vld [vmem:[%s4058_s9] sm:$0xff]  ;;  %v2964_v13 = vld [vmem:[%s4058_s9 + $0x70] sm:$0xff] }
 0x318   : > { %1922 = vmatpush.bf16.msrb.mxu0 %v2522_v19  ;;  %v2963_v23 = vld [vmem:[%s4058_s9 + $0x68] sm:$0xff]  ;;  %v2962_v14 = vld [vmem:[%s4058_s9 + $0x60] sm:$0xff]  ;;  %v2961_v15 = vld [vmem:[%s4058_s9 + $0x58] sm:$0xff] }
 0x319   : > { %1935 = vmatpush.bf16.msrb.mxu1 %v2586_v27  ;;  %v2960_v16 = vld [vmem:[%s4058_s9 + $0x50] sm:$0xff]  ;;  %v1540_v17 = vld [vmem:[%s4057_s8] sm:$0x3]  ;;  %v2959_v9 = vld [vmem:[%s4058_s9 + $0x48] sm:$0xff] }
 0x31a   : > { %1948 = vmatpush.bf16.msrb.mxu2 %v2650_v1  ;;  %v1542_v8 = vperm.slane %v1540_v17, 0  ;;  %v2958_v19 = vld [vmem:[%s4058_s9 + $0x40] sm:$0xff]  ;;  %v1543_v33 = vperm.slane %v1540_v17, 1 }
 0x31b   : > { %1961 = vmatpush.bf16.msrb.mxu3 %v2714_v30 }
 0x31c   : > { %1923 = vmatpush.bf16.msrb.mxu0 %v2514_v40 }
 0x31d   : > { %1936 = vmatpush.bf16.msrb.mxu1 %v2578_v41 }
 0x31e   : > { %1949 = vmatpush.bf16.msrb.mxu2 %v2642_v44 }
 0x31f   : > { %1962 = vmatpush.bf16.msrb.mxu3 %v2706_v36 }
 0x320   : > { %1924 = vmatpush.bf16.msrb.mxu0 %v2506_v50 }
 0x321   : > { %1937 = vmatpush.bf16.msrb.mxu1 %v2570_v51  ;;  %v3055_v51 = vld [vmem:[%s4059_s10] ss:$0 sm:$0xff] }
 0x322   : > { %1950 = vmatpush.bf16.msrb.mxu2 %v2634_v54 }
 0x323   : > { %1963 = vmatpush.bf16.msrb.mxu3 %v2698_v55  ;;  %v3056_v55 = vld [vmem:[%s4060_s11] ss:$0 sm:$0xff] }
 0x324   : > { %1925 = vmatpush.bf16.msrb.mxu0 %v2498_v61 }
 0x325   : > { %1938 = vmatpush.bf16.msrb.mxu1 %v2562_v62 }
 0x326   : > { %1951 = vmatpush.bf16.msrb.mxu2 %v2626_v63 }
 0x327   : > { %1964 = vmatpush.bf16.msrb.mxu3 %v2690_v0  ;;  %1926 = vmatmul.bf16.vlgmr.msrb.gmra.mxu0 %v3909_v24 }
 0x328   : > { %2106 = vmatpush.bf16.msra.mxu0 %v2957_v2  ;;  %1939 = vmatmul.bf16.vlgmr.msrb.gmra.mxu1 %v1473_v29 }
 0x329   : > { %1952 = vmatmul.bf16.vlgmr.msrb.gmra.mxu2 %v3907_v22  ;;  %2119 = vmatpush.bf16.msra.mxu1 %v2965_v11 }
 0x32a   : > { %1965 = vmatmul.bf16.vlgmr.msrb.gmra.mxu3 %v3911_v28 }
 0x32c   : > { %2107 = vmatpush.bf16.msra.mxu0 %v2956_v3 }
 0x32d   : > { %2120 = vmatpush.bf16.msra.mxu1 %v2964_v13 }
 0x330   : > { %2108 = vmatpush.bf16.msra.mxu0 %v2955_v4 }
 0x331   : > { %2121 = vmatpush.bf16.msra.mxu1 %v2963_v23 }
 0x334   : > { %2109 = vmatpush.bf16.msra.mxu0 %v2954_v5 }
 0x335   : > { %2122 = vmatpush.bf16.msra.mxu1 %v2962_v14 }
 0x338   : > { %2110 = vmatpush.bf16.msra.mxu0 %v2953_v6 }
 0x339   : > { %2123 = vmatpush.bf16.msra.mxu1 %v2961_v15 }
 0x33c   : > { %2111 = vmatpush.bf16.msra.mxu0 %v2952_v7 }
 0x33d   : > { %2124 = vmatpush.bf16.msra.mxu1 %v2960_v16 }
 0x340   : > { %2112 = vmatpush.bf16.msra.mxu0 %v2951_v10 }
 0x341   : > { %2125 = vmatpush.bf16.msra.mxu1 %v2959_v9 }
 0x344   : > { %2113 = vmatpush.bf16.msra.mxu0 %v2950_v12 }
 0x345   : > { %2126 = vmatpush.bf16.msra.mxu1 %v2958_v19 }
 0x38f   : > { %v1875_v18 = vpop.f32.mrf.mxu0 }
 0x390   : > { %v1876_v20 = vadd.f32 %v1875_v18, %v1542_v8 }
 0x393   : > { %v1888_v21 = vpop.f32.mrf.mxu1 }
 0x394   : > { %v1889_v22 = vadd.f32 %v1888_v21, %v1876_v20 }
 0x396   : > { %v1901_v24 = vpop.f32.mrf.mxu2 }
 0x397   : > { %v1902_v25 = vadd.f32 %v1901_v24, %v1889_v22  ;;  %v1914_v26 = vpop.f32.mrf.mxu3  ;;  %v1877_v27 = vpop.f32.mrf.mxu0 }
 0x399   : > { %v1915_v28 = vadd.f32 %v1914_v26, %v1902_v25 }
 0x39b   : > { %v1890_v29 = vpop.f32.mrf.mxu1  ;;  %v1970_v1 = vmax.f32 %v1915_v28, 0.0 }
 0x39d   : > { %v1972_v30 = vpack.c.bf16 %v1970_v1, %v1970_v1 }
 0x39e   : > { %v1903_v31 = vpop.f32.mrf.mxu2 }
 0x39f   : > { %2114 = vmatmul.bf16.vlgmr.msra.gmra.mxu0 %v1972_v30  ;;  %v1916_v34 = vpop.f32.mrf.mxu3 }
 0x3a4   : > { %v1927_v35 = vpop.f32.mrf.mxu0 }
 0x3a5   : > { %v1940_v38 = vpop.f32.mrf.mxu1  ;;  %v1928_v39 = vadd.f32 %v1927_v35, %v1543_v33 }
 0x3a7   : > { %v1941_v40 = vadd.f32 %v1940_v38, %v1928_v39 }
 0x3ac   : > { %v1953_v41 = vpop.f32.mrf.mxu2  ;;  %v1929_v44 = vpop.f32.mrf.mxu0 }
 0x3ad   : > { %v1966_v42 = vpop.f32.mrf.mxu3  ;;  %v1954_v43 = vadd.f32 %v1953_v41, %v1941_v40  ;;  %v1942_v36 = vpop.f32.mrf.mxu1 }
 0x3af   : > { %v1967_v37 = vadd.f32 %v1966_v42, %v1954_v43 }
 0x3b1   : > { %v1971_v45 = vmax.f32 %v1967_v37, 0.0 }
 0x3b3   : > { %v1973_v46 = vpack.c.bf16 %v1971_v45, %v1971_v45 }
 0x3b4   : > { %v1955_v47 = vpop.f32.mrf.mxu2 }
 0x3b5   : > { %v1968_v48 = vpop.f32.mrf.mxu3  ;;  %2127 = vmatmul.bf16.vlgmr.msra.gmra.mxu1 %v1973_v46 }
 0x41c   : > { %v2115_v32 = vpop.f32.mrf.mxu0 }
 0x41d   : > { %v2116_v52 = vadd.f32 %v3055_v51, %v2115_v32 }
 0x424   : > { %v2117_v50 = vpop.f32.mrf.mxu0 }
 0x432   : > { %v2128_v53 = vpop.f32.mrf.mxu1 }
 0x433   : > { %v2129_v54 = vadd.f32 %v2128_v53, %v2116_v52 }
 0x435   : > { %v2132_v56 = vmax.f32 %v2129_v54, 0.0 }
 0x437   : > { %v2137_v49 = vmul.f32 %v3056_v55, %v2132_v56 }
 0x439   : > { %v2138_v57 = vsel %vm1453_vm8, %v2137_v49, 0.0 }
 0x43a   : > { %v2130_v58 = vpop.f32.mrf.mxu1  ;;  %2139 = vadd.xlane.f32.xlu0 %v2138_v57 }
 0x4ad   : > { %v2140_v60 = vpop.xlane.xlu0 %2139 }
 0x4ae   : > { %v2143_v61 = vadd.f32 %v2142_v59, %v2140_v60 }
 0x4b0   : > { %2144 = vst [vmem:[%s4062_s13] sm:$0x3] %v2143_v61 }
 0x4b1 PF: > { %s25_s29 = sadd.s32 1, %s3063_s29  }
 0x4b2   : > { %p22_p8 = scmp.ge.s32.totalorder %s25_s29, 6  }
 0x4b4   :  { %24 = sbr.rel (!%p22_p8) target bundleno = 3 (0x3), region = 109 }

// kernel: reward_pallas.1
= control target key start
LH: loop header
LB: loop body
LE: loop exit
PB: predicated region body
PF: predicated region fallthrough
CT: control target
= control target key end

     0   :  { %s3142_s29 = smov 0   ;;  %s4049_s0 = inlined_call_operand.<no memory space> [shape: s32[1], index: 0, kind: input, shape index: {}]   ;;  %s4050_s1 = inlined_call_operand.vmem [shape: bf16[512,128], index: 1, kind: input, shape index: {}]   ;;  %s4051_s2 = inlined_call_operand.vmem [shape: bf16[512,512], index: 2, kind: input, shape index: {}]   ;;  %s4052_s3 = inlined_call_operand.vmem [shape: bf16[2,128,128], index: 3, kind: input, shape index: {}]   ;;  %s4053_s4 = inlined_call_operand.vmem [shape: f32[1,128], index: 4, kind: input, shape index: {}]   ;;  %s4054_s5 = inlined_call_operand.vmem [shape: bf16[128,512], index: 5, kind: input, shape index: {}]   ;;  %s4055_s6 = inlined_call_operand.vmem [shape: f32[1,512], index: 6, kind: input, shape index: {}]   ;;  %s4056_s7 = inlined_call_operand.vmem [shape: bf16[512,256], index: 7, kind: input, shape index: {}]   ;;  %s4057_s8 = inlined_call_operand.vmem [shape: f32[1,256], index: 8, kind: input, shape index: {}]   ;;  %s4058_s9 = inlined_call_operand.vmem [shape: bf16[256,128], index: 9, kind: input, shape index: {}]   ;;  %s4059_s10 = inlined_call_operand.vmem [shape: f32[1,128], index: 10, kind: input, shape index: {}]   ;;  %s4060_s11 = inlined_call_operand.vmem [shape: f32[1,128], index: 11, kind: input, shape index: {}]   ;;  %s4061_s12 = inlined_call_operand.<no memory space> [shape: f32[1,1], index: 12, kind: input, shape index: {}]   ;;  %s4062_s13 = inlined_call_operand.vmem [shape: f32[2,128], index: 13, kind: output, shape index: {}]  }
   0x1   :  { %18 = sst [smem:[#allocation5]] %s4049_s0 }
   0x2   :  { %19 = sst [smem:[#allocation6]] %s4061_s12 }
   0x3 LB: > { %s3148_s30 = sadd.s32 4294967295, %s3063_s29   ;;  %p2192_p0 = scmp.ge.s32.totalorder %s3063_s29, 1  ;;  %s3063_s29 = sphi %s3142_s29, %s25_s29  }
   0x4   : > { %p405_p1 = scmp.lt.s32.totalorder %s3063_s29, 5 }
   0x6   : > { %p406_p2 = pnand %p2192_p0, %p405_p1 }
   0x7   : > { %s456_s0 = sld [smem:[#allocation5]] (!%p406_p2)  ;;  %p2200_p5 = scmp.ne.s32.totalorder (!%p406_p2), %s3148_s30, 0 }
   0x8   : > { %409 = sbr.rel (%p406_p2) target bundleno = 1201 (0x4b1), region = 68 }
   0xd   : > { %s2193_s12 = sadd.s32 4294967295, %s456_s0 }
   0xe   : > { %p458_p3 = scmp.lt.s32.totalorder %s3148_s30, %s2193_s12 }
  0x10   : > { %s459_s14 = scalar_select %p458_p3, %s3148_s30, %s2193_s12 }
  0x12   : > { %s2194_s15 = sshll.u32 %s459_s14, 4 }
  0x13   : > { %p461_p4 = scmp.lt.s32.totalorder %s2194_s15, 63  ;;  %488 = sbr.rel (%p2200_p5) target bundleno = 379 (0x17b), region = 72 }
  0x15   : > { %s4064_s15 = smov (!%p461_p4, %s2194_s15), 63 }
  0x16   : > { %s2195_s16 = sshll.u32 %s4064_s15, 2  ;;  %s2813_s17 = sshll.u32 %s4064_s15, 4 }
  0x17   : > { %s3157_s20 = scalar_lea.vmem %s4050_s1, %s2195_s16  ;;  %s3162_s23 = scalar_lea.vmem %s4051_s2, %s2813_s17 }
  0x18   : > { %v3037_v0 = vld [vmem:[%s4052_s3 + $0x40] sm:$0xff]   ;;  %v3030_v3 = vld [vmem:[%s4052_s3 + $0x8] sm:$0xff]   ;;  %v3031_v17 = vld [vmem:[%s4052_s3 + $0x10] sm:$0xff]   ;;  %vm769_vm1 = vcmask 130112   ;;  %vm773_vm2 = vcmask 195712   ;;  %vm777_vm3 = vcmask 261312  }
  0x19   : > { %v3171_v1 = vld [vmem:[%s4053_s4] ss:$0 sm:$0xff]  ;;  %v3000_v2 = vunpack.c.l.bf16 %v3037_v0  ;;  %v2972_v5 = vunpack.c.l.bf16 %v3030_v3  ;;  %v3001_v10 = vunpack.c.h.bf16 %v3037_v0  ;;  %v2973_v11 = vunpack.c.h.bf16 %v3030_v3  ;;  %v3038_v16 = vld [vmem:[%s4052_s3 + $0x48] sm:$0xff]   ;;  %v3039_v24 = vld [vmem:[%s4052_s3 + $0x50] sm:$0xff]  }
  0x1a   : > { %v2967_v4 = vld [vmem:[%s4052_s3] sm:$0xff]   ;;  %v3005_v18 = vunpack.c.h.bf16 %v3038_v16  ;;  %v2976_v19 = vunpack.c.l.bf16 %v3031_v17  ;;  %v3004_v20 = vunpack.c.l.bf16 %v3038_v16  ;;  %v3008_v25 = vunpack.c.l.bf16 %v3039_v24  ;;  %v3032_v31 = vld [vmem:[%s4052_s3 + $0x18] sm:$0xff]   ;;  %v3034_v47 = vld [vmem:[%s4052_s3 + $0x28] sm:$0xff]  }
  0x1b   : > { %v2968_v6 = vunpack.c.l.bf16 %v2967_v4  ;;  %v578_v7 = vmul.f32 %v3171_v1, %v3000_v2  ;;  %v564_v8 = vmul.f32 %v3171_v1, %v2972_v5  ;;  %v2969_v12 = vunpack.c.h.bf16 %v2967_v4  ;;  %v3040_v32 = vld [vmem:[%s4052_s3 + $0x58] sm:$0xff]   ;;  %v3033_v39 = vld [vmem:[%s4052_s3 + $0x20] sm:$0xff]   ;;  %v3042_v54 = vld [vmem:[%s4052_s3 + $0x68] sm:$0xff]  }
  0x1c   : > { %v579_v13 = vmul.f32 %v3171_v1, %v3001_v10  ;;  %v565_v14 = vmul.f32 %v3171_v1, %v2973_v11  ;;  %v581_v21 = vmul.f32 %v3171_v1, %v3005_v18  ;;  %v566_v22 = vmul.f32 %v3171_v1, %v2976_v19  ;;  %v3041_v46 = vld [vmem:[%s4052_s3 + $0x60] sm:$0xff]   ;;  %v3035_v61 = vld [vmem:[%s4052_s3 + $0x30] sm:$0xff]  }
  0x1d   : > { %v562_v9 = vmul.f32 %v3171_v1, %v2968_v6  ;;  %626 = vadd.xlane.f32.xlu1 %v578_v7  ;;  %598 = vadd.xlane.f32.xlu2 %v564_v8  ;;  %v563_v15 = vmul.f32 %v3171_v1, %v2969_v12  ;;  %v580_v23 = vmul.f32 %v3171_v1, %v3004_v20  ;;  %v3009_v26 = vunpack.c.h.bf16 %v3039_v24  ;;  %v3043_v62 = vld [vmem:[%s4052_s3 + $0x70] sm:$0xff]   ;;  %v3036_v6 = vld [vmem:[%s4052_s3 + $0x38] sm:$0xff]  }
  0x1e   : > { %v2977_v27 = vunpack.c.h.bf16 %v3031_v17  ;;  %v582_v28 = vmul.f32 %v3171_v1, %v3008_v25  ;;  %v2981_v33 = vunpack.c.h.bf16 %v3032_v31  ;;  %v3012_v34 = vunpack.c.l.bf16 %v3040_v32 }
  0x1f   : > { %594 = vadd.xlane.f32.xlu0 %v562_v9  ;;  %v583_v29 = vmul.f32 %v3171_v1, %v3009_v26  ;;  %v2980_v35 = vunpack.c.l.bf16 %v3032_v31  ;;  %v2984_v40 = vunpack.c.l.bf16 %v3033_v39  ;;  %v2985_v41 = vunpack.c.h.bf16 %v3033_v39 }
  0x20   : > { %v567_v30 = vmul.f32 %v3171_v1, %v2977_v27  ;;  %v569_v36 = vmul.f32 %v3171_v1, %v2981_v33  ;;  %v584_v37 = vmul.f32 %v3171_v1, %v3012_v34  ;;  %v3013_v42 = vunpack.c.h.bf16 %v3040_v32 }
  0x21   : > { %v568_v38 = vmul.f32 %v3171_v1, %v2980_v35  ;;  %v570_v43 = vmul.f32 %v3171_v1, %v2984_v40  ;;  %v571_v44 = vmul.f32 %v3171_v1, %v2985_v41  ;;  %v3017_v48 = vunpack.c.h.bf16 %v3041_v46 }
  0x22   : > { %v585_v45 = vmul.f32 %v3171_v1, %v3013_v42  ;;  %v2988_v49 = vunpack.c.l.bf16 %v3034_v47  ;;  %v3016_v50 = vunpack.c.l.bf16 %v3041_v46  ;;  %v3020_v55 = vunpack.c.l.bf16 %v3042_v54 }
  0x23   : > { %v587_v51 = vmul.f32 %v3171_v1, %v3017_v48  ;;  %v3021_v56 = vunpack.c.h.bf16 %v3042_v54  ;;  %v2989_v57 = vunpack.c.h.bf16 %v3034_v47  ;;  %v2993_v63 = vunpack.c.h.bf16 %v3035_v61 }
  0x24   : > { %v572_v52 = vmul.f32 %v3171_v1, %v2988_v49  ;;  %v586_v53 = vmul.f32 %v3171_v1, %v3016_v50  ;;  %v588_v58 = vmul.f32 %v3171_v1, %v3020_v55  ;;  %v3024_v0 = vunpack.c.l.bf16 %v3043_v62 }
  0x25   : > { %628 = vadd.xlane.f32.xlu1 %v579_v13  ;;  %600 = vadd.xlane.f32.xlu2 %v565_v14  ;;  %v589_v59 = vmul.f32 %v3171_v1, %v3021_v56  ;;  %v573_v60 = vmul.f32 %v3171_v1, %v2989_v57  ;;  %v2992_v2 = vunpack.c.l.bf16 %v3035_v61  ;;  %v575_v3 = vmul.f32 %v3171_v1, %v2993_v63  ;;  %v3044_v13 = vld [vmem:[%s4052_s3 + $0x78] sm:$0xff]  }
  0x26   : > { %v590_v4 = vmul.f32 %v3171_v1, %v3024_v0  ;;  %v2996_v7 = vunpack.c.l.bf16 %v3036_v6  ;;  %v2997_v8 = vunpack.c.h.bf16 %v3036_v6  ;;  %v3025_v9 = vunpack.c.h.bf16 %v3043_v62 }
  0x27   : > { %596 = vadd.xlane.f32.xlu0 %v563_v15  ;;  %v574_v5 = vmul.f32 %v3171_v1, %v2992_v2  ;;  %v3029_v14 = vunpack.c.h.bf16 %v3044_v13  ;;  %v3028_v15 = vunpack.c.l.bf16 %v3044_v13  ;;  %v489_v18 = vlaneseq  ;;  %v2315_v2 = vld [vmem:[%s4054_s5 + $0xe0] sm:$0xf] }
  0x28   : > { %v576_v10 = vmul.f32 %v3171_v1, %v2996_v7  ;;  %v577_v11 = vmul.f32 %v3171_v1, %v2997_v8  ;;  %v591_v12 = vmul.f32 %v3171_v1, %v3025_v9  ;;  %v3065_v19 = vmov 0.0   ;;  %v2317_v9 = vld [vmem:[%s4054_s5 + $0xf0] sm:$0xf0] }
  0x29   : > { %v593_v16 = vmul.f32 %v3171_v1, %v3029_v14  ;;  %v592_v17 = vmul.f32 %v3171_v1, %v3028_v15  ;;  %vm491_vm0 = vcmp.lt.s32.totalorder %v489_v18, 512  ;;  %vm781_vm4 = vcmask 326912   ;;  %v2843_v14 = vld [vmem:[%s4054_s5 + $0xec] sm:$0xf]  ;;  %v2325_v15 = vld [vmem:[%s4054_s5 + $0xf8] sm:$0xf0] }
  0x2a   : > { %493 = vst.msk [vmem:[#allocation2] sm:$0xf] %vm491_vm0, %v3065_v19  ;;  %vm785_vm5 = vcmask 392512   ;;  %vm789_vm6 = vcmask 458112   ;;  %vm793_vm7 = vcmask 523712   ;;  %vm797_vm8 = vcmask 589312  }
  0x2b   : > { %vm801_vm9 = vcmask 654912   ;;  %vm805_vm10 = vcmask 720512   ;;  %vm809_vm11 = vcmask 786112   ;;  %vm813_vm12 = vcmask 851712  }
  0x2c   : > { %vm817_vm13 = vcmask 917312   ;;  %vm821_vm14 = vcmask 982912   ;;  %vm825_vm15 = vcmask 1048512   ;;  %vm858_vm0 = vcmask 1041409  }
  0x2d   : > { %632 = vadd.xlane.f32.xlu1 %v581_v21  ;;  %602 = vadd.xlane.f32.xlu2 %v566_v22 }
  0x2f   : > { %630 = vadd.xlane.f32.xlu0 %v580_v23  ;;  %v3250_v23 = vand.u32 127, %v489_v18 }
  0x31   : > { %v767_v26 = vadd.s32 4294967288, %v3250_v23  ;;  %v771_v1 = vadd.s32 4294967280, %v3250_v23  ;;  %v775_v33 = vadd.s32 4294967272, %v3250_v23  ;;  %v779_v62 = vadd.s32 4294967264, %v3250_v23 }
  0x32   : > { %v783_v63 = vadd.s32 4294967256, %v3250_v23 }
  0x35   : > { %634 = vadd.xlane.f32.xlu1 %v582_v28  ;;  %636 = vadd.xlane.f32.xlu2 %v583_v29 }
  0x37   : > { %604 = vadd.xlane.f32.xlu0 %v567_v30 }
  0x3d   : > { %608 = vadd.xlane.f32.xlu1 %v569_v36  ;;  %638 = vadd.xlane.f32.xlu2 %v584_v37 }
  0x3f   : > { %606 = vadd.xlane.f32.xlu0 %v568_v38 }
  0x45   : > { %610 = vadd.xlane.f32.xlu1 %v570_v43  ;;  %612 = vadd.xlane.f32.xlu2 %v571_v44 }
  0x47   : > { %640 = vadd.xlane.f32.xlu0 %v585_v45 }
  0x4d   : > { %644 = vadd.xlane.f32.xlu1 %v587_v51  ;;  %614 = vadd.xlane.f32.xlu2 %v572_v52 }
  0x4f   : > { %642 = vadd.xlane.f32.xlu0 %v586_v53 }
  0x55   : > { %646 = vadd.xlane.f32.xlu1 %v588_v58  ;;  %648 = vadd.xlane.f32.xlu2 %v589_v59 }
  0x57   : > { %616 = vadd.xlane.f32.xlu0 %v573_v60 }
  0x5d   : > { %620 = vadd.xlane.f32.xlu1 %v575_v3  ;;  %650 = vadd.xlane.f32.xlu2 %v590_v4  ;;  %v2844_v3 = vld [vmem:[%s4054_s5 + $0xec] sm:$0xf0]  ;;  %v2842_v4 = vld [vmem:[%s4054_s5 + $0xe4] sm:$0xf] }
  0x5e   : > { %v2320_v13 = vor.u32 %v2842_v4, %v2317_v9  ;;  %v2275_v4 = vld [vmem:[%s4054_s5 + $0x88] sm:$0xf]  ;;  %v3373_v9 = vadd.s32 4294967224, %v3250_v23 }
  0x5f   : > { %618 = vadd.xlane.f32.xlu0 %v574_v5 }
  0x60   : > { %1035 = vmatpush.bf16.msra.mxu1 %v2320_v13  ;;  %v2277_v13 = vld [vmem:[%s4054_s5 + $0x98] sm:$0xf0] }
  0x65   : > { %622 = vadd.xlane.f32.xlu1 %v576_v10  ;;  %624 = vadd.xlane.f32.xlu2 %v577_v11  ;;  %v2323_v10 = vld [vmem:[%s4054_s5 + $0xe8] sm:$0xf]  ;;  %v2845_v11 = vld [vmem:[%s4054_s5 + $0xf4] sm:$0xf0] }
  0x67   : > { %652 = vadd.xlane.f32.xlu0 %v591_v12  ;;  %v2316_v12 = vor.u32 %v2844_v3, %v2315_v2  ;;  %v2269_v3 = vld [vmem:[%s4054_s5 + $0x90] sm:$0xf0] }
  0x69   : > { %1022 = vmatpush.bf16.msra.mxu0 %v2316_v12  ;;  %v2831_v12 = vld [vmem:[%s4054_s5 + $0x8c] sm:$0xf] }
  0x6d   : > { %656 = vadd.xlane.f32.xlu1 %v593_v16 }
  0x6f   : > { %654 = vadd.xlane.f32.xlu0 %v592_v17 }
  0x90   : > { %v627_v20 = vpop.xlane.xlu1 %626  ;;  %v599_v21 = vpop.xlane.xlu2 %598 }
  0x92   : > { %v595_v22 = vpop.xlane.xlu0 %594 }
  0x98   : > { %v629_v24 = vpop.xlane.xlu1 %628  ;;  %v601_v27 = vpop.xlane.xlu2 %600 }
  0x99   : > { %v666_v25 = vpack.c.bf16 %v629_v24, %v627_v20  ;;  %v659_v29 = vpack.c.bf16 %v601_v27, %v599_v21  ;;  %v2324_v20 = vor.u32 %v2845_v11, %v2323_v10  ;;  %v2328_v21 = vor.u32 %v2843_v14, %v2325_v15  ;;  %v2840_v24 = vld [vmem:[%s4054_s5 + $0xcc] sm:$0xf0] }
  0x9a   : > { %v597_v28 = vpop.xlane.xlu0 %596 }
  0x9b   : > { %v658_v30 = vpack.c.bf16 %v597_v28, %v595_v22  ;;  %v748_v31 = vunpack.c.l.b16 %v666_v25  ;;  %v749_v32 = vunpack.c.h.b16 %v666_v25  ;;  %v734_v34 = vunpack.c.l.b16 %v659_v29  ;;  %v2299_v22 = vld [vmem:[%s4054_s5 + $0xc0] sm:$0xf]  ;;  %v2838_v25 = vld [vmem:[%s4054_s5 + $0xc4] sm:$0xf]  ;;  %1048 = vmatpush.bf16.msra.mxu2 %v2324_v20  ;;  %1061 = vmatpush.bf16.msra.mxu3 %v2328_v21 }
  0x9c   : > { %v735_v35 = vunpack.c.h.b16 %v659_v29  ;;  %v2300_v29 = vor.u32 %v2840_v24, %v2299_v22  ;;  %v2826_v20 = vld [vmem:[%s4054_s5 + $0x64] sm:$0xf] }
  0x9d   : > { %v732_v36 = vunpack.c.l.b16 %v658_v30  ;;  %v733_v37 = vunpack.c.h.b16 %v658_v30  ;;  %v827_v38 = vperm.slane %v748_v31, %v3250_v23  ;;  %v828_v39 = vperm.slane %v749_v32, %v767_v26  ;;  %v2307_v30 = vld [vmem:[%s4054_s5 + $0xc8] sm:$0xf]  ;;  %v2841_v31 = vld [vmem:[%s4054_s5 + $0xd4] sm:$0xf0] }
  0x9e   : > { %v772_v40 = vperm.slane %v734_v34, %v771_v1  ;;  %v776_v44 = vperm.slane %v735_v35, %v775_v33  ;;  %1023 = vmatpush.bf16.msra.mxu0 %v2300_v29 }
  0x9f   : > { %v766_v41 = vperm.slane %v732_v36, %v3250_v23  ;;  %v768_v42 = vperm.slane %v733_v37, %v767_v26  ;;  %v829_v43 = vsel %vm769_vm1, %v828_v39, %v827_v38  ;;  %v3312_v36 = vadd.s32 4294967248, %v3250_v23  ;;  %v2839_v38 = vld [vmem:[%s4054_s5 + $0xcc] sm:$0xf]  ;;  %v2309_v39 = vld [vmem:[%s4054_s5 + $0xd8] sm:$0xf0] }
  0xa0   : > { %v633_v46 = vpop.xlane.xlu1 %632  ;;  %v603_v48 = vpop.xlane.xlu2 %602  ;;  %v3315_v37 = vadd.s32 4294967240, %v3250_v23 }
  0xa1   : > { %v770_v45 = vsel %vm769_vm1, %v768_v42, %v766_v41  ;;  %v2308_v42 = vor.u32 %v2841_v31, %v2307_v30  ;;  %v2827_v30 = vld [vmem:[%s4054_s5 + $0x6c] sm:$0xf]  ;;  %v2261_v31 = vld [vmem:[%s4054_s5 + $0x78] sm:$0xf0]  ;;  %vm1081_vm1 = vcmask 1041408  }
  0xa2   : > { %v774_v47 = vsel %vm773_vm2, %v772_v40, %v770_v45  ;;  %v631_v49 = vpop.xlane.xlu0 %630  ;;  %v2836_v45 = vld [vmem:[%s4054_s5 + $0xac] sm:$0xf0] }
  0xa3   : > { %v667_v50 = vpack.c.bf16 %v633_v46, %v631_v49  ;;  %v778_v51 = vsel %vm777_vm3, %v776_v44, %v774_v47  ;;  %v2283_v44 = vld [vmem:[%s4054_s5 + $0xa0] sm:$0xf]  ;;  %v2834_v46 = vld [vmem:[%s4054_s5 + $0xa4] sm:$0xf]  ;;  %v2285_v49 = vld [vmem:[%s4054_s5 + $0xb0] sm:$0xf0]  ;;  %1049 = vmatpush.bf16.msra.mxu2 %v2308_v42 }
  0xa4   : > { %v2824_v42 = vld [vmem:[%s4054_s5 + $0x4c] sm:$0xf0] }
  0xa5   : > { %v750_v52 = vunpack.c.l.b16 %v667_v50  ;;  %v751_v53 = vunpack.c.h.b16 %v667_v50  ;;  %v2291_v50 = vld [vmem:[%s4054_s5 + $0xa8] sm:$0xf] }
  0xa7   : > { %v830_v54 = vperm.slane %v750_v52, %v771_v1  ;;  %v832_v55 = vperm.slane %v751_v53, %v775_v33  ;;  %v2301_v1 = vld [vmem:[%s4054_s5 + $0xd0] sm:$0xf0]  ;;  %v2288_v52 = vor.u32 %v2834_v46, %v2285_v49  ;;  %v2837_v53 = vld [vmem:[%s4054_s5 + $0xb4] sm:$0xf0] }
  0xa8   : > { %v635_v57 = vpop.xlane.xlu1 %634  ;;  %v637_v59 = vpop.xlane.xlu2 %636  ;;  %v2304_v41 = vor.u32 %v2838_v25, %v2301_v1  ;;  %v2237_v46 = vld [vmem:[%s4054_s5 + $0x50] sm:$0xf0] }
  0xa9   : > { %v831_v56 = vsel %vm773_vm2, %v830_v54, %v829_v43  ;;  %v668_v61 = vpack.c.bf16 %v637_v59, %v635_v57  ;;  %v2312_v43 = vor.u32 %v2839_v38, %v2309_v39  ;;  %v2835_v54 = vld [vmem:[%s4054_s5 + $0xac] sm:$0xf]  ;;  %vm1083_vm2 = vcmask 1045508  }
  0xaa   : > { %v833_v58 = vsel %vm777_vm3, %v832_v55, %v831_v56  ;;  %v605_v60 = vpop.xlane.xlu0 %604  ;;  %1036 = vmatpush.bf16.msra.mxu1 %v2304_v41  ;;  %v2293_v55 = vld [vmem:[%s4054_s5 + $0xb8] sm:$0xf0]  ;;  %v2235_v41 = vld [vmem:[%s4054_s5 + $0x40] sm:$0xf]  ;;  %vm1085_vm3 = vcmask 1043456  }
  0xab   : > { %v660_v0 = vpack.c.bf16 %v605_v60, %v603_v48  ;;  %v752_v5 = vunpack.c.l.b16 %v668_v61  ;;  %v753_v6 = vunpack.c.h.b16 %v668_v61  ;;  %1062 = vmatpush.bf16.msra.mxu3 %v2312_v43  ;;  %v2296_v59 = vor.u32 %v2835_v54, %v2293_v55  ;;  %v2267_v60 = vld [vmem:[%s4054_s5 + $0x80] sm:$0xf]  ;;  %v2832_v61 = vld [vmem:[%s4054_s5 + $0x8c] sm:$0xf0]  ;;  %v2822_v43 = vld [vmem:[%s4054_s5 + $0x44] sm:$0xf] }
  0xac   : > { %v2268_v2 = vor.u32 %v2832_v61, %v2267_v60  ;;  %v2245_v54 = vld [vmem:[%s4054_s5 + $0x58] sm:$0xf0]  ;;  %v2818_v60 = vld [vmem:[%s4054_s5 + $0x24] sm:$0xf] }
  0xad   : > { %v736_v7 = vunpack.c.l.b16 %v660_v0  ;;  %v737_v8 = vunpack.c.h.b16 %v660_v0  ;;  %v834_v16 = vperm.slane %v752_v5, %v779_v62  ;;  %v836_v17 = vperm.slane %v753_v6, %v783_v63  ;;  %v2833_v5 = vld [vmem:[%s4054_s5 + $0x94] sm:$0xf0] }
  0xae   : > { %1037 = vmatpush.bf16.msra.mxu1 %v2288_v52  ;;  %v2240_v52 = vor.u32 %v2822_v43, %v2237_v46 }
  0xaf   : > { %v780_v18 = vperm.slane %v736_v7, %v779_v62  ;;  %v784_v19 = vperm.slane %v737_v8, %v783_v63  ;;  %v835_v26 = vsel %vm781_vm4, %v834_v16, %v833_v58  ;;  %v2292_v58 = vor.u32 %v2837_v53, %v2291_v50  ;;  %v2830_v62 = vld [vmem:[%s4054_s5 + $0x84] sm:$0xf]  ;;  %1063 = vmatpush.bf16.msra.mxu3 %v2296_v59  ;;  %v2823_v53 = vld [vmem:[%s4054_s5 + $0x4c] sm:$0xf]  ;;  %v2820_v59 = vld [vmem:[%s4054_s5 + $0x2c] sm:$0xf0] }
  0xb0   : > { %v609_v28 = vpop.xlane.xlu1 %608  ;;  %v3308_v32 = vsel %vm785_vm5, %v836_v17, %v835_v26  ;;  %v639_v34 = vpop.xlane.xlu2 %638  ;;  %v3370_v8 = vadd.s32 4294967232, %v3250_v23  ;;  %v2272_v11 = vor.u32 %v2830_v62, %v2269_v3  ;;  %v2276_v16 = vor.u32 %v2833_v5, %v2275_v4  ;;  %v2253_v26 = vld [vmem:[%s4054_s5 + $0x70] sm:$0xf0]  ;;  %v2821_v3 = vld [vmem:[%s4054_s5 + $0x34] sm:$0xf0] }
  0xb1   : > { %v782_v27 = vsel %vm781_vm4, %v780_v18, %v778_v51  ;;  %v2284_v51 = vor.u32 %v2836_v45, %v2283_v44  ;;  %1050 = vmatpush.bf16.msra.mxu2 %v2292_v58  ;;  %v2280_v17 = vor.u32 %v2831_v12, %v2277_v13  ;;  %v2251_v18 = vld [vmem:[%s4054_s5 + $0x60] sm:$0xf]  ;;  %v2256_v1 = vor.u32 %v2826_v20, %v2253_v26 }
  0xb2   : > { %v786_v33 = vsel %vm785_vm5, %v784_v19, %v782_v27  ;;  %v607_v35 = vpop.xlane.xlu0 %606  ;;  %v2828_v19 = vld [vmem:[%s4054_s5 + $0x6c] sm:$0xf0]  ;;  %1038 = vmatpush.bf16.msra.mxu1 %v2272_v11  ;;  %v2259_v27 = vld [vmem:[%s4054_s5 + $0x68] sm:$0xf]  ;;  %v2236_v45 = vor.u32 %v2824_v42, %v2235_v41  ;;  %v2219_v58 = vld [vmem:[%s4054_s5 + $0x20] sm:$0xf] }
  0xb3   : > { %v661_v40 = vpack.c.bf16 %v609_v28, %v607_v35  ;;  %1024 = vmatpush.bf16.msra.mxu0 %v2284_v51  ;;  %v2829_v28 = vld [vmem:[%s4054_s5 + $0x74] sm:$0xf0]  ;;  %1064 = vmatpush.bf16.msra.mxu3 %v2280_v17  ;;  %v2252_v29 = vor.u32 %v2828_v19, %v2251_v18  ;;  %v2203_v13 = vld [vmem:[%s4054_s5] sm:$0xf]  ;;  %v2211_v18 = vld [vmem:[%s4054_s5 + $0x8] sm:$0xf] }
  0xb4   : > { %v2260_v39 = vor.u32 %v2829_v28, %v2259_v27  ;;  %v2817_v19 = vld [vmem:[%s4054_s5 + $0x14] sm:$0xf0]  ;;  %v2815_v27 = vld [vmem:[%s4054_s5 + $0xc] sm:$0xf]  ;;  %v2213_v28 = vld [vmem:[%s4054_s5 + $0x18] sm:$0xf0] }
  0xb5   : > { %v738_v47 = vunpack.c.l.b16 %v661_v40  ;;  %v739_v48 = vunpack.c.h.b16 %v661_v40  ;;  %1051 = vmatpush.bf16.msra.mxu2 %v2276_v16  ;;  %v2264_v40 = vor.u32 %v2827_v30, %v2261_v31  ;;  %v2212_v26 = vor.u32 %v2817_v19, %v2211_v18 }
  0xb6   : > { %1039 = vmatpush.bf16.msra.mxu1 %v2256_v1  ;;  %v807_v1 = vadd.s32 4294967208, %v3250_v23  ;;  %v2216_v31 = vor.u32 %v2815_v27, %v2213_v28 }
  0xb7   : > { %v788_v56 = vperm.slane %v738_v47, %v3312_v36  ;;  %v792_v57 = vperm.slane %v739_v48, %v3315_v37  ;;  %1025 = vmatpush.bf16.msra.mxu0 %v2268_v2  ;;  %v2243_v47 = vld [vmem:[%s4054_s5 + $0x48] sm:$0xf]  ;;  %v2825_v48 = vld [vmem:[%s4054_s5 + $0x54] sm:$0xf0]  ;;  %1065 = vmatpush.bf16.msra.mxu3 %v2264_v40 }
  0xb8   : > { %v611_v0 = vpop.xlane.xlu1 %610  ;;  %v613_v7 = vpop.xlane.xlu2 %612  ;;  %v2227_v2 = vld [vmem:[%s4054_s5 + $0x28] sm:$0xf] }
  0xb9   : > { %v790_v63 = vsel %vm789_vm6, %v788_v56, %v786_v33  ;;  %v662_v14 = vpack.c.bf16 %v613_v7, %v611_v0  ;;  %1052 = vmatpush.bf16.msra.mxu2 %v2260_v39  ;;  %v2244_v56 = vor.u32 %v2825_v48, %v2243_v47  ;;  %v2221_v0 = vld [vmem:[%s4054_s5 + $0x30] sm:$0xf0]  ;;  %v2228_v5 = vor.u32 %v2821_v3, %v2227_v2  ;;  %v2229_v7 = vld [vmem:[%s4054_s5 + $0x38] sm:$0xf0] }
  0xba   : > { %v794_v6 = vsel %vm793_vm7, %v792_v57, %v790_v63  ;;  %v641_v10 = vpop.xlane.xlu0 %640  ;;  %v2248_v57 = vor.u32 %v2823_v53, %v2245_v54  ;;  %1040 = vmatpush.bf16.msra.mxu1 %v2240_v52  ;;  %v2220_v63 = vor.u32 %v2820_v59, %v2219_v58  ;;  %v2224_v4 = vor.u32 %v2818_v60, %v2221_v0 }
  0xbb   : > { %v669_v15 = vpack.c.bf16 %v641_v10, %v639_v34  ;;  %v740_v21 = vunpack.c.l.b16 %v662_v14  ;;  %v741_v22 = vunpack.c.h.b16 %v662_v14  ;;  %1026 = vmatpush.bf16.msra.mxu0 %v2252_v29  ;;  %v2816_v14 = vld [vmem:[%s4054_s5 + $0xc] sm:$0xf0]  ;;  %v819_v60 = vadd.s32 4294967184, %v3250_v23 }
  0xbc   : > { %1066 = vmatpush.bf16.msra.mxu3 %v2248_v57 }
  0xbd   : > { %v754_v24 = vunpack.c.l.b16 %v669_v15  ;;  %v755_v25 = vunpack.c.h.b16 %v669_v15  ;;  %v796_v33 = vperm.slane %v740_v21, %v3370_v8  ;;  %v800_v34 = vperm.slane %v741_v22, %v3373_v9  ;;  %1053 = vmatpush.bf16.msra.mxu2 %v2244_v56  ;;  %v2814_v15 = vld [vmem:[%s4054_s5 + $0x4] sm:$0xf] }
  0xbe   : > { %1041 = vmatpush.bf16.msra.mxu1 %v2224_v4  ;;  %v803_v22 = vadd.s32 4294967216, %v3250_v23 }
  0xbf   : > { %v838_v35 = vperm.slane %v754_v24, %v3312_v36  ;;  %v840_v38 = vperm.slane %v755_v25, %v3315_v37  ;;  %v798_v44 = vsel %vm797_vm8, %v796_v33, %v794_v6  ;;  %1027 = vmatpush.bf16.msra.mxu0 %v2236_v45  ;;  %v2819_v6 = vld [vmem:[%s4054_s5 + $0x2c] sm:$0xf] }
  0xc0   : > { %v645_v37 = vpop.xlane.xlu1 %644  ;;  %v3431_v49 = vsel %vm801_vm9, %v800_v34, %v798_v44  ;;  %v615_v50 = vpop.xlane.xlu2 %614  ;;  %v2232_v12 = vor.u32 %v2819_v6, %v2229_v7 }
  0xc1   : > { %v839_v36 = vsel %vm789_vm6, %v838_v35, %v3308_v32  ;;  %1054 = vmatpush.bf16.msra.mxu2 %v2228_v5 }
  0xc2   : > { %v841_v32 = vsel %vm793_vm7, %v840_v38, %v839_v36  ;;  %v643_v51 = vpop.xlane.xlu0 %642  ;;  %1067 = vmatpush.bf16.msra.mxu3 %v2232_v12 }
  0xc3   : > { %v670_v55 = vpack.c.bf16 %v645_v37, %v643_v51  ;;  %1028 = vmatpush.bf16.msra.mxu0 %v2220_v63 }
  0xc5   : > { %v756_v61 = vunpack.c.l.b16 %v670_v55  ;;  %v757_v62 = vunpack.c.h.b16 %v670_v55  ;;  %1055 = vmatpush.bf16.msra.mxu2 %v2212_v26 }
  0xc6   : > { %1068 = vmatpush.bf16.msra.mxu3 %v2216_v31 }
  0xc7   : > { %v842_v10 = vperm.slane %v756_v61, %v3370_v8  ;;  %v844_v11 = vperm.slane %v757_v62, %v3373_v9  ;;  %v2204_v8 = vor.u32 %v2816_v14, %v2203_v13  ;;  %v2205_v9 = vld [vmem:[%s4054_s5 + $0x10] sm:$0xf0]  ;;  %v823_v61 = vadd.s32 4294967176, %v3250_v23 }
  0xc8   : > { %v647_v17 = vpop.xlane.xlu1 %646  ;;  %v649_v21 = vpop.xlane.xlu2 %648  ;;  %v2208_v25 = vor.u32 %v2814_v15, %v2205_v9 }
  0xc9   : > { %v843_v16 = vsel %vm797_vm8, %v842_v10, %v841_v32  ;;  %v671_v29 = vpack.c.bf16 %v649_v21, %v647_v17  ;;  %1029 = vmatpush.bf16.msra.mxu0 %v2204_v8  ;;  %v811_v32 = vadd.s32 4294967200, %v3250_v23 }
  0xca   : > { %v845_v20 = vsel %vm801_vm9, %v844_v11, %v843_v16  ;;  %v617_v24 = vpop.xlane.xlu0 %616  ;;  %1042 = vmatpush.bf16.msra.mxu1 %v2208_v25 }
  0xcb   : > { %v663_v30 = vpack.c.bf16 %v617_v24, %v615_v50  ;;  %v758_v33 = vunpack.c.l.b16 %v671_v29  ;;  %v759_v34 = vunpack.c.h.b16 %v671_v29  ;;  %v815_v50 = vadd.s32 4294967192, %v3250_v23 }
  0xcd   : > { %v742_v35 = vunpack.c.l.b16 %v663_v30  ;;  %v743_v38 = vunpack.c.h.b16 %v663_v30  ;;  %v846_v39 = vperm.slane %v758_v33, %v803_v22  ;;  %v848_v40 = vperm.slane %v759_v34, %v807_v1 }
  0xcf   : > { %v804_v41 = vperm.slane %v742_v35, %v803_v22  ;;  %v808_v42 = vperm.slane %v743_v38, %v807_v1  ;;  %v847_v43 = vsel %vm805_vm10, %v846_v39, %v845_v20  ;;  %v706_v22 = vld [vmem:[%s4055_s6] sm:$0xf] }
  0xd0   : > { %v621_v36 = vpop.xlane.xlu1 %620  ;;  %v849_v37 = vsel %vm809_vm11, %v848_v40, %v847_v43  ;;  %v651_v46 = vpop.xlane.xlu2 %650  ;;  %v709_v25 = vperm.slane %v706_v22, 1  ;;  %v710_v28 = vperm.slane %v706_v22, 2  ;;  %v711_v29 = vperm.slane %v706_v22, 3 }
  0xd1   : > { %v806_v44 = vsel %vm805_vm10, %v804_v41, %v3431_v49  ;;  %v708_v1 = vperm.slane %v706_v22, 0 }
  0xd2   : > { %v810_v45 = vsel %vm809_vm11, %v808_v42, %v806_v44  ;;  %v619_v47 = vpop.xlane.xlu0 %618 }
  0xd3   : > { %v664_v48 = vpack.c.bf16 %v621_v36, %v619_v47 }
  0xd5   : > { %v744_v51 = vunpack.c.l.b16 %v664_v48  ;;  %v745_v52 = vunpack.c.h.b16 %v664_v48 }
  0xd7   : > { %v812_v53 = vperm.slane %v744_v51, %v811_v32  ;;  %v816_v54 = vperm.slane %v745_v52, %v815_v50 }
  0xd8   : > { %v623_v56 = vpop.xlane.xlu1 %622  ;;  %v625_v57 = vpop.xlane.xlu2 %624 }
  0xd9   : > { %v814_v55 = vsel %vm813_vm12, %v812_v53, %v810_v45  ;;  %v665_v59 = vpack.c.bf16 %v625_v57, %v623_v56 }
  0xda   : > { %v818_v49 = vsel %vm817_vm13, %v816_v54, %v814_v55  ;;  %v653_v58 = vpop.xlane.xlu0 %652 }
  0xdb   : > { %v672_v62 = vpack.c.bf16 %v653_v58, %v651_v46  ;;  %v746_v63 = vunpack.c.l.b16 %v665_v59  ;;  %v747_v0 = vunpack.c.h.b16 %v665_v59 }
  0xdd   : > { %v760_v2 = vunpack.c.l.b16 %v672_v62  ;;  %v761_v3 = vunpack.c.h.b16 %v672_v62  ;;  %v820_v4 = vperm.slane %v746_v63, %v819_v60  ;;  %v824_v5 = vperm.slane %v747_v0, %v823_v61 }
  0xdf   : > { %v850_v6 = vperm.slane %v760_v2, %v811_v32  ;;  %v852_v7 = vperm.slane %v761_v3, %v815_v50  ;;  %v822_v10 = vsel %vm821_vm14, %v820_v4, %v818_v49 }
  0xe0   : > { %v657_v12 = vpop.xlane.xlu1 %656  ;;  %v826_v13 = vsel %vm825_vm15, %v824_v5, %v822_v10 }
  0xe1   : > { %v851_v11 = vsel %vm813_vm12, %v850_v6, %v849_v37 }
  0xe2   : > { %v853_v23 = vsel %vm817_vm13, %v852_v7, %v851_v11  ;;  %v655_v14 = vpop.xlane.xlu0 %654 }
  0xe3   : > { %v673_v15 = vpack.c.bf16 %v657_v12, %v655_v14 }
  0xe5   : > { %v762_v16 = vunpack.c.l.b16 %v673_v15  ;;  %v763_v17 = vunpack.c.h.b16 %v673_v15 }
  0xe7   : > { %v854_v8 = vperm.slane %v762_v16, %v819_v60  ;;  %v856_v9 = vperm.slane %v763_v17, %v823_v61 }
  0xe9   : > { %v855_v18 = vsel %vm821_vm14, %v854_v8, %v853_v23 }
  0xea   : > { %v857_v19 = vsel %vm825_vm15, %v856_v9, %v855_v18 }
  0xeb   : > { %v859_v20 = vsel %vm858_vm0, %v857_v19, %v826_v13 }
  0xec   : > { %v860_v21 = vpack.c.b16 %v859_v20, %v859_v20 }
  0xee   : > { %1030 = vmatmul.bf16.vlgmr.msra.gmra.mxu0 %v860_v21  ;;  %1043 = vmatmul.bf16.vlgmr.msra.gmra.mxu1 %v860_v21 }
  0xef   : > { %1056 = vmatmul.bf16.vlgmr.msra.gmra.mxu2 %v860_v21  ;;  %1069 = vmatmul.bf16.vlgmr.msra.gmra.mxu3 %v860_v21 }
 0x16b   : > { %v1031_v24 = vpop.f32.mrf.mxu0  ;;  %v1044_v26 = vpop.f32.mrf.mxu1 }
 0x16c   : > { %v1045_v27 = vadd.f32 %v1044_v26, %v709_v25  ;;  %v1032_v40 = vadd.f32 %v1031_v24, %v708_v1 }
 0x16e   : > { %v1078_v33 = vrot.slane %v1045_v27, 6 }
 0x170   : > { %v1082_v43 = vsel %vm1081_vm1, %v1032_v40, %v1078_v33 }
 0x172   : > { %v1057_v30 = vpop.f32.mrf.mxu2  ;;  %v1070_v31 = vpop.f32.mrf.mxu3 }
 0x173   : > { %v1058_v34 = vadd.f32 %v1057_v30, %v710_v28  ;;  %v1071_v35 = vadd.f32 %v1070_v31, %v711_v29  ;;  %v1033_v38 = vpop.f32.mrf.mxu0  ;;  %v1046_v39 = vpop.f32.mrf.mxu1 }
 0x175   : > { %v1079_v41 = vrot.slane %v1058_v34, 4  ;;  %v1080_v42 = vrot.slane %v1071_v35, 2 }
 0x177   : > { %v1084_v44 = vsel %vm1083_vm2, %v1079_v41, %v1080_v42 }
 0x178   : > { %v1086_v36 = vsel %vm1085_vm3, %v1082_v43, %v1084_v44 }
 0x179   : > { %1088 = vst [vmem:[#allocation3] sm:$0xff] %v1086_v36 }
 0x17a   : > { %v1059_v37 = vpop.f32.mrf.mxu2  ;;  %v1072_v45 = vpop.f32.mrf.mxu3 }
 0x17b PF: > { %s1089_s22 = sld [smem:[#allocation5]] }
 0x181   : > { %p2329_p6 = scmp.ge.s32.totalorder %s3148_s30, %s1089_s22 }
 0x183   : > { %1093 = sbr.rel (%p2329_p6) target bundleno = 734 (0x2de), region = 76 }
 0x188   : > { %v2853_v46 = vld [vmem:[%s3157_s20 + $0x38] sm:$0xff]  ;;  %v2852_v47 = vld [vmem:[%s3157_s20 + $0x30] sm:$0xff]  ;;  %v2851_v48 = vld [vmem:[%s3157_s20 + $0x28] sm:$0xff]  ;;  %vm1426_vm4 = vcmask 1040384   ;;  %vm1428_vm5 = vcmask 1042434   ;;  %vm1430_vm6 = vcmask 1041408  }
 0x189   : > { %1160 = vmatpush.bf16.xpose.msra.mxu0 %v2853_v46  ;;  %v2850_v32 = vld [vmem:[%s3157_s20 + $0x20] sm:$0xff]  ;;  %v2849_v50 = vld [vmem:[%s3157_s20 + $0x18] sm:$0xff]  ;;  %v2884_v52 = vld [vmem:[%s3162_s23 + $0xec] sm:$0xf0] }
 0x18a   : > { %v2476_v51 = vld [vmem:[%s3162_s23 + $0xe0] sm:$0xf]  ;;  %v2880_v55 = vld [vmem:[%s3162_s23 + $0xcc] sm:$0xf0]  ;;  %v2882_v56 = vld [vmem:[%s3162_s23 + $0xe4] sm:$0xf] }
 0x18b   : > { %v2460_v53 = vld [vmem:[%s3162_s23 + $0xc0] sm:$0xf]  ;;  %v2477_v54 = vor.u32 %v2884_v52, %v2476_v51  ;;  %v2848_v49 = vld [vmem:[%s3157_s20 + $0x10] sm:$0xff]  ;;  %v2484_v59 = vld [vmem:[%s3162_s23 + $0xe8] sm:$0xf] }
 0x18c   : > { %v2461_v57 = vor.u32 %v2880_v55, %v2460_v53  ;;  %v2478_v58 = vld [vmem:[%s3162_s23 + $0xf0] sm:$0xf0]  ;;  %v2885_v60 = vld [vmem:[%s3162_s23 + $0xf4] sm:$0xf0]  ;;  %v2444_v61 = vld [vmem:[%s3162_s23 + $0xa0] sm:$0xf] }
 0x18d   : > { %1367 = vmatpush.bf16.msra.mxu1 %v2477_v54  ;;  %v2876_v62 = vld [vmem:[%s3162_s23 + $0xac] sm:$0xf0]  ;;  %v2481_v63 = vor.u32 %v2882_v56, %v2478_v58  ;;  %v2485_v0 = vor.u32 %v2885_v60, %v2484_v59  ;;  %v2878_v2 = vld [vmem:[%s3162_s23 + $0xc4] sm:$0xf]  ;;  %v2462_v3 = vld [vmem:[%s3162_s23 + $0xd0] sm:$0xf0] }
 0x18e   : > { %v2468_v4 = vld [vmem:[%s3162_s23 + $0xc8] sm:$0xf]  ;;  %v2881_v5 = vld [vmem:[%s3162_s23 + $0xd4] sm:$0xf0]  ;;  %v2465_v6 = vor.u32 %v2878_v2, %v2462_v3  ;;  %v2874_v10 = vld [vmem:[%s3162_s23 + $0xa4] sm:$0xf]  ;;  %v2445_v11 = vor.u32 %v2876_v62, %v2444_v61 }
 0x18f   : > { %1380 = vmatpush.bf16.msra.mxu2 %v2481_v63  ;;  %1393 = vmatpush.bf16.msra.mxu3 %v2485_v0  ;;  %v2469_v7 = vor.u32 %v2881_v5, %v2468_v4  ;;  %v2446_v12 = vld [vmem:[%s3162_s23 + $0xb0] sm:$0xf0]  ;;  %v2452_v13 = vld [vmem:[%s3162_s23 + $0xa8] sm:$0xf]  ;;  %v2877_v23 = vld [vmem:[%s3162_s23 + $0xb4] sm:$0xf0] }
 0x190   : > { %v2428_v14 = vld [vmem:[%s3162_s23 + $0x80] sm:$0xf]  ;;  %v2872_v15 = vld [vmem:[%s3162_s23 + $0x8c] sm:$0xf0]  ;;  %v2449_v16 = vor.u32 %v2874_v10, %v2446_v12  ;;  %v2453_v17 = vor.u32 %v2877_v23, %v2452_v13  ;;  %v2870_v8 = vld [vmem:[%s3162_s23 + $0x84] sm:$0xf] }
 0x191   : > { %1161 = vmatpush.bf16.xpose.msra.mxu0 %v2852_v47  ;;  %1368 = vmatpush.bf16.msra.mxu1 %v2461_v57  ;;  %v2429_v9 = vor.u32 %v2872_v15, %v2428_v14  ;;  %v2430_v18 = vld [vmem:[%s3162_s23 + $0x90] sm:$0xf0]  ;;  %v2436_v19 = vld [vmem:[%s3162_s23 + $0x88] sm:$0xf]  ;;  %v2873_v20 = vld [vmem:[%s3162_s23 + $0x94] sm:$0xf0] }
 0x192   : > { %v2412_v21 = vld [vmem:[%s3162_s23 + $0x60] sm:$0xf]  ;;  %v2868_v22 = vld [vmem:[%s3162_s23 + $0x6c] sm:$0xf0]  ;;  %v2847_v24 = vld [vmem:[%s3157_s20 + $0x8] sm:$0xff]  ;;  %v2433_v25 = vor.u32 %v2870_v8, %v2430_v18  ;;  %v2437_v26 = vor.u32 %v2873_v20, %v2436_v19 }
 0x193   : > { %1381 = vmatpush.bf16.msra.mxu2 %v2465_v6  ;;  %1394 = vmatpush.bf16.msra.mxu3 %v2469_v7  ;;  %v2866_v27 = vld [vmem:[%s3162_s23 + $0x64] sm:$0xf]  ;;  %v2413_v28 = vor.u32 %v2868_v22, %v2412_v21  ;;  %v2414_v29 = vld [vmem:[%s3162_s23 + $0x70] sm:$0xf0]  ;;  %v2420_v1 = vld [vmem:[%s3162_s23 + $0x68] sm:$0xf] }
 0x194   : > { %v2869_v30 = vld [vmem:[%s3162_s23 + $0x74] sm:$0xf0]  ;;  %v2396_v31 = vld [vmem:[%s3162_s23 + $0x40] sm:$0xf]  ;;  %v2864_v33 = vld [vmem:[%s3162_s23 + $0x4c] sm:$0xf0]  ;;  %v2417_v34 = vor.u32 %v2866_v27, %v2414_v29 }
 0x195   : > { %1369 = vmatpush.bf16.msra.mxu1 %v2445_v11  ;;  %v2421_v35 = vor.u32 %v2869_v30, %v2420_v1  ;;  %v2862_v38 = vld [vmem:[%s3162_s23 + $0x44] sm:$0xf]  ;;  %v2397_v39 = vor.u32 %v2864_v33, %v2396_v31  ;;  %v2398_v40 = vld [vmem:[%s3162_s23 + $0x50] sm:$0xf0]  ;;  %v2404_v41 = vld [vmem:[%s3162_s23 + $0x48] sm:$0xf] }
 0x196   : > { %v2865_v42 = vld [vmem:[%s3162_s23 + $0x54] sm:$0xf0]  ;;  %v2380_v43 = vld [vmem:[%s3162_s23 + $0x20] sm:$0xf]  ;;  %v2860_v44 = vld [vmem:[%s3162_s23 + $0x2c] sm:$0xf0]  ;;  %v2401_v37 = vor.u32 %v2862_v38, %v2398_v40 }
 0x197   : > { %1382 = vmatpush.bf16.msra.mxu2 %v2449_v16  ;;  %1395 = vmatpush.bf16.msra.mxu3 %v2453_v17  ;;  %v2846_v36 = vld [vmem:[%s3157_s20] sm:$0xff]  ;;  %v2405_v45 = vor.u32 %v2865_v42, %v2404_v41  ;;  %v2381_v47 = vor.u32 %v2860_v44, %v2380_v43  ;;  %v2856_v52 = vld [vmem:[%s3162_s23 + $0xc] sm:$0xf0]  ;;  %v2883_v54 = vld [vmem:[%s3162_s23 + $0xec] sm:$0xf] }
 0x198   : > { %v2858_v46 = vld [vmem:[%s3162_s23 + $0x24] sm:$0xf]  ;;  %v2364_v51 = vld [vmem:[%s3162_s23] sm:$0xf]  ;;  %v2486_v55 = vld [vmem:[%s3162_s23 + $0xf8] sm:$0xf0] }
 0x199   : > { %1162 = vmatpush.bf16.xpose.msra.mxu0 %v2851_v48  ;;  %1370 = vmatpush.bf16.msra.mxu1 %v2429_v9  ;;  %v2382_v48 = vld [vmem:[%s3162_s23 + $0x30] sm:$0xf0]  ;;  %v1094_v53 = vld [vmem:[%s4053_s4] sm:$0x1]  ;;  %v2365_v57 = vor.u32 %v2856_v52, %v2364_v51  ;;  %v2489_v59 = vor.u32 %v2883_v54, %v2486_v55  ;;  %v2879_v60 = vld [vmem:[%s3162_s23 + $0xcc] sm:$0xf] }
 0x19a   : > { %v2385_v56 = vor.u32 %v2858_v46, %v2382_v48  ;;  %v1095_v58 = vpack.c.bf16 %v1094_v53, %v1094_v53  ;;  %v2470_v61 = vld [vmem:[%s3162_s23 + $0xd8] sm:$0xf0]  ;;  %v2875_v63 = vld [vmem:[%s3162_s23 + $0xac] sm:$0xf]  ;;  %v2854_v3 = vld [vmem:[%s3162_s23 + $0x4] sm:$0xf] }
 0x19b   : > { %1383 = vmatpush.bf16.msra.mxu2 %v2433_v25  ;;  %1396 = vmatpush.bf16.msra.mxu3 %v2437_v26  ;;  %v2473_v62 = vor.u32 %v2879_v60, %v2470_v61  ;;  %v2454_v0 = vld [vmem:[%s3162_s23 + $0xb8] sm:$0xf0]  ;;  %v2366_v4 = vld [vmem:[%s3162_s23 + $0x10] sm:$0xf0]  ;;  %v2372_v5 = vld [vmem:[%s3162_s23 + $0x8] sm:$0xf] }
 0x19c   : > { %v2457_v2 = vor.u32 %v2875_v63, %v2454_v0  ;;  %v2369_v6 = vor.u32 %v2854_v3, %v2366_v4  ;;  %v2857_v7 = vld [vmem:[%s3162_s23 + $0x14] sm:$0xf0]  ;;  %v2871_v10 = vld [vmem:[%s3162_s23 + $0x8c] sm:$0xf]  ;;  %v2438_v11 = vld [vmem:[%s3162_s23 + $0x98] sm:$0xf0] }
 0x19d   : > { %1371 = vmatpush.bf16.msra.mxu1 %v2413_v28  ;;  %v2373_v12 = vor.u32 %v2857_v7, %v2372_v5  ;;  %v2441_v13 = vor.u32 %v2871_v10, %v2438_v11  ;;  %v2867_v23 = vld [vmem:[%s3162_s23 + $0x6c] sm:$0xf]  ;;  %v2422_v14 = vld [vmem:[%s3162_s23 + $0x78] sm:$0xf0]  ;;  %v1173_v40 = vld [vmem:[#allocation2] sm:$0xf] }
 0x19e   : > { %v2425_v15 = vor.u32 %v2867_v23, %v2422_v14  ;;  %v2863_v16 = vld [vmem:[%s3162_s23 + $0x4c] sm:$0xf]  ;;  %v2406_v17 = vld [vmem:[%s3162_s23 + $0x58] sm:$0xf0] }
 0x19f   : > { %1384 = vmatpush.bf16.msra.mxu2 %v2417_v34  ;;  %1397 = vmatpush.bf16.msra.mxu3 %v2421_v35  ;;  %v2409_v8 = vor.u32 %v2863_v16, %v2406_v17  ;;  %v2859_v9 = vld [vmem:[%s3162_s23 + $0x2c] sm:$0xf]  ;;  %v2390_v18 = vld [vmem:[%s3162_s23 + $0x38] sm:$0xf0]  ;;  %v1434_v35 = vlaneseq }
 0x1a0   : > { %v2393_v19 = vor.u32 %v2859_v9, %v2390_v18  ;;  %v2855_v20 = vld [vmem:[%s3162_s23 + $0xc] sm:$0xf]  ;;  %v2374_v21 = vld [vmem:[%s3162_s23 + $0x18] sm:$0xf0] }
 0x1a1   : > { %1163 = vmatpush.bf16.xpose.msra.mxu0 %v2850_v32  ;;  %1372 = vmatpush.bf16.msra.mxu1 %v2397_v39  ;;  %v2388_v32 = vld [vmem:[%s3162_s23 + $0x28] sm:$0xf]  ;;  %v2377_v22 = vor.u32 %v2855_v20, %v2374_v21  ;;  %vm1436_vm7 = vcmp.lt.s32.totalorder %v1434_v35, 512 }
 0x1a3   : > { %1385 = vmatpush.bf16.msra.mxu2 %v2401_v37  ;;  %1398 = vmatpush.bf16.msra.mxu3 %v2405_v45 }
 0x1a5   : > { %1373 = vmatpush.bf16.msra.mxu1 %v2381_v47 }
 0x1a7   : > { %1386 = vmatpush.bf16.msra.mxu2 %v2385_v56 }
 0x1a9   : > { %1164 = vmatpush.bf16.xpose.msra.mxu0 %v2849_v50  ;;  %v2861_v50 = vld [vmem:[%s3162_s23 + $0x34] sm:$0xf0]  ;;  %1374 = vmatpush.bf16.msra.mxu1 %v2365_v57 }
 0x1ab   : > { %1387 = vmatpush.bf16.msra.mxu2 %v2369_v6 }
 0x1ad   : > { %1406 = vmatpush.bf16.msrb.mxu1 %v2489_v59 }
 0x1b1   : > { %1165 = vmatpush.bf16.xpose.msra.mxu0 %v2848_v49  ;;  %v2389_v49 = vor.u32 %v2861_v50, %v2388_v32  ;;  %1407 = vmatpush.bf16.msrb.mxu1 %v2473_v62 }
 0x1b3   : > { %1399 = vmatpush.bf16.msra.mxu3 %v2389_v49 }
 0x1b5   : > { %1408 = vmatpush.bf16.msrb.mxu1 %v2457_v2 }
 0x1b7   : > { %1400 = vmatpush.bf16.msra.mxu3 %v2373_v12 }
 0x1b9   : > { %1166 = vmatpush.bf16.xpose.msra.mxu0 %v2847_v24  ;;  %1409 = vmatpush.bf16.msrb.mxu1 %v2441_v13 }
 0x1bd   : > { %1410 = vmatpush.bf16.msrb.mxu1 %v2425_v15 }
 0x1c1   : > { %1167 = vmatpush.bf16.xpose.msra.mxu0 %v2846_v36  ;;  %1411 = vmatpush.bf16.msrb.mxu1 %v2409_v8 }
 0x1c5   : > { %1412 = vmatpush.bf16.msrb.mxu1 %v2393_v19 }
 0x1c8   : > { %1168 = vmatmul.bf16.vlgmr.msra.gmra.mxu0 %v1095_v58 }
 0x1c9   : > { %1413 = vmatpush.bf16.msrb.mxu1 %v2377_v22 }
 0x245   : > { %v1169_v24 = vpop.f32.mrf.mxu0 }
 0x246   : > { %v1174_v25 = vpack.c.bf16 %v1169_v24, %v1169_v24 }
 0x248   : > { %1375 = vmatmul.bf16.vlgmr.msra.gmra.mxu1 %v1174_v25  ;;  %1388 = vmatmul.bf16.vlgmr.msra.gmra.mxu2 %v1174_v25 }
 0x249   : > { %1401 = vmatmul.bf16.vlgmr.msra.gmra.mxu3 %v1174_v25 }
 0x24d   : > { %v1171_v26 = vpop.f32.mrf.mxu0 }
 0x258   : > { %1414 = vmatmul.bf16.vlgmr.msrb.gmra.mxu1 %v1174_v25 }
 0x2c5   : > { %v1376_v27 = vpop.f32.mrf.mxu1 }
 0x2cb   : > { %v1389_v28 = vpop.f32.mrf.mxu2 }
 0x2cc   : > { %v1402_v29 = vpop.f32.mrf.mxu3  ;;  %v1423_v31 = vrot.slane %v1389_v28, 7 }
 0x2cd   : > { %v1378_v1 = vpop.f32.mrf.mxu1  ;;  %v1424_v38 = vrot.slane %v1402_v29, 6 }
 0x2ce   : > { %v1427_v41 = vsel %vm1426_vm4, %v1376_v27, %v1423_v31 }
 0x2d3   : > { %v1391_v30 = vpop.f32.mrf.mxu2 }
 0x2d4   : > { %v1404_v33 = vpop.f32.mrf.mxu3 }
 0x2d5   : > { %v1415_v34 = vpop.f32.mrf.mxu1 }
 0x2d6   : > { %v1425_v39 = vrot.slane %v1415_v34, 5 }
 0x2d8   : > { %v1429_v42 = vsel %vm1428_vm5, %v1424_v38, %v1425_v39 }
 0x2d9   : > { %v1431_v43 = vsel %vm1430_vm6, %v1427_v41, %v1429_v42 }
 0x2da   : > { %v1433_v44 = vadd.f32 %v1431_v43, %v1173_v40 }
 0x2dc   : > { %1438 = vst.msk [vmem:[#allocation2] sm:$0xf] %vm1436_vm7, %v1433_v44 }
 0x2dd   : > { %v1417_v36 = vpop.f32.mrf.mxu1 }
 0x2de PF: > { %p2490_p7 = scmp.ne.s32.totalorder %s3148_s30, 3 }
 0x2df   : > { %s2141_s12 = sld [smem:[#allocation6]] (!%p2490_p7) }
 0x2e0   : > { %1442 = sbr.rel (%p2490_p7) target bundleno = 1201 (0x4b1), region = 80 }
 0x2e5   : > { %v2549_v37 = vld [vmem:[%s4056_s7 + $0x70] sm:$0xf]  ;;  %v2901_v45 = vld [vmem:[%s4056_s7 + $0x74] sm:$0xf0]  ;;  %v2541_v55 = vld [vmem:[%s4056_s7 + $0x60] sm:$0xf] }
 0x2e6   : > { %v2613_v46 = vld [vmem:[%s4056_s7 + $0xf0] sm:$0xf]  ;;  %v2550_v47 = vor.u32 %v2901_v45, %v2549_v37  ;;  %v2917_v48 = vld [vmem:[%s4056_s7 + $0xf4] sm:$0xf0]  ;;  %v2899_v49 = vld [vmem:[%s4056_s7 + $0x64] sm:$0xf0] }
 0x2e7   : > { %v2677_v32 = vld [vmem:[%s4056_s7 + $0x170] sm:$0xf]  ;;  %v2933_v50 = vld [vmem:[%s4056_s7 + $0x174] sm:$0xf0]  ;;  %v2614_v51 = vor.u32 %v2917_v48, %v2613_v46  ;;  %v2605_v57 = vld [vmem:[%s4056_s7 + $0xe0] sm:$0xf]  ;;  %v2542_v59 = vor.u32 %v2899_v49, %v2541_v55 }
 0x2e8   : > { %v2678_v52 = vor.u32 %v2933_v50, %v2677_v32  ;;  %v2741_v53 = vld [vmem:[%s4056_s7 + $0x1f0] sm:$0xf]  ;;  %v2949_v54 = vld [vmem:[%s4056_s7 + $0x1f4] sm:$0xf0]  ;;  %1866 = vmatpush.bf16.msra.mxu0 %v2550_v47  ;;  %v2915_v58 = vld [vmem:[%s4056_s7 + $0xe4] sm:$0xf0] }
 0x2e9   : > { %v2742_v56 = vor.u32 %v2949_v54, %v2741_v53  ;;  %1879 = vmatpush.bf16.msra.mxu1 %v2614_v51  ;;  %v2606_v60 = vor.u32 %v2915_v58, %v2605_v57  ;;  %v2669_v61 = vld [vmem:[%s4056_s7 + $0x160] sm:$0xf]  ;;  %v2931_v62 = vld [vmem:[%s4056_s7 + $0x164] sm:$0xf0]  ;;  %v2533_v3 = vld [vmem:[%s4056_s7 + $0x50] sm:$0xf] }
 0x2ea   : > { %1892 = vmatpush.bf16.msra.mxu2 %v2678_v52  ;;  %v2733_v63 = vld [vmem:[%s4056_s7 + $0x1e0] sm:$0xf]  ;;  %v2670_v0 = vor.u32 %v2931_v62, %v2669_v61  ;;  %v2947_v2 = vld [vmem:[%s4056_s7 + $0x1e4] sm:$0xf0]  ;;  %v2897_v4 = vld [vmem:[%s4056_s7 + $0x54] sm:$0xf0] }
 0x2eb   : > { %1905 = vmatpush.bf16.msra.mxu3 %v2742_v56  ;;  %v2734_v5 = vor.u32 %v2947_v2, %v2733_v63  ;;  %v2597_v6 = vld [vmem:[%s4056_s7 + $0xd0] sm:$0xf]  ;;  %v2913_v7 = vld [vmem:[%s4056_s7 + $0xd4] sm:$0xf0]  ;;  %v2534_v11 = vor.u32 %v2897_v4, %v2533_v3  ;;  %v2525_v16 = vld [vmem:[%s4056_s7 + $0x40] sm:$0xf] }
 0x2ec   : > { %v2661_v10 = vld [vmem:[%s4056_s7 + $0x150] sm:$0xf]  ;;  %1867 = vmatpush.bf16.msra.mxu0 %v2542_v59  ;;  %v2929_v12 = vld [vmem:[%s4056_s7 + $0x154] sm:$0xf0]  ;;  %v2598_v14 = vor.u32 %v2913_v7, %v2597_v6  ;;  %v2895_v17 = vld [vmem:[%s4056_s7 + $0x44] sm:$0xf0] }
 0x2ed   : > { %v2725_v13 = vld [vmem:[%s4056_s7 + $0x1d0] sm:$0xf]  ;;  %v2945_v23 = vld [vmem:[%s4056_s7 + $0x1d4] sm:$0xf0]  ;;  %1880 = vmatpush.bf16.msra.mxu1 %v2606_v60  ;;  %v2662_v15 = vor.u32 %v2929_v12, %v2661_v10  ;;  %v2589_v8 = vld [vmem:[%s4056_s7 + $0xc0] sm:$0xf]  ;;  %v2526_v24 = vor.u32 %v2895_v17, %v2525_v16 }
 0x2ee   : > { %1893 = vmatpush.bf16.msra.mxu2 %v2670_v0  ;;  %v2726_v9 = vor.u32 %v2945_v23, %v2725_v13  ;;  %v2911_v18 = vld [vmem:[%s4056_s7 + $0xc4] sm:$0xf0]  ;;  %v2653_v19 = vld [vmem:[%s4056_s7 + $0x140] sm:$0xf]  ;;  %v2517_v27 = vld [vmem:[%s4056_s7 + $0x30] sm:$0xf] }
 0x2ef   : > { %1906 = vmatpush.bf16.msra.mxu3 %v2734_v5  ;;  %v2927_v20 = vld [vmem:[%s4056_s7 + $0x144] sm:$0xf0]  ;;  %v2717_v21 = vld [vmem:[%s4056_s7 + $0x1c0] sm:$0xf]  ;;  %v2590_v25 = vor.u32 %v2911_v18, %v2589_v8  ;;  %v2893_v28 = vld [vmem:[%s4056_s7 + $0x34] sm:$0xf0] }
 0x2f0   : > { %v2943_v22 = vld [vmem:[%s4056_s7 + $0x1c4] sm:$0xf0]  ;;  %1868 = vmatpush.bf16.msra.mxu0 %v2534_v11  ;;  %v2654_v26 = vor.u32 %v2927_v20, %v2653_v19  ;;  %v2581_v29 = vld [vmem:[%s4056_s7 + $0xb0] sm:$0xf]  ;;  %v2909_v30 = vld [vmem:[%s4056_s7 + $0xb4] sm:$0xf0]  ;;  %v2518_v38 = vor.u32 %v2893_v28, %v2517_v27 }
 0x2f1   : > { %1881 = vmatpush.bf16.msra.mxu1 %v2598_v14  ;;  %v2718_v1 = vor.u32 %v2943_v22, %v2717_v21  ;;  %v2645_v31 = vld [vmem:[%s4056_s7 + $0x130] sm:$0xf]  ;;  %v2925_v33 = vld [vmem:[%s4056_s7 + $0x134] sm:$0xf0]  ;;  %v2582_v39 = vor.u32 %v2909_v30, %v2581_v29  ;;  %v2509_v41 = vld [vmem:[%s4056_s7 + $0x20] sm:$0xf] }
 0x2f2   : > { %1894 = vmatpush.bf16.msra.mxu2 %v2662_v15  ;;  %v2709_v34 = vld [vmem:[%s4056_s7 + $0x1b0] sm:$0xf]  ;;  %v2941_v35 = vld [vmem:[%s4056_s7 + $0x1b4] sm:$0xf0]  ;;  %v2646_v40 = vor.u32 %v2925_v33, %v2645_v31  ;;  %v2891_v42 = vld [vmem:[%s4056_s7 + $0x24] sm:$0xf0] }
 0x2f3   : > { %1907 = vmatpush.bf16.msra.mxu3 %v2726_v9  ;;  %v2573_v43 = vld [vmem:[%s4056_s7 + $0xa0] sm:$0xf]  ;;  %v2710_v44 = vor.u32 %v2941_v35, %v2709_v34  ;;  %v2907_v36 = vld [vmem:[%s4056_s7 + $0xa4] sm:$0xf0]  ;;  %v2510_v48 = vor.u32 %v2891_v42, %v2509_v41  ;;  %v2501_v32 = vld [vmem:[%s4056_s7 + $0x10] sm:$0xf] }
 0x2f4   : > { %1869 = vmatpush.bf16.msra.mxu0 %v2526_v24  ;;  %v2637_v37 = vld [vmem:[%s4056_s7 + $0x120] sm:$0xf]  ;;  %v2923_v45 = vld [vmem:[%s4056_s7 + $0x124] sm:$0xf0]  ;;  %v2889_v50 = vld [vmem:[%s4056_s7 + $0x14] sm:$0xf0]  ;;  %v2574_v52 = vor.u32 %v2907_v36, %v2573_v43 }
 0x2f5   : > { %1882 = vmatpush.bf16.msra.mxu1 %v2590_v25  ;;  %v2701_v46 = vld [vmem:[%s4056_s7 + $0x1a0] sm:$0xf]  ;;  %v2939_v47 = vld [vmem:[%s4056_s7 + $0x1a4] sm:$0xf0]  ;;  %v2565_v51 = vld [vmem:[%s4056_s7 + $0x90] sm:$0xf]  ;;  %v2638_v53 = vor.u32 %v2923_v45, %v2637_v37  ;;  %v2502_v63 = vor.u32 %v2889_v50, %v2501_v32 }
 0x2f6   : > { %1895 = vmatpush.bf16.msra.mxu2 %v2654_v26  ;;  %v2905_v54 = vld [vmem:[%s4056_s7 + $0x94] sm:$0xf0]  ;;  %v2629_v55 = vld [vmem:[%s4056_s7 + $0x110] sm:$0xf]  ;;  %v2702_v49 = vor.u32 %v2939_v47, %v2701_v46  ;;  %v2493_v59 = vld [vmem:[%s4056_s7] sm:$0xf] }
 0x2f7   : > { %1908 = vmatpush.bf16.msra.mxu3 %v2718_v1  ;;  %v2921_v56 = vld [vmem:[%s4056_s7 + $0x114] sm:$0xf0]  ;;  %v2693_v57 = vld [vmem:[%s4056_s7 + $0x190] sm:$0xf]  ;;  %v2887_v60 = vld [vmem:[%s4056_s7 + $0x4] sm:$0xf0]  ;;  %v2566_v4 = vor.u32 %v2905_v54, %v2565_v51 }
 0x2f8   : > { %1870 = vmatpush.bf16.msra.mxu0 %v2518_v38  ;;  %v2937_v58 = vld [vmem:[%s4056_s7 + $0x194] sm:$0xf0]  ;;  %v2557_v61 = vld [vmem:[%s4056_s7 + $0x80] sm:$0xf]  ;;  %v2903_v62 = vld [vmem:[%s4056_s7 + $0x84] sm:$0xf0]  ;;  %v2630_v5 = vor.u32 %v2921_v56, %v2629_v55  ;;  %v2494_v13 = vor.u32 %v2887_v60, %v2493_v59 }
 0x2f9   : > { %1883 = vmatpush.bf16.msra.mxu1 %v2582_v39  ;;  %v2621_v0 = vld [vmem:[%s4056_s7 + $0x100] sm:$0xf]  ;;  %v2919_v2 = vld [vmem:[%s4056_s7 + $0x104] sm:$0xf0]  ;;  %v2900_v7 = vld [vmem:[%s4056_s7 + $0x74] sm:$0xf]  ;;  %v2694_v11 = vor.u32 %v2937_v58, %v2693_v57  ;;  %v2558_v16 = vor.u32 %v2903_v62, %v2557_v61 }
 0x2fa   : > { %1896 = vmatpush.bf16.msra.mxu2 %v2646_v40  ;;  %v2685_v3 = vld [vmem:[%s4056_s7 + $0x180] sm:$0xf]  ;;  %v2935_v6 = vld [vmem:[%s4056_s7 + $0x184] sm:$0xf0]  ;;  %v2551_v10 = vld [vmem:[%s4056_s7 + $0x78] sm:$0xf0]  ;;  %v2622_v17 = vor.u32 %v2919_v2, %v2621_v0 }
 0x2fb   : > { %1909 = vmatpush.bf16.msra.mxu3 %v2710_v44  ;;  %v2916_v12 = vld [vmem:[%s4056_s7 + $0xf4] sm:$0xf]  ;;  %v2615_v23 = vld [vmem:[%s4056_s7 + $0xf8] sm:$0xf0]  ;;  %v2686_v8 = vor.u32 %v2935_v6, %v2685_v3  ;;  %v2554_v9 = vor.u32 %v2900_v7, %v2551_v10  ;;  %v1444_v20 = vld [vmem:[#allocation2] sm:$0xf] }
 0x2fc   : > { %1871 = vmatpush.bf16.msra.mxu0 %v2510_v48  ;;  %v2932_v14 = vld [vmem:[%s4056_s7 + $0x174] sm:$0xf]  ;;  %v2679_v15 = vld [vmem:[%s4056_s7 + $0x178] sm:$0xf0]  ;;  %v2898_v21 = vld [vmem:[%s4056_s7 + $0x64] sm:$0xf]  ;;  %v2618_v27 = vor.u32 %v2916_v12, %v2615_v23 }
 0x2fd   : > { %1884 = vmatpush.bf16.msra.mxu1 %v2574_v52  ;;  %v2948_v18 = vld [vmem:[%s4056_s7 + $0x1f4] sm:$0xf]  ;;  %v2743_v19 = vld [vmem:[%s4056_s7 + $0x1f8] sm:$0xf0]  ;;  %v1446_v22 = vperm.slane %v1444_v20, 0  ;;  %v1447_v24 = vperm.slane %v1444_v20, 1  ;;  %v2682_v28 = vor.u32 %v2932_v14, %v2679_v15 }
 0x2fe   : > { %1897 = vmatpush.bf16.msra.mxu2 %v2638_v53  ;;  %v1448_v25 = vperm.slane %v1444_v20, 2  ;;  %v1449_v26 = vperm.slane %v1444_v20, 3  ;;  %v2543_v29 = vld [vmem:[%s4056_s7 + $0x68] sm:$0xf0]  ;;  %v2914_v1 = vld [vmem:[%s4056_s7 + $0xe4] sm:$0xf]  ;;  %v2746_v35 = vor.u32 %v2948_v18, %v2743_v19 }
 0x2ff   : > { %1910 = vmatpush.bf16.msra.mxu3 %v2702_v49  ;;  %vm1453_vm8 = vcmask 1041408   ;;  %vm1455_vm9 = vcmask 1045508   ;;  %v2607_v30 = vld [vmem:[%s4056_s7 + $0xe8] sm:$0xf0]  ;;  %v1450_v31 = vrot.slane %v1447_v24, 6  ;;  %vm1457_vm10 = vcmask 1043456  }
 0x300   : > { %1872 = vmatpush.bf16.msra.mxu0 %v2502_v63  ;;  %v1451_v33 = vrot.slane %v1448_v25, 4  ;;  %v1452_v34 = vrot.slane %v1449_v26, 2  ;;  %v2930_v38 = vld [vmem:[%s4056_s7 + $0x164] sm:$0xf]  ;;  %v2671_v39 = vld [vmem:[%s4056_s7 + $0x168] sm:$0xf0]  ;;  %v2546_v36 = vor.u32 %v2898_v21, %v2543_v29  ;;  %v2610_v45 = vor.u32 %v2914_v1, %v2607_v30 }
 0x301   : > { %1885 = vmatpush.bf16.msra.mxu1 %v2566_v4  ;;  %v1443_v40 = vld [vmem:[#allocation3] sm:$0xff]  ;;  %v2946_v41 = vld [vmem:[%s4056_s7 + $0x1e4] sm:$0xf]  ;;  %v1454_v43 = vsel %vm1453_vm8, %v1446_v22, %v1450_v31  ;;  %v2674_v46 = vor.u32 %v2930_v38, %v2671_v39  ;;  %v2896_v48 = vld [vmem:[%s4056_s7 + $0x54] sm:$0xf] }
 0x302   : > { %1898 = vmatpush.bf16.msra.mxu2 %v2630_v5  ;;  %v2735_v42 = vld [vmem:[%s4056_s7 + $0x1e8] sm:$0xf0]  ;;  %v1456_v44 = vsel %vm1455_vm9, %v1451_v33, %v1452_v34  ;;  %v2535_v32 = vld [vmem:[%s4056_s7 + $0x58] sm:$0xf0]  ;;  %v2912_v50 = vld [vmem:[%s4056_s7 + $0xd4] sm:$0xf] }
 0x303   : > { %1911 = vmatpush.bf16.msra.mxu3 %v2694_v11  ;;  %v1458_v37 = vsel %vm1457_vm10, %v1454_v43, %v1456_v44  ;;  %v2738_v51 = vor.u32 %v2946_v41, %v2735_v42  ;;  %v2599_v52 = vld [vmem:[%s4056_s7 + $0xd8] sm:$0xf0]  ;;  %v2928_v53 = vld [vmem:[%s4056_s7 + $0x154] sm:$0xf]  ;;  %v2538_v57 = vor.u32 %v2896_v48, %v2535_v32  ;;  %v2894_v58 = vld [vmem:[%s4056_s7 + $0x44] sm:$0xf] }
 0x304   : > { %1873 = vmatpush.bf16.msra.mxu0 %v2494_v13  ;;  %v1460_v47 = vadd.f32 %v1458_v37, %v1443_v40  ;;  %v2663_v54 = vld [vmem:[%s4056_s7 + $0x158] sm:$0xf0]  ;;  %v2944_v56 = vld [vmem:[%s4056_s7 + $0x1d4] sm:$0xf]  ;;  %v2602_v59 = vor.u32 %v2912_v50, %v2599_v52  ;;  %v2527_v61 = vld [vmem:[%s4056_s7 + $0x48] sm:$0xf0] }
 0x305   : > { %1886 = vmatpush.bf16.msra.mxu1 %v2558_v16  ;;  %v2727_v49 = vld [vmem:[%s4056_s7 + $0x1d8] sm:$0xf0]  ;;  %v2666_v60 = vor.u32 %v2928_v53, %v2663_v54  ;;  %v2910_v62 = vld [vmem:[%s4056_s7 + $0xc4] sm:$0xf]  ;;  %v2591_v0 = vld [vmem:[%s4056_s7 + $0xc8] sm:$0xf0]  ;;  %v2530_v6 = vor.u32 %v2894_v58, %v2527_v61 }
 0x306   : > { %1899 = vmatpush.bf16.msra.mxu2 %v2622_v17  ;;  %v1461_v55 = vmax.f32 %v1460_v47, 0.0  ;;  %v2730_v63 = vor.u32 %v2944_v56, %v2727_v49  ;;  %v2926_v2 = vld [vmem:[%s4056_s7 + $0x144] sm:$0xf]  ;;  %v2655_v3 = vld [vmem:[%s4056_s7 + $0x148] sm:$0xf0]  ;;  %v2594_v7 = vor.u32 %v2910_v62, %v2591_v0 }
 0x307   : > { %1912 = vmatpush.bf16.msra.mxu3 %v2686_v8  ;;  %v2942_v4 = vld [vmem:[%s4056_s7 + $0x1c4] sm:$0xf]  ;;  %v2719_v5 = vld [vmem:[%s4056_s7 + $0x1c8] sm:$0xf0]  ;;  %v2658_v10 = vor.u32 %v2926_v2, %v2655_v3  ;;  %v2892_v11 = vld [vmem:[%s4056_s7 + $0x34] sm:$0xf] }
 0x308   : > { %1918 = vmatpush.bf16.msrb.mxu0 %v2554_v9  ;;  %1463 = vst [vmem:[#allocation1] ss:$4 sm:$0xff] %v1461_v55  ;;  %v2519_v12 = vld [vmem:[%s4056_s7 + $0x38] sm:$0xf0]  ;;  %v2722_v13 = vor.u32 %v2942_v4, %v2719_v5  ;;  %v2908_v23 = vld [vmem:[%s4056_s7 + $0xb4] sm:$0xf] }
 0x309   : > { %1931 = vmatpush.bf16.msrb.mxu1 %v2618_v27  ;;  %v2583_v14 = vld [vmem:[%s4056_s7 + $0xb8] sm:$0xf0]  ;;  %v2924_v15 = vld [vmem:[%s4056_s7 + $0x134] sm:$0xf]  ;;  %v2522_v19 = vor.u32 %v2892_v11, %v2519_v12  ;;  %v2890_v20 = vld [vmem:[%s4056_s7 + $0x24] sm:$0xf] }
 0x30a   : > { %1944 = vmatpush.bf16.msrb.mxu2 %v2682_v28  ;;  %v2647_v16 = vld [vmem:[%s4056_s7 + $0x138] sm:$0xf0]  ;;  %v2940_v17 = vld [vmem:[%s4056_s7 + $0x1b4] sm:$0xf]  ;;  %v2511_v21 = vld [vmem:[%s4056_s7 + $0x28] sm:$0xf0]  ;;  %v2586_v27 = vor.u32 %v2908_v23, %v2583_v14 }
 0x30b   : > { %1957 = vmatpush.bf16.msrb.mxu3 %v2746_v35  ;;  %v2711_v8 = vld [vmem:[%s4056_s7 + $0x1b8] sm:$0xf0]  ;;  %v2650_v1 = vor.u32 %v2924_v15, %v2647_v16  ;;  %v2906_v31 = vld [vmem:[%s4056_s7 + $0xa4] sm:$0xf]  ;;  %v2575_v33 = vld [vmem:[%s4056_s7 + $0xa8] sm:$0xf0]  ;;  %v2514_v40 = vor.u32 %v2890_v20, %v2511_v21 }
 0x30c   : > { %1919 = vmatpush.bf16.msrb.mxu0 %v2546_v36  ;;  %v2714_v30 = vor.u32 %v2940_v17, %v2711_v8  ;;  %v2922_v34 = vld [vmem:[%s4056_s7 + $0x124] sm:$0xf]  ;;  %v2639_v35 = vld [vmem:[%s4056_s7 + $0x128] sm:$0xf0]  ;;  %v2578_v41 = vor.u32 %v2906_v31, %v2575_v33  ;;  %v2888_v42 = vld [vmem:[%s4056_s7 + $0x14] sm:$0xf] }
 0x30d   : > { %1932 = vmatpush.bf16.msrb.mxu1 %v2610_v45  ;;  %v2938_v38 = vld [vmem:[%s4056_s7 + $0x1a4] sm:$0xf]  ;;  %v2703_v39 = vld [vmem:[%s4056_s7 + $0x1a8] sm:$0xf0]  ;;  %v2503_v43 = vld [vmem:[%s4056_s7 + $0x18] sm:$0xf0]  ;;  %v2642_v44 = vor.u32 %v2922_v34, %v2639_v35 }
 0x30e   : > { %1945 = vmatpush.bf16.msrb.mxu2 %v2674_v46  ;;  %v2706_v36 = vor.u32 %v2938_v38, %v2703_v39  ;;  %v2904_v37 = vld [vmem:[%s4056_s7 + $0x94] sm:$0xf]  ;;  %v2567_v45 = vld [vmem:[%s4056_s7 + $0x98] sm:$0xf0]  ;;  %v2506_v50 = vor.u32 %v2888_v42, %v2503_v43  ;;  %v2886_v52 = vld [vmem:[%s4056_s7 + $0x4] sm:$0xf] }
 0x30f   : > { %1958 = vmatpush.bf16.msrb.mxu3 %v2738_v51  ;;  %v1466_v9 = vld.sshfl [vmem:[#allocation1 + $0x10] sm:$0xff pattern:$0x73625140]  ;;  %v1464_v18 = vld.sshfl [vmem:[#allocation1] sm:$0xff pattern:$0x73625140]  ;;  %v2570_v51 = vor.u32 %v2904_v37, %v2567_v45 }
 0x310   : > { %1920 = vmatpush.bf16.msrb.mxu0 %v2538_v57  ;;  %v3907_v22 = vpack.c.bf16 %v1466_v9, %v1466_v9  ;;  %v3909_v24 = vpack.c.bf16 %v1464_v18, %v1464_v18  ;;  %v1467_v25 = vld.sshfl [vmem:[#allocation1 + $0x18] sm:$0xff pattern:$0x73625140]  ;;  %v1465_v26 = vld.sshfl [vmem:[#allocation1 + $0x8] sm:$0xff pattern:$0x73625140] }
 0x311   : > { %1933 = vmatpush.bf16.msrb.mxu1 %v2602_v59  ;;  %v3911_v28 = vpack.c.bf16 %v1467_v25, %v1467_v25  ;;  %v1473_v29 = vpack.c.bf16 %v1465_v26, %v1465_v26  ;;  %v2920_v46 = vld [vmem:[%s4056_s7 + $0x114] sm:$0xf]  ;;  %v2631_v47 = vld [vmem:[%s4056_s7 + $0x118] sm:$0xf0]  ;;  %v2495_v53 = vld [vmem:[%s4056_s7 + $0x8] sm:$0xf0] }
 0x312   : > { %1946 = vmatpush.bf16.msrb.mxu2 %v2666_v60  ;;  %1874 = vmatmul.bf16.vlgmr.msra.gmra.mxu0 %v3909_v24  ;;  %v2936_v48 = vld [vmem:[%s4056_s7 + $0x194] sm:$0xf]  ;;  %v2695_v32 = vld [vmem:[%s4056_s7 + $0x198] sm:$0xf0]  ;;  %v2634_v54 = vor.u32 %v2920_v46, %v2631_v47  ;;  %v2902_v56 = vld [vmem:[%s4056_s7 + $0x84] sm:$0xf]  ;;  %v2498_v61 = vor.u32 %v2886_v52, %v2495_v53 }
 0x313   : > { %1959 = vmatpush.bf16.msrb.mxu3 %v2730_v63  ;;  %1900 = vmatmul.bf16.vlgmr.msra.gmra.mxu2 %v3907_v22  ;;  %v2698_v55 = vor.u32 %v2936_v48, %v2695_v32  ;;  %v2559_v49 = vld [vmem:[%s4056_s7 + $0x88] sm:$0xf0]  ;;  %v2918_v57 = vld [vmem:[%s4056_s7 + $0x104] sm:$0xf]  ;;  %v2957_v2 = vld [vmem:[%s4058_s9 + $0x38] sm:$0xff] }
 0x314   : > { %1921 = vmatpush.bf16.msrb.mxu0 %v2530_v6  ;;  %1913 = vmatmul.bf16.vlgmr.msra.gmra.mxu3 %v3911_v28  ;;  %v2623_v58 = vld [vmem:[%s4056_s7 + $0x108] sm:$0xf0]  ;;  %v2934_v59 = vld [vmem:[%s4056_s7 + $0x184] sm:$0xf]  ;;  %v2562_v62 = vor.u32 %v2902_v56, %v2559_v49  ;;  %v2956_v3 = vld [vmem:[%s4058_s9 + $0x30] sm:$0xff] }
 0x315   : > { %1934 = vmatpush.bf16.msrb.mxu1 %v2594_v7  ;;  %v2687_v60 = vld [vmem:[%s4056_s7 + $0x188] sm:$0xf0]  ;;  %v2626_v63 = vor.u32 %v2918_v57, %v2623_v58  ;;  %v2954_v5 = vld [vmem:[%s4058_s9 + $0x20] sm:$0xff]  ;;  %v2953_v6 = vld [vmem:[%s4058_s9 + $0x18] sm:$0xff] }
 0x316   : > { %1947 = vmatpush.bf16.msrb.mxu2 %v2658_v10  ;;  %1887 = vmatmul.bf16.vlgmr.msra.gmra.mxu1 %v1473_v29  ;;  %v2690_v0 = vor.u32 %v2934_v59, %v2687_v60  ;;  %v2955_v4 = vld [vmem:[%s4058_s9 + $0x28] sm:$0xff]  ;;  %v2952_v7 = vld [vmem:[%s4058_s9 + $0x10] sm:$0xff]  ;;  %v2965_v11 = vld [vmem:[%s4058_s9 + $0x78] sm:$0xff]  ;;  %v2142_v59 = vstv %s2141_s12 }
 0x317   : > { %1960 = vmatpush.bf16.msrb.mxu3 %v2722_v13  ;;  %v2951_v10 = vld [vmem:[%s4058_s9 + $0x8] sm:$0xff]  ;;  %v2950_v12 = vld [vmem:[%s4058_s9] sm:$0xff]  ;;  %v2964_v13 = vld [vmem:[%s4058_s9 + $0x70] sm:$0xff] }
 0x318   : > { %1922 = vmatpush.bf16.msrb.mxu0 %v2522_v19  ;;  %v2963_v23 = vld [vmem:[%s4058_s9 + $0x68] sm:$0xff]  ;;  %v2962_v14 = vld [vmem:[%s4058_s9 + $0x60] sm:$0xff]  ;;  %v2961_v15 = vld [vmem:[%s4058_s9 + $0x58] sm:$0xff] }
 0x319   : > { %1935 = vmatpush.bf16.msrb.mxu1 %v2586_v27  ;;  %v2960_v16 = vld [vmem:[%s4058_s9 + $0x50] sm:$0xff]  ;;  %v1540_v17 = vld [vmem:[%s4057_s8] sm:$0x3]  ;;  %v2959_v9 = vld [vmem:[%s4058_s9 + $0x48] sm:$0xff] }
 0x31a   : > { %1948 = vmatpush.bf16.msrb.mxu2 %v2650_v1  ;;  %v1542_v8 = vperm.slane %v1540_v17, 0  ;;  %v2958_v19 = vld [vmem:[%s4058_s9 + $0x40] sm:$0xff]  ;;  %v1543_v33 = vperm.slane %v1540_v17, 1 }
 0x31b   : > { %1961 = vmatpush.bf16.msrb.mxu3 %v2714_v30 }
 0x31c   : > { %1923 = vmatpush.bf16.msrb.mxu0 %v2514_v40 }
 0x31d   : > { %1936 = vmatpush.bf16.msrb.mxu1 %v2578_v41 }
 0x31e   : > { %1949 = vmatpush.bf16.msrb.mxu2 %v2642_v44 }
 0x31f   : > { %1962 = vmatpush.bf16.msrb.mxu3 %v2706_v36 }
 0x320   : > { %1924 = vmatpush.bf16.msrb.mxu0 %v2506_v50 }
 0x321   : > { %1937 = vmatpush.bf16.msrb.mxu1 %v2570_v51  ;;  %v3055_v51 = vld [vmem:[%s4059_s10] ss:$0 sm:$0xff] }
 0x322   : > { %1950 = vmatpush.bf16.msrb.mxu2 %v2634_v54 }
 0x323   : > { %1963 = vmatpush.bf16.msrb.mxu3 %v2698_v55  ;;  %v3056_v55 = vld [vmem:[%s4060_s11] ss:$0 sm:$0xff] }
 0x324   : > { %1925 = vmatpush.bf16.msrb.mxu0 %v2498_v61 }
 0x325   : > { %1938 = vmatpush.bf16.msrb.mxu1 %v2562_v62 }
 0x326   : > { %1951 = vmatpush.bf16.msrb.mxu2 %v2626_v63 }
 0x327   : > { %1964 = vmatpush.bf16.msrb.mxu3 %v2690_v0  ;;  %1926 = vmatmul.bf16.vlgmr.msrb.gmra.mxu0 %v3909_v24 }
 0x328   : > { %2106 = vmatpush.bf16.msra.mxu0 %v2957_v2  ;;  %1939 = vmatmul.bf16.vlgmr.msrb.gmra.mxu1 %v1473_v29 }
 0x329   : > { %1952 = vmatmul.bf16.vlgmr.msrb.gmra.mxu2 %v3907_v22  ;;  %2119 = vmatpush.bf16.msra.mxu1 %v2965_v11 }
 0x32a   : > { %1965 = vmatmul.bf16.vlgmr.msrb.gmra.mxu3 %v3911_v28 }
 0x32c   : > { %2107 = vmatpush.bf16.msra.mxu0 %v2956_v3 }
 0x32d   : > { %2120 = vmatpush.bf16.msra.mxu1 %v2964_v13 }
 0x330   : > { %2108 = vmatpush.bf16.msra.mxu0 %v2955_v4 }
 0x331   : > { %2121 = vmatpush.bf16.msra.mxu1 %v2963_v23 }
 0x334   : > { %2109 = vmatpush.bf16.msra.mxu0 %v2954_v5 }
 0x335   : > { %2122 = vmatpush.bf16.msra.mxu1 %v2962_v14 }
 0x338   : > { %2110 = vmatpush.bf16.msra.mxu0 %v2953_v6 }
 0x339   : > { %2123 = vmatpush.bf16.msra.mxu1 %v2961_v15 }
 0x33c   : > { %2111 = vmatpush.bf16.msra.mxu0 %v2952_v7 }
 0x33d   : > { %2124 = vmatpush.bf16.msra.mxu1 %v2960_v16 }
 0x340   : > { %2112 = vmatpush.bf16.msra.mxu0 %v2951_v10 }
 0x341   : > { %2125 = vmatpush.bf16.msra.mxu1 %v2959_v9 }
 0x344   : > { %2113 = vmatpush.bf16.msra.mxu0 %v2950_v12 }
 0x345   : > { %2126 = vmatpush.bf16.msra.mxu1 %v2958_v19 }
 0x38f   : > { %v1875_v18 = vpop.f32.mrf.mxu0 }
 0x390   : > { %v1876_v20 = vadd.f32 %v1875_v18, %v1542_v8 }
 0x393   : > { %v1888_v21 = vpop.f32.mrf.mxu1 }
 0x394   : > { %v1889_v22 = vadd.f32 %v1888_v21, %v1876_v20 }
 0x396   : > { %v1901_v24 = vpop.f32.mrf.mxu2 }
 0x397   : > { %v1902_v25 = vadd.f32 %v1901_v24, %v1889_v22  ;;  %v1914_v26 = vpop.f32.mrf.mxu3  ;;  %v1877_v27 = vpop.f32.mrf.mxu0 }
 0x399   : > { %v1915_v28 = vadd.f32 %v1914_v26, %v1902_v25 }
 0x39b   : > { %v1890_v29 = vpop.f32.mrf.mxu1  ;;  %v1970_v1 = vmax.f32 %v1915_v28, 0.0 }
 0x39d   : > { %v1972_v30 = vpack.c.bf16 %v1970_v1, %v1970_v1 }
 0x39e   : > { %v1903_v31 = vpop.f32.mrf.mxu2 }
 0x39f   : > { %2114 = vmatmul.bf16.vlgmr.msra.gmra.mxu0 %v1972_v30  ;;  %v1916_v34 = vpop.f32.mrf.mxu3 }
 0x3a4   : > { %v1927_v35 = vpop.f32.mrf.mxu0 }
 0x3a5   : > { %v1940_v38 = vpop.f32.mrf.mxu1  ;;  %v1928_v39 = vadd.f32 %v1927_v35, %v1543_v33 }
 0x3a7   : > { %v1941_v40 = vadd.f32 %v1940_v38, %v1928_v39 }
 0x3ac   : > { %v1953_v41 = vpop.f32.mrf.mxu2  ;;  %v1929_v44 = vpop.f32.mrf.mxu0 }
 0x3ad   : > { %v1966_v42 = vpop.f32.mrf.mxu3  ;;  %v1954_v43 = vadd.f32 %v1953_v41, %v1941_v40  ;;  %v1942_v36 = vpop.f32.mrf.mxu1 }
 0x3af   : > { %v1967_v37 = vadd.f32 %v1966_v42, %v1954_v43 }
 0x3b1   : > { %v1971_v45 = vmax.f32 %v1967_v37, 0.0 }
 0x3b3   : > { %v1973_v46 = vpack.c.bf16 %v1971_v45, %v1971_v45 }
 0x3b4   : > { %v1955_v47 = vpop.f32.mrf.mxu2 }
 0x3b5   : > { %v1968_v48 = vpop.f32.mrf.mxu3  ;;  %2127 = vmatmul.bf16.vlgmr.msra.gmra.mxu1 %v1973_v46 }
 0x41c   : > { %v2115_v32 = vpop.f32.mrf.mxu0 }
 0x41d   : > { %v2116_v52 = vadd.f32 %v3055_v51, %v2115_v32 }
 0x424   : > { %v2117_v50 = vpop.f32.mrf.mxu0 }
 0x432   : > { %v2128_v53 = vpop.f32.mrf.mxu1 }
 0x433   : > { %v2129_v54 = vadd.f32 %v2128_v53, %v2116_v52 }
 0x435   : > { %v2132_v56 = vmax.f32 %v2129_v54, 0.0 }
 0x437   : > { %v2137_v49 = vmul.f32 %v3056_v55, %v2132_v56 }
 0x439   : > { %v2138_v57 = vsel %vm1453_vm8, %v2137_v49, 0.0 }
 0x43a   : > { %v2130_v58 = vpop.f32.mrf.mxu1  ;;  %2139 = vadd.xlane.f32.xlu0 %v2138_v57 }
 0x4ad   : > { %v2140_v60 = vpop.xlane.xlu0 %2139 }
 0x4ae   : > { %v2143_v61 = vadd.f32 %v2142_v59, %v2140_v60 }
 0x4b0   : > { %2144 = vst [vmem:[%s4062_s13] sm:$0x3] %v2143_v61 }
 0x4b1 PF: > { %s25_s29 = sadd.s32 1, %s3063_s29  }
 0x4b2   : > { %p22_p8 = scmp.ge.s32.totalorder %s25_s29, 6  }
 0x4b4   :  { %24 = sbr.rel (!%p22_p8) target bundleno = 3 (0x3), region = 109 }

</bundles_post_ra>
